<compile_context>
chip_gen: v5e
topology: v5e:2x2
jax: 0.10.0
libtpu: 0.0.40
codegen_flags: <defaults>
</compile_context>

<pallas_src>
import jax
import jax.numpy as jnp
from jax.experimental import pallas as pl
from jax.experimental.pallas import tpu as pltpu
import numpy as np

# ---------------- model config (matches Siren.__init__ semantics) ------------
IN_FEATURES = 2
HIDDEN_FEATURES = (32, 32, 32)   # hidden_layers = 2  -> len == hidden_layers + 1
HIDDEN_LAYERS = 2
OUT_FEATURES = 3
OUTERMOST_LINEAR = True
FIRST_OMEGA_0 = 30.0
HIDDEN_OMEGA_0 = 30.0

TILE_N = 32768                   # lanes per grid step (multiple of 128)
VMEM_LIMIT_BYTES = 48 * 1024 * 1024


def _round_up(x, m):
    return (x + m - 1) // m * m


# ---------------- parameter init (deterministic, mirrors PyTorch init) -------
def _uniform(key, shape, lo, hi):
    return jax.random.uniform(key, shape, dtype=jnp.float32, minval=lo, maxval=hi)


def init_siren_params(key):
    """Returns list of (W[out,in], b[out]) for every linear layer (PyTorch layout)."""
    dims_in = (IN_FEATURES,) + HIDDEN_FEATURES
    dims_out = HIDDEN_FEATURES + (OUT_FEATURES,)
    params = []
    for li, (din, dout) in enumerate(zip(dims_in, dims_out)):
        key, kw, kb = jax.random.split(key, 3)
        if li == 0:
            bound_w = 1.0 / din                                  # first SineLayer
        else:
            bound_w = float(np.sqrt(6.0 / din) / HIDDEN_OMEGA_0)  # hidden / final
        w = _uniform(kw, (dout, din), -bound_w, bound_w)
        bound_b = 1.0 / float(np.sqrt(din))                       # nn.Linear bias init
        b = _uniform(kb, (dout,), -bound_b, bound_b)
        params.append((w, b))
    return params


def _fold_omega(params):
    """sin(omega*(W@h+b)) == sin((omega*W)@h + omega*b): scale once on host."""
    scaled = []
    n_layers = len(params)
    for li, (w, b) in enumerate(params):
        if li == 0:
            s = FIRST_OMEGA_0
        elif li < n_layers - 1:
            s = HIDDEN_OMEGA_0
        else:
            s = 1.0          # outermost plain linear
        scaled.append((s * w, (s * b).reshape(-1, 1)))
    return scaled


# ---------------- Pallas kernel ----------------------------------------------
def siren_kernel(x_ref,
                 w0_ref, b0_ref, w1_ref, b1_ref, w2_ref, b2_ref, wf_ref, bf_ref,
                 o_ref):
    # x: (IN_FEATURES, TILE_N)  -- lane axis is the row axis (fully dense).
    x = x_ref[...]
    w0 = w0_ref[...]                                    # (H0, IN)

    # Layer 0 (first SineLayer, omega folded in).  K=2 contraction as two
    # broadcast FMAs on the VPU instead of a near-empty MXU matmul.
    h = w0[:, 0:1] * x[0:1, :] + w0[:, 1:2] * x[1:2, :] + b0_ref[...]
    h = jnp.sin(h)                                      # (H0, TILE_N)

    # Hidden SineLayers (omega folded into weights/biases).
    # NOTE: jnp.sin kept as-is; replace with a bounded-range custom polynomial
    # only if a bundle dump shows it saturating the VALU rather than the EUP.
    h = jnp.sin(jnp.dot(w1_ref[...], h,
                        preferred_element_type=jnp.float32) + b1_ref[...])
    h = jnp.sin(jnp.dot(w2_ref[...], h,
                        preferred_element_type=jnp.float32) + b2_ref[...])

    # Outermost layer: plain linear (outermost_linear=True).
    o_ref[...] = (jnp.dot(wf_ref[...], h,
                          preferred_element_type=jnp.float32) + bf_ref[...])


def _pick_tile(n):
    """Lane-aligned tile; >= 2 grid steps when possible (v7x megacore), <= TILE_N."""
    n_lane = _round_up(max(int(n), 1), 128)
    half = _round_up(pl.cdiv(n_lane, 2), 128)
    return max(128, min(TILE_N, half))


def siren_forward_t(x_t, params):
    """Lane-dense entry point: x_t (IN_FEATURES, N) f32 -> (OUT_FEATURES, N) f32.

    Use this directly from a (features, rows) producer/consumer to avoid any
    wrapper-side transpose HBM passes.
    """
    n = x_t.shape[1]
    tile_n = _pick_tile(n)
    grid = (pl.cdiv(n, tile_n),)   # ragged last block: Pallas masks OOB writes

    # Fold omega into the (tiny) parameters and flatten into the arg list.
    flat_params = []
    for w, b in _fold_omega(params):
        flat_params.extend([w, b])

    def full_spec(arr):
        # whole (tiny) weight/bias, constant block index -> fetched once, resident
        return pl.BlockSpec(arr.shape, lambda i: (0, 0))

    in_specs = [pl.BlockSpec((IN_FEATURES, tile_n), lambda i: (0, i))]
    in_specs += [full_spec(a) for a in flat_params]

    # Advisory cost estimate: EUP (sin) heavy, MXU/HBM light.
    h0, h1, h2 = HIDDEN_FEATURES
    flops = int(n) * 2 * (IN_FEATURES * h0 + h0 * h1 + h1 * h2
                          + h2 * OUT_FEATURES)
    transc = int(n) * (h0 + h1 + h2)
    param_bytes = sum(int(np.prod(a.shape)) * 4 for a in flat_params)
    bytes_accessed = 4 * int(n) * (IN_FEATURES + OUT_FEATURES) + param_bytes

    return pl.pallas_call(
        siren_kernel,
        out_shape=jax.ShapeDtypeStruct((OUT_FEATURES, n), jnp.float32),
        grid_spec=pltpu.PrefetchScalarGridSpec(
            num_scalar_prefetch=0,
            grid=grid,
            in_specs=in_specs,
            out_specs=pl.BlockSpec((OUT_FEATURES, tile_n), lambda i: (0, i)),
        ),
        compiler_params=pltpu.CompilerParams(
            dimension_semantics=("parallel",),
            vmem_limit_bytes=VMEM_LIMIT_BYTES),
        cost_estimate=pl.CostEstimate(
            flops=flops, transcendentals=transc,
            bytes_accessed=bytes_accessed),
    )(x_t, *flat_params)


@jax.jit
def siren_forward(coords, params):
    """PyTorch-compatible layout: coords (..., IN_FEATURES) -> (..., OUT_FEATURES).

    The two transposes here are pure layout plumbing for the external
    (rows, features) interface; a lane-dense caller should use
    siren_forward_t() and skip them entirely.
    """
    lead_shape = coords.shape[:-1]
    x_t = coords.reshape(-1, IN_FEATURES).astype(jnp.float32).T   # (IN, N)
    out_t = siren_forward_t(x_t, params)                          # (OUT, N)
    return out_t.T.reshape(*lead_shape, OUT_FEATURES)


# ---------------- pure-JAX reference for correctness --------------------------
def siren_ref(coords, params):
    h = coords.reshape(-1, IN_FEATURES).astype(jnp.float32)
    n_layers = len(params)
    for li, (w, b) in enumerate(params):
        z = h @ w.T + b
        if li == 0:
            h = jnp.sin(FIRST_OMEGA_0 * z)
        elif li < n_layers - 1:
            h = jnp.sin(HIDDEN_OMEGA_0 * z)
        else:
            h = z  # outermost linear
    return h.reshape(*coords.shape[:-1], OUT_FEATURES)


if __name__ == "__main__":
    key = jax.random.PRNGKey(0)
    k_param, k_in, k_in2 = jax.random.split(key, 3)

    params = init_siren_params(k_param)

    # Test 1: a 16x16 grid of 2-D coordinates for batch 2 -> 512 rows of (x, y).
    coords = jax.random.uniform(k_in, (2, 16, 16, IN_FEATURES),
                                dtype=jnp.float32, minval=-1.0, maxval=1.0)
    out = jax.block_until_ready(siren_forward(coords, params))
    ref = siren_ref(coords, params)
    assert out.shape == (2, 16, 16, OUT_FEATURES)
    np.testing.assert_allclose(np.asarray(out), np.asarray(ref),
                               rtol=1e-5, atol=1e-5)

    # Test 2: ragged row count (221 rows) -> exercises the pad-free, masked
    # last-tile path that replaced the wrapper-side jnp.pad.
    coords2 = jax.random.uniform(k_in2, (1, 13, 17, IN_FEATURES),
                                 dtype=jnp.float32, minval=-1.0, maxval=1.0)
    out2 = jax.block_until_ready(siren_forward(coords2, params))
    ref2 = siren_ref(coords2, params)
    assert out2.shape == (1, 13, 17, OUT_FEATURES)
    np.testing.assert_allclose(np.asarray(out2), np.asarray(ref2),
                               rtol=1e-5, atol=1e-5)

    print("KERNEL_OK")
</pallas_src>

<mosaic_0001>
module attributes {stable_mosaic.version = 11 : i64} {
  func.func @siren_kernel(%arg0: i32, %arg1: memref<2x256xf32, #tpu.memory_space<vmem>>, %arg2: memref<32x2xf32, #tpu.memory_space<vmem>>, %arg3: memref<32x1xf32, #tpu.memory_space<vmem>>, %arg4: memref<32x32xf32, #tpu.memory_space<vmem>>, %arg5: memref<32x1xf32, #tpu.memory_space<vmem>>, %arg6: memref<32x32xf32, #tpu.memory_space<vmem>>, %arg7: memref<32x1xf32, #tpu.memory_space<vmem>>, %arg8: memref<3x32xf32, #tpu.memory_space<vmem>>, %arg9: memref<3x1xf32, #tpu.memory_space<vmem>>, %arg10: memref<3x256xf32, #tpu.memory_space<vmem>>) attributes {dimension_semantics = [#tpu.dimension_semantics<parallel>], iteration_bounds = array<i64: 2>, scalar_prefetch = 0 : i64, scratch_operands = 0 : i64, tpu.core_type = #tpu.core_type<tc>, window_params = [{transform_indices = @transform_0, window_bounds = array<i64: 2, 256>}, {pipeline_mode = #tpu.pipeline_mode<synchronous>, transform_indices = @transform_1, window_bounds = array<i64: 32, 2>}, {pipeline_mode = #tpu.pipeline_mode<synchronous>, transform_indices = @transform_2, window_bounds = array<i64: 32, 1>}, {pipeline_mode = #tpu.pipeline_mode<synchronous>, transform_indices = @transform_3, window_bounds = array<i64: 32, 32>}, {pipeline_mode = #tpu.pipeline_mode<synchronous>, transform_indices = @transform_4, window_bounds = array<i64: 32, 1>}, {pipeline_mode = #tpu.pipeline_mode<synchronous>, transform_indices = @transform_5, window_bounds = array<i64: 32, 32>}, {pipeline_mode = #tpu.pipeline_mode<synchronous>, transform_indices = @transform_6, window_bounds = array<i64: 32, 1>}, {pipeline_mode = #tpu.pipeline_mode<synchronous>, transform_indices = @transform_7, window_bounds = array<i64: 3, 32>}, {pipeline_mode = #tpu.pipeline_mode<synchronous>, transform_indices = @transform_8, window_bounds = array<i64: 3, 1>}, {transform_indices = @transform_9, window_bounds = array<i64: 3, 256>}]} {
    %c0 = arith.constant 0 : index
    %c0_0 = arith.constant 0 : index
    %0 = vector.load %arg1[%c0, %c0_0] : memref<2x256xf32, #tpu.memory_space<vmem>>, vector<2x256xf32>
    %c0_1 = arith.constant 0 : index
    %c0_2 = arith.constant 0 : index
    %1 = vector.load %arg2[%c0_1, %c0_2] : memref<32x2xf32, #tpu.memory_space<vmem>>, vector<32x2xf32>
    %2 = vector.extract_strided_slice %1 {offsets = [0, 0], sizes = [32, 1], strides = [1, 1]} : vector<32x2xf32> to vector<32x1xf32>
    %3 = vector.extract_strided_slice %0 {offsets = [0, 0], sizes = [1, 256], strides = [1, 1]} : vector<2x256xf32> to vector<1x256xf32>
    %4 = vector.broadcast %2 : vector<32x1xf32> to vector<32x256xf32>
    %5 = vector.broadcast %3 : vector<1x256xf32> to vector<32x256xf32>
    %6 = arith.mulf %4, %5 : vector<32x256xf32>
    %7 = vector.extract_strided_slice %1 {offsets = [0, 1], sizes = [32, 1], strides = [1, 1]} : vector<32x2xf32> to vector<32x1xf32>
    %8 = vector.extract_strided_slice %0 {offsets = [1, 0], sizes = [1, 256], strides = [1, 1]} : vector<2x256xf32> to vector<1x256xf32>
    %9 = vector.broadcast %7 : vector<32x1xf32> to vector<32x256xf32>
    %10 = vector.broadcast %8 : vector<1x256xf32> to vector<32x256xf32>
    %11 = arith.mulf %9, %10 : vector<32x256xf32>
    %12 = arith.addf %6, %11 : vector<32x256xf32>
    %c0_3 = arith.constant 0 : index
    %c0_4 = arith.constant 0 : index
    %13 = vector.load %arg3[%c0_3, %c0_4] : memref<32x1xf32, #tpu.memory_space<vmem>>, vector<32x1xf32>
    %14 = vector.broadcast %13 : vector<32x1xf32> to vector<32x256xf32>
    %15 = arith.addf %12, %14 : vector<32x256xf32>
    %16 = math.sin %15 : vector<32x256xf32>
    %c0_5 = arith.constant 0 : index
    %c0_6 = arith.constant 0 : index
    %17 = vector.load %arg4[%c0_5, %c0_6] : memref<32x32xf32, #tpu.memory_space<vmem>>, vector<32x32xf32>
    %cst = arith.constant dense<0.000000e+00> : vector<32x256xf32>
    %18 = tpu.matmul %17, %16, %cst {dimension_numbers = #tpu.dot_dimension_numbers<[1], [0], [0], [1], [0, 0, 1, 1], [], []>} : vector<32x32xf32>, vector<32x256xf32>, vector<32x256xf32> -> vector<32x256xf32>
    %c0_7 = arith.constant 0 : index
    %c0_8 = arith.constant 0 : index
    %19 = vector.load %arg5[%c0_7, %c0_8] : memref<32x1xf32, #tpu.memory_space<vmem>>, vector<32x1xf32>
    %20 = vector.broadcast %19 : vector<32x1xf32> to vector<32x256xf32>
    %21 = arith.addf %18, %20 : vector<32x256xf32>
    %22 = math.sin %21 : vector<32x256xf32>
    %c0_9 = arith.constant 0 : index
    %c0_10 = arith.constant 0 : index
    %23 = vector.load %arg6[%c0_9, %c0_10] : memref<32x32xf32, #tpu.memory_space<vmem>>, vector<32x32xf32>
    %cst_11 = arith.constant dense<0.000000e+00> : vector<32x256xf32>
    %24 = tpu.matmul %23, %22, %cst_11 {dimension_numbers = #tpu.dot_dimension_numbers<[1], [0], [0], [1], [0, 0, 1, 1], [], []>} : vector<32x32xf32>, vector<32x256xf32>, vector<32x256xf32> -> vector<32x256xf32>
    %c0_12 = arith.constant 0 : index
    %c0_13 = arith.constant 0 : index
    %25 = vector.load %arg7[%c0_12, %c0_13] : memref<32x1xf32, #tpu.memory_space<vmem>>, vector<32x1xf32>
    %26 = vector.broadcast %25 : vector<32x1xf32> to vector<32x256xf32>
    %27 = arith.addf %24, %26 : vector<32x256xf32>
    %28 = math.sin %27 : vector<32x256xf32>
    %c0_14 = arith.constant 0 : index
    %c0_15 = arith.constant 0 : index
    %29 = vector.load %arg8[%c0_14, %c0_15] : memref<3x32xf32, #tpu.memory_space<vmem>>, vector<3x32xf32>
    %cst_16 = arith.constant dense<0.000000e+00> : vector<3x256xf32>
    %30 = tpu.matmul %29, %28, %cst_16 {dimension_numbers = #tpu.dot_dimension_numbers<[1], [0], [0], [1], [0, 0, 1, 1], [], []>} : vector<3x32xf32>, vector<32x256xf32>, vector<3x256xf32> -> vector<3x256xf32>
    %c0_17 = arith.constant 0 : index
    %c0_18 = arith.constant 0 : index
    %31 = vector.load %arg9[%c0_17, %c0_18] : memref<3x1xf32, #tpu.memory_space<vmem>>, vector<3x1xf32>
    %32 = vector.broadcast %31 : vector<3x1xf32> to vector<3x256xf32>
    %33 = arith.addf %30, %32 : vector<3x256xf32>
    %c0_19 = arith.constant 0 : index
    %c0_20 = arith.constant 0 : index
    %34 = vector.load %arg10[%c0_19, %c0_20] : memref<3x256xf32, #tpu.memory_space<vmem>>, vector<3x256xf32>
    tpu.vector_store %arg10[%c0_19, %c0_20], %33 {strides = array<i32>} : memref<3x256xf32, #tpu.memory_space<vmem>>, vector<3x256xf32>,
    return
  }
  func.func @transform_0(%arg0: i32) -> (i32, i32) {
    %c0_i32 = arith.constant 0 : i32
    %c0_i32_0 = arith.constant 0 : i32
    return %c0_i32, %arg0 : i32, i32
  }
  func.func @transform_1(%arg0: i32) -> (i32, i32) {
    %c0_i32 = arith.constant 0 : i32
    %c0_i32_0 = arith.constant 0 : i32
    %c0_i32_1 = arith.constant 0 : i32
    return %c0_i32, %c0_i32_0 : i32, i32
  }
  func.func @transform_2(%arg0: i32) -> (i32, i32) {
    %c0_i32 = arith.constant 0 : i32
    %c0_i32_0 = arith.constant 0 : i32
    %c0_i32_1 = arith.constant 0 : i32
    return %c0_i32, %c0_i32_0 : i32, i32
  }
  func.func @transform_3(%arg0: i32) -> (i32, i32) {
    %c0_i32 = arith.constant 0 : i32
    %c0_i32_0 = arith.constant 0 : i32
    %c0_i32_1 = arith.constant 0 : i32
    return %c0_i32, %c0_i32_0 : i32, i32
  }
  func.func @transform_4(%arg0: i32) -> (i32, i32) {
    %c0_i32 = arith.constant 0 : i32
    %c0_i32_0 = arith.constant 0 : i32
    %c0_i32_1 = arith.constant 0 : i32
    return %c0_i32, %c0_i32_0 : i32, i32
  }
  func.func @transform_5(%arg0: i32) -> (i32, i32) {
    %c0_i32 = arith.constant 0 : i32
    %c0_i32_0 = arith.constant 0 : i32
    %c0_i32_1 = arith.constant 0 : i32
    return %c0_i32, %c0_i32_0 : i32, i32
  }
  func.func @transform_6(%arg0: i32) -> (i32, i32) {
    %c0_i32 = arith.constant 0 : i32
    %c0_i32_0 = arith.constant 0 : i32
    %c0_i32_1 = arith.constant 0 : i32
    return %c0_i32, %c0_i32_0 : i32, i32
  }
  func.func @transform_7(%arg0: i32) -> (i32, i32) {
    %c0_i32 = arith.constant 0 : i32
    %c0_i32_0 = arith.constant 0 : i32
    %c0_i32_1 = arith.constant 0 : i32
    return %c0_i32, %c0_i32_0 : i32, i32
  }
  func.func @transform_8(%arg0: i32) -> (i32, i32) {
    %c0_i32 = arith.constant 0 : i32
    %c0_i32_0 = arith.constant 0 : i32
    %c0_i32_1 = arith.constant 0 : i32
    return %c0_i32, %c0_i32_0 : i32, i32
  }
  func.func @transform_9(%arg0: i32) -> (i32, i32) {
    %c0_i32 = arith.constant 0 : i32
    %c0_i32_0 = arith.constant 0 : i32
    return %c0_i32, %arg0 : i32, i32
  }
}

</mosaic_0001>

<bundles_post_ra>
// kernel: siren_forward.1
= control target key start
LH: loop header
LB: loop body
LE: loop exit
PB: predicated region body
PF: predicated region fallthrough
CT: control target
= control target key end

     0   :  { %s4668_s30 = smov 0   ;;  %s7933_s0 = inlined_call_operand.vmem [shape: f32[2,512], index: 0, kind: input, shape index: {}]   ;;  %s7934_s1 = inlined_call_operand.vmem [shape: f32[32,2], index: 1, kind: input, shape index: {}]   ;;  %s7935_s2 = inlined_call_operand.vmem [shape: f32[32,1], index: 2, kind: input, shape index: {}]   ;;  %s7936_s3 = inlined_call_operand.vmem [shape: f32[32,32], index: 3, kind: input, shape index: {}]   ;;  %s7937_s4 = inlined_call_operand.vmem [shape: f32[32,1], index: 4, kind: input, shape index: {}]   ;;  %s7938_s5 = inlined_call_operand.vmem [shape: f32[32,32], index: 5, kind: input, shape index: {}]   ;;  %s7939_s6 = inlined_call_operand.vmem [shape: f32[32,1], index: 6, kind: input, shape index: {}]   ;;  %s7940_s7 = inlined_call_operand.vmem [shape: f32[3,32], index: 7, kind: input, shape index: {}]   ;;  %s7941_s8 = inlined_call_operand.vmem [shape: f32[3,1], index: 8, kind: input, shape index: {}]   ;;  %s7942_s9 = inlined_call_operand.vmem [shape: f32[3,512], index: 9, kind: output, shape index: {}]  }
   0x1 LB: > { %s4476_s10 = sadd.s32 4294967295, %s4608_s30   ;;  %p4480_p0 = scmp.ge.s32.totalorder %s4608_s30, 1  ;;  %s4608_s30 = sphi %s4668_s30, %s19_s30  }
   0x2   : > { %p288_p1 = scmp.lt.s32.totalorder %s4608_s30, 3 }
   0x4   : > { %p289_p2 = pnand %p4480_p0, %p288_p1 }
   0x6   : > { %292 = sbr.rel (%p289_p2) target bundleno = 1550 (0x60e), region = 56 }
   0xb   : > { %v340_v0 = vld [vmem:[%s7934_s1 + $0x18] sm:$0xff]  ;;  %v339_v1 = vld [vmem:[%s7934_s1 + $0x10] sm:$0xff]  ;;  %v338_v2 = vld [vmem:[%s7934_s1 + $0x8] sm:$0xff]  ;;  %v7955_v3 = vmov 0   ;;  %v4611_v4 = vmov 1   ;;  %s4481_s26 = sshll.u32 %s4476_s10, 1 }
   0xc   : > { %4597 = vset.pattern.permute.xlu2 %v7955_v3  ;;  %4595 = vset.pattern.permute.xlu1 %v7955_v3  ;;  %v337_v5 = vld [vmem:[%s7934_s1] sm:$0xff]  ;;  %v417_v6 = vld [vmem:[%s7935_s2 + $0x18] sm:$0xff]  ;;  %v416_v7 = vld [vmem:[%s7935_s2 + $0x10] sm:$0xff]  ;;  %p325_p3 = scmp.lt.s32.totalorder %s4481_s26, 3 }
   0xd   : > { %4593 = vset.pattern.permute.xlu0 %v7955_v3  ;;  %353 = vperm.xlu1 %4595, %v339_v1   ;;  %v414_v8 = vld [vmem:[%s7935_s2] sm:$0xff]  ;;  %v415_v9 = vld [vmem:[%s7935_s2 + $0x8] sm:$0xff]  ;;  %v1693_v10 = vld [vmem:[%s7937_s4 + $0x18] sm:$0xff] }
   0xe   : > { %358 = vperm.xlu0 %4593, %v340_v0   ;;  %348 = vperm.xlu2 %4597, %v338_v2   ;;  %v3032_v11 = vld [vmem:[%s7939_s6 + $0x18] sm:$0xff]  ;;  %v1692_v12 = vld [vmem:[%s7937_s4 + $0x10] sm:$0xff]  ;;  %v1691_v13 = vld [vmem:[%s7937_s4 + $0x8] sm:$0xff]  ;;  %s8162_s26 = smov (!%p325_p3, %s4481_s26), 3 }
   0xf   : > { %v3029_v14 = vld [vmem:[%s7939_s6] sm:$0xff]  ;;  %v3031_v16 = vld [vmem:[%s7939_s6 + $0x10] sm:$0xff]  ;;  %v3030_v17 = vld [vmem:[%s7939_s6 + $0x8] sm:$0xff]  ;;  %s4482_s27 = sshll.u32 %s8162_s26, 1 }
  0x10   : > { %v1690_v15 = vld [vmem:[%s7937_s4] sm:$0xff]  ;;  %s328_s11 = scalar_lea.vmem %s7933_s0, %s4482_s27 }
  0x11   : > { %v4364_v18 = vld [vmem:[%s7941_s8] sm:$0x7] }
  0x12   : > { %v336_v19 = vld [vmem:[%s328_s11] sm:$0xf]  ;;  %s4484_s11 = sshll.u32 %s8162_s26, 2 }
  0x13   : > { %v362_v21 = vperm.slane %v336_v19, 0  ;;  %v363_v22 = vperm.slane %v336_v19, 2  ;;  %v392_v23 = vperm.slane %v336_v19, 1  ;;  %v393_v24 = vperm.slane %v336_v19, 3  ;;  %s334_s13 = scalar_lea.vmem %s7942_s9, %s4484_s11 }
  0x15   : > { %4596 = vset.pattern.permute.xlu1 %v4611_v4  ;;  %v366_v25 = vperm.slane %v362_v21, 0  ;;  %v367_v26 = vperm.slane %v363_v22, 0  ;;  %v396_v27 = vperm.slane %v392_v23, 1  ;;  %v397_v28 = vperm.slane %v393_v24, 1 }
  0x16   : > { %4594 = vset.pattern.permute.xlu0 %v4611_v4  ;;  %4598 = vset.pattern.permute.xlu2 %v4611_v4 }
  0x17   : > { %389 = vperm.xlu0 %4594, %v340_v0   ;;  %385 = vperm.xlu1 %4596, %v339_v1  }
  0x18   : > { %381 = vperm.xlu2 %4598, %v338_v2  }
  0x1f   : > { %4599 = vset.pattern.permute.xlu1 %v7955_v3  ;;  %377 = vperm.xlu0 %4594, %v337_v5  }
  0x20   : > { %4600 = vset.pattern.permute.xlu2 %v7955_v3  ;;  %435 = vperm.xlu1 %4599, %v417_v6  }
  0x21   : > { %343 = vperm.xlu2 %4600, %v337_v5  }
  0x27   : > { %4601 = vset.pattern.permute.xlu0 %v7955_v3 }
  0x28   : > { %430 = vperm.xlu1 %4599, %v416_v7   ;;  %420 = vperm.xlu0 %4601, %v414_v8  }
  0x29   : > { %425 = vperm.xlu2 %4600, %v415_v9  }
  0x30   : > { %1711 = vperm.xlu1 %4599, %v1693_v10   ;;  %3050 = vperm.xlu0 %4601, %v3032_v11  }
  0x31   : > { %1706 = vperm.xlu2 %4600, %v1692_v12  }
  0x38   : > { %1701 = vperm.xlu1 %4599, %v1691_v13   ;;  %3035 = vperm.xlu0 %4601, %v3029_v14  }
  0x39   : > { %1696 = vperm.xlu2 %4600, %v1690_v15  }
  0x40   : > { %3045 = vperm.xlu1 %4599, %v3031_v16  }
  0x41   : > { %3040 = vperm.xlu2 %4600, %v3030_v17  }
  0x48   : > { %4367 = vperm.xlu1 %4599, %v4364_v18  }
  0x68   : > { %v349_v20 = vpop.permute.xlu2 %348 }
  0x69   : > { %v370_v29 = vmul.f32 %v366_v25, %v349_v20  ;;  %v371_v30 = vmul.f32 %v367_v26, %v349_v20 }
  0x72   : > { %v382_v31 = vpop.permute.xlu2 %381 }
  0x73   : > { %v400_v32 = vmul.f32 %v396_v27, %v382_v31  ;;  %v401_v33 = vmul.f32 %v397_v28, %v382_v31 }
  0x75   : > { %v408_v34 = vadd.f32 %v400_v32, %v370_v29  ;;  %v409_v35 = vadd.f32 %v401_v33, %v371_v30 }
  0x7b   : > { %v344_v36 = vpop.permute.xlu2 %343 }
  0x7c   : > { %v368_v37 = vmul.f32 %v366_v25, %v344_v36  ;;  %v369_v38 = vmul.f32 %v367_v26, %v344_v36 }
  0x7f   : > { %v354_v39 = vpop.permute.xlu1 %353 }
  0x80   : > { %v373_v40 = vmul.f32 %v367_v26, %v354_v39  ;;  %v359_v41 = vpop.permute.xlu0 %358  ;;  %v372_v47 = vmul.f32 %v366_v25, %v354_v39 }
  0x81   : > { %v374_v56 = vmul.f32 %v366_v25, %v359_v41  ;;  %v375_v57 = vmul.f32 %v367_v26, %v359_v41  ;;  %v7951_v41 = vmov 2475754826  }
  0x83   : > { %v426_v42 = vpop.permute.xlu2 %425 }
  0x84   : > { %v4741_v43 = vadd.f32 %v426_v42, %v408_v34  ;;  %v4743_v44 = vadd.f32 %v426_v42, %v409_v35 }
  0x86   : > { %v759_v50 = vand.u32 2139095040, %v4741_v43  ;;  %v914_v51 = vand.u32 2139095040, %v4743_v44 }
  0x88   : > { %v760_v58 = vshrl.u32 %v759_v50, 23  ;;  %v915_v59 = vshrl.u32 %v914_v51, 23 }
  0x89   : > { %v390_v45 = vpop.permute.xlu0 %389  ;;  %v386_v46 = vpop.permute.xlu1 %385 }
  0x8a   : > { %v402_v48 = vmul.f32 %v396_v27, %v386_v46  ;;  %v403_v49 = vmul.f32 %v397_v28, %v386_v46  ;;  %v404_v52 = vmul.f32 %v396_v27, %v390_v45  ;;  %v405_v53 = vmul.f32 %v397_v28, %v390_v45 }
  0x8b   : > { %v4491_v5 = vadd.s32 4294967169, %v760_v58  ;;  %v4494_v6 = vadd.s32 4294967169, %v915_v59  ;;  %v7949_v45 = vmov 2131351028  }
  0x8c   : > { %v410_v54 = vadd.f32 %v402_v48, %v372_v47  ;;  %v411_v55 = vadd.f32 %v403_v49, %v373_v40  ;;  %v412_v61 = vadd.f32 %v404_v52, %v374_v56  ;;  %v413_v62 = vadd.f32 %v405_v53, %v375_v57 }
  0x8d   : > { %v766_v13 = vadd.s32 1, %v4491_v5  ;;  %v921_v14 = vadd.s32 1, %v4494_v6  ;;  %v7947_v49 = vmov 2102212464   ;;  %v7957_v6 = vmov 920167782  }
  0x8f   : > { %vm767_vm0 = vcmp.gt.s32.totalorder %v766_v13, 0  ;;  %vm922_vm1 = vcmp.gt.s32.totalorder %v921_v14, 0 }
  0x90   : > { %v768_v25 = vsel %vm767_vm0, %v766_v13, 0  ;;  %v923_v26 = vsel %vm922_vm1, %v921_v14, 0 }
  0x91   : > { %v378_v60 = vpop.permute.xlu0 %377  ;;  %v4760_v31 = vand.u32 31, %v768_v25  ;;  %v4762_v32 = vand.u32 31, %v923_v26  ;;  %v4768_v35 = vshrl.u32 %v768_v25, 5  ;;  %v4770_v36 = vshrl.u32 %v923_v26, 5 }
  0x92   : > { %v398_v63 = vmul.f32 %v396_v27, %v378_v60  ;;  %v399_v0 = vmul.f32 %v397_v28, %v378_v60  ;;  %v436_v1 = vpop.permute.xlu1 %435 }
  0x93   : > { %v4747_v2 = vadd.f32 %v436_v1, %v412_v61  ;;  %v4749_v4 = vadd.f32 %v436_v1, %v413_v62  ;;  %v4775_v47 = vsub.s32 32, %v4760_v31  ;;  %v4778_v48 = vsub.s32 32, %v4762_v32 }
  0x94   : > { %v406_v7 = vadd.f32 %v398_v63, %v368_v37  ;;  %v407_v8 = vadd.f32 %v399_v0, %v369_v38 }
  0x95   : > { %v1379_v9 = vand.u32 2139095040, %v4747_v2  ;;  %v1534_v10 = vand.u32 2139095040, %v4749_v4  ;;  %v1376_v20 = vand.u32 2147483647, %v4747_v2  ;;  %v1531_v24 = vand.u32 2147483647, %v4749_v4 }
  0x97   : > { %v1380_v11 = vshrl.u32 %v1379_v9, 23  ;;  %v1535_v12 = vshrl.u32 %v1534_v10, 23  ;;  %v1383_v28 = vand.u32 8388607, %v1376_v20  ;;  %v1538_v33 = vand.u32 8388607, %v1531_v24 }
  0x99   : > { %v4503_v15 = vadd.s32 4294967169, %v1380_v11  ;;  %v4506_v16 = vadd.s32 4294967169, %v1535_v12  ;;  %v1384_v38 = vor.u32 8388608, %v1383_v28  ;;  %v1539_v51 = vor.u32 8388608, %v1538_v33 }
  0x9a   : > { %v431_v17 = vpop.permute.xlu1 %430  ;;  %v421_v37 = vpop.permute.xlu0 %420  ;;  %v7944_v12 = vmov 1326507024  }
  0x9b   : > { %v1386_v18 = vadd.s32 1, %v4503_v15  ;;  %v4753_v19 = vadd.f32 %v431_v17, %v410_v54  ;;  %v1541_v23 = vadd.s32 1, %v4506_v16  ;;  %v4766_v34 = vadd.f32 %v431_v17, %v411_v55 }
  0x9c   : > { %v4782_v53 = vadd.f32 %v421_v37, %v406_v7  ;;  %v7953_v54 = vmov 683565275   ;;  %v4788_v59 = vadd.f32 %v421_v37, %v407_v8  ;;  %v4791_v0 = vshll.u32 %v1384_v38, 8 }
  0x9d   : > { %vm1387_vm2 = vcmp.gt.s32.totalorder %v1386_v18, 0  ;;  %v1069_v21 = vand.u32 2139095040, %v4753_v19  ;;  %vm1542_vm3 = vcmp.gt.s32.totalorder %v1541_v23, 0  ;;  %v1224_v52 = vand.u32 2139095040, %v4766_v34 }
  0x9e   : > { %v1388_v22 = vsel %vm1387_vm2, %v1386_v18, 0  ;;  %v1543_v39 = vsel %vm1542_vm3, %v1541_v23, 0  ;;  %v4795_v9 = vshll.u32 %v1539_v51, 8  ;;  %v1426_v38 = vshrl.u32 %v4791_v0, 16 }
  0x9f   : > { %v1390_v27 = vand.u32 31, %v1388_v22  ;;  %v1070_v30 = vshrl.u32 %v1069_v21, 23  ;;  %v1389_v57 = vshrl.u32 %v1388_v22, 5  ;;  %v4786_v58 = vand.u32 31, %v1543_v39 }
  0xa0   : > { %v4797_v10 = vshrl.u32 %v1543_v39, 5  ;;  %v1225_v11 = vshrl.u32 %v1224_v52, 23  ;;  %vm1378_vm3 = vcmp.lt.s32.totalorder %v4747_v2, 0 }
  0xa1   : > { %v1391_v29 = vsub.s32 32, %v1390_v27  ;;  %v4497_v40 = vadd.s32 4294967169, %v1070_v30  ;;  %v1393_v55 = vshll.u32 %v7953_v54, %v1390_v27  ;;  %v1396_v56 = vshll.u32 %v7951_v41, %v1390_v27 }
  0xa2   : > { %v1399_v60 = vshll.u32 %v7949_v45, %v1390_v27  ;;  %v1402_v5 = vshll.u32 %v7947_v49, %v1390_v27  ;;  %v1405_v8 = vshll.u32 %v7957_v6, %v1390_v27  ;;  %v4802_v14 = vsub.s32 32, %v4786_v58 }
  0xa3   : > { %v1394_v42 = vshrl.u32 %v7951_v41, %v1391_v29  ;;  %v1397_v46 = vshrl.u32 %v7949_v45, %v1391_v29  ;;  %v1400_v50 = vshrl.u32 %v7947_v49, %v1391_v29  ;;  %v1076_v61 = vadd.s32 1, %v4497_v40 }
  0xa4   : > { %v1403_v7 = vshrl.u32 %v7957_v6, %v1391_v29  ;;  %v1406_v13 = vshrl.u32 %v7944_v12, %v1391_v29  ;;  %v1392_v15 = vshrl.u32 %v7953_v54, %v1391_v29  ;;  %vm1408_vm4 = vcmp.lt.s32.totalorder %v1389_v57, 1 }
  0xa5   : > { %v1395_v62 = vor.u32 %v1394_v42, %v1393_v55  ;;  %v1398_v63 = vor.u32 %v1397_v46, %v1396_v56  ;;  %v1401_v1 = vor.u32 %v1400_v50, %v1399_v60  ;;  %vm1077_vm5 = vcmp.gt.s32.totalorder %v1076_v61, 0 }
  0xa6   : > { %v1404_v16 = vor.u32 %v1403_v7, %v1402_v5  ;;  %v1407_v17 = vor.u32 %v1406_v13, %v1405_v8  ;;  %vm1411_vm6 = vcmp.lt.s32.totalorder %v1389_v57, 4  ;;  %vm1410_vm7 = vcmp.lt.s32.totalorder %v1389_v57, 3 }
  0xa7   : > { %v1416_v18 = vsel %vm1408_vm4, %v1395_v62, %v1398_v63  ;;  %v1413_v21 = vsel %vm1411_vm6, %v1401_v1, 2102212464  ;;  %v1420_v23 = vsel %vm1408_vm4, %v1398_v63, %v1401_v1  ;;  %vm1409_vm8 = vcmp.lt.s32.totalorder %v1389_v57, 2 }
  0xa8   : > { %v1417_v22 = vsel %vm1411_vm6, %v1404_v16, 920167782  ;;  %v1412_v25 = vsel %vm1408_vm4, %v1392_v15, %v1395_v62  ;;  %v1421_v27 = vsel %vm1411_vm6, %v1407_v17, 1326507024  ;;  %v1414_v28 = vsel %vm1410_vm7, %v1398_v63, %v1413_v21 }
  0xa9   : > { %v1418_v26 = vsel %vm1410_vm7, %v1401_v1, %v1417_v22  ;;  %v1422_v33 = vsel %vm1410_vm7, %v1404_v16, %v1421_v27  ;;  %v1425_v29 = vand.u32 65535, %v4791_v0  ;;  %v4810_v42 = vsel %vm1077_vm5, %v1076_v61, 0 }
  0xaa   : > { %v1419_v30 = vsel %vm1409_vm8, %v1416_v18, %v1418_v26  ;;  %v1423_v37 = vsel %vm1409_vm8, %v1420_v23, %v1422_v33  ;;  %v4812_v46 = vadd.s32 4294967169, %v1225_v11  ;;  %v4815_v52 = vsel %vm1409_vm8, %v1412_v25, %v1414_v28 }
  0xab   : > { %v1449_v39 = vand.u32 65535, %v1419_v30  ;;  %v1450_v40 = vshrl.u32 %v1419_v30, 16  ;;  %v1427_v50 = vand.u32 65535, %v1423_v37  ;;  %v1428_v51 = vshrl.u32 %v1423_v37, 16 }
  0xac   : > { %v1548_v60 = vshll.u32 %v7953_v54, %v4786_v58  ;;  %v1549_v5 = vshrl.u32 %v7951_v41, %v4802_v14  ;;  %v1552_v25 = vshrl.u32 %v7949_v45, %v4802_v14  ;;  %vm1563_vm13 = vcmp.lt.s32.totalorder %v4797_v10, 1 }
  0xad   : > { %v1452_v55 = vmul.u32 %v1450_v40, %v1425_v29  ;;  %v1453_v56 = vmul.u32 %v1449_v39, %v1426_v38  ;;  %v1430_v62 = vmul.u32 %v1428_v51, %v1425_v29  ;;  %v1431_v63 = vmul.u32 %v1427_v50, %v1426_v38 }
  0xae   : > { %v1451_v1 = vmul.u32 %v1449_v39, %v1425_v29  ;;  %v1429_v61 = vmul.u32 %v1427_v50, %v1425_v29  ;;  %v1432_v7 = vmul.u32 %v1428_v51, %v1426_v38  ;;  %v1454_v11 = vmul.u32 %v1450_v40, %v1426_v38 }
  0xaf   : > { %v1455_v8 = vshll.u32 %v1452_v55, 16  ;;  %v1433_v13 = vshll.u32 %v1430_v62, 16  ;;  %v1456_v15 = vshrl.u32 %v1452_v55, 16  ;;  %v1457_v57 = vshll.u32 %v1453_v56, 16 }
  0xb0   : > { %v1458_v16 = vshrl.u32 %v1453_v56, 16  ;;  %v1434_v17 = vshrl.u32 %v1430_v62, 16  ;;  %v1435_v18 = vshll.u32 %v1431_v63, 16  ;;  %v4825_v28 = vor.u32 %v1549_v5, %v1548_v60 }
  0xb1   : > { %vm1459_vm9 = vc.u32 %v1451_v1, %v1455_v8  ;;  %v1461_v21 = vadd.s32 %v1455_v8, %v1451_v1  ;;  %vm1437_vm10 = vc.u32 %v1429_v61, %v1433_v13  ;;  %v1439_v22 = vadd.s32 %v1433_v13, %v1429_v61 }
  0xb2   : > { %v1460_v23 = vsel %vm1459_vm9, 1, %v7955_v3  ;;  %v1438_v26 = vsel %vm1437_vm10, 1, %v7955_v3  ;;  %v1551_v29 = vshll.u32 %v7951_v41, %v4786_v58  ;;  %v1554_v39 = vshll.u32 %v7949_v45, %v4786_v58 }
  0xb3   : > { %v1462_v27 = vadd.s32 %v1460_v23, %v1454_v11  ;;  %vm1463_vm11 = vc.u32 %v1461_v21, %v1457_v57  ;;  %v1440_v30 = vadd.s32 %v1438_v26, %v1432_v7  ;;  %vm1441_vm12 = vc.u32 %v1439_v22, %v1435_v18 }
  0xb4   : > { %v1464_v33 = vsel %vm1463_vm11, 1, %v7955_v3  ;;  %v1442_v37 = vsel %vm1441_vm12, 1, %v7955_v3  ;;  %v1555_v40 = vshrl.u32 %v7947_v49, %v4802_v14  ;;  %v1553_v51 = vor.u32 %v1552_v25, %v1551_v29 }
  0xb5   : > { %v1466_v38 = vadd.s32 %v1464_v33, %v1462_v27  ;;  %v1444_v50 = vadd.s32 %v1442_v37, %v1440_v30  ;;  %v1557_v55 = vshll.u32 %v7947_v49, %v4786_v58  ;;  %v1558_v56 = vshrl.u32 %v7957_v6, %v4802_v14 }
  0xb6   : > { %v1556_v62 = vor.u32 %v1555_v40, %v1554_v39  ;;  %v1560_v1 = vshll.u32 %v7957_v6, %v4786_v58  ;;  %v1561_v5 = vshrl.u32 %v7944_v12, %v4802_v14  ;;  %v1436_v61 = vshrl.u32 %v1431_v63, 16 }
  0xb7   : > { %v1467_v60 = vadd.s32 %v1466_v38, %v1456_v15  ;;  %v1445_v7 = vadd.s32 %v1444_v50, %v1434_v17  ;;  %v4843_v11 = vadd.s32 %v1461_v21, %v1457_v57  ;;  %v1559_v8 = vor.u32 %v1558_v56, %v1557_v55 }
  0xb8   : > { %v1562_v18 = vor.u32 %v1561_v5, %v1560_v1  ;;  %vm1566_vm14 = vcmp.lt.s32.totalorder %v4797_v10, 4  ;;  %vm1565_vm15 = vcmp.lt.s32.totalorder %v4797_v10, 3  ;;  %v1571_v58 = vsel %vm1563_vm13, %v4825_v28, %v1553_v51 }
  0xb9   : > { %v1468_v13 = vadd.s32 %v1467_v60, %v1458_v16  ;;  %v4847_v22 = vadd.s32 %v1445_v7, %v1436_v61  ;;  %v1572_v63 = vsel %vm1566_vm14, %v1559_v8, 920167782  ;;  %v449_v15 = vand.u32 2139095040, %v4782_v53 }
  0xba   : > { %vm1564_vm0 = vcmp.lt.s32.totalorder %v4797_v10, 2  ;;  %v1573_v16 = vsel %vm1565_vm15, %v1556_v62, %v1572_v63  ;;  %v1469_v17 = vmul.u32 %v4791_v0, %v4815_v52  ;;  %v1575_v23 = vsel %vm1563_vm13, %v1553_v51, %v1556_v62 }
  0xbb   : > { %v1472_v57 = vadd.s32 1, %v1468_v13  ;;  %vm1471_vm1 = vc.u32 %v4847_v22, %v4843_v11  ;;  %v1574_v21 = vsel %vm1564_vm0, %v1571_v58, %v1573_v16  ;;  %v4868_v25 = vand.u32 31, %v4810_v42 }
  0xbc   : > { %v1231_v26 = vadd.s32 1, %v4812_v46  ;;  %v1576_v30 = vsel %vm1566_vm14, %v1562_v18, 1326507024  ;;  %v1604_v52 = vand.u32 65535, %v1574_v21  ;;  %v1605_v29 = vshrl.u32 %v1574_v21, 16 }
  0xbd   : > { %v1473_v27 = vsel %vm1471_vm1, %v1472_v57, %v1468_v13  ;;  %v1577_v0 = vsel %vm1565_vm15, %v1559_v8, %v1576_v30  ;;  %v604_v37 = vand.u32 2139095040, %v4788_v59  ;;  %v1580_v39 = vand.u32 65535, %v4795_v9 }
  0xbe   : > { %v1474_v33 = vadd.s32 %v1473_v27, %v1469_v17  ;;  %v1578_v38 = vsel %vm1564_vm0, %v1575_v23, %v1577_v0  ;;  %v1581_v40 = vshrl.u32 %v4795_v9, 16  ;;  %v4880_v46 = vshrl.u32 %v449_v15, 23 }
  0xbf   : > { %v1582_v55 = vand.u32 65535, %v1578_v38  ;;  %v1583_v56 = vshrl.u32 %v1578_v38, 16  ;;  %v1547_v60 = vshrl.u32 %v7953_v54, %v4802_v14  ;;  %v1568_v1 = vsel %vm1566_vm14, %v1556_v62, 2102212464 }
  0xc0   : > { %v1475_v50 = vadd.s32 536870912, %v1474_v33  ;;  %v1607_v5 = vmul.u32 %v1605_v29, %v1580_v39  ;;  %v1608_v61 = vmul.u32 %v1604_v52, %v1581_v40  ;;  %v4887_v7 = vsub.s32 32, %v4868_v25 }
  0xc1   : > { %vm1232_vm2 = vcmp.gt.s32.totalorder %v1231_v26, 0  ;;  %v1585_v13 = vmul.u32 %v1583_v56, %v1580_v39  ;;  %v1567_v18 = vsel %vm1563_vm13, %v1547_v60, %v4825_v28  ;;  %v1586_v58 = vmul.u32 %v1582_v55, %v1581_v40 }
  0xc2   : > { %v1476_v8 = vshrl.u32 %v1475_v50, 30  ;;  %v1606_v63 = vmul.u32 %v1604_v52, %v1580_v39  ;;  %v1610_v14 = vshll.u32 %v1607_v5, 16  ;;  %v1569_v62 = vsel %vm1565_vm15, %v1553_v51, %v1568_v1 }
  0xc3   : > { %v1584_v57 = vmul.u32 %v1582_v55, %v1580_v39  ;;  %v1588_v16 = vshll.u32 %v1585_v13, 16  ;;  %vm4897_vm4 = vcmp.le.f32.partialorder %v1376_v20, 0.7853982  ;;  %v1587_v21 = vmul.u32 %v1583_v56, %v1581_v40 }
  0xc4   : > { %v1477_v15 = vshll.u32 %v1476_v8, 30  ;;  %v1609_v23 = vmul.u32 %v1605_v29, %v1581_v40  ;;  %v1612_v27 = vshll.u32 %v1608_v61, 16  ;;  %vm1614_vm5 = vc.u32 %v1606_v63, %v1610_v14 }
  0xc5   : > { %v1500_v30 = vsub.s32 4, %v1476_v8  ;;  %vm1592_vm6 = vc.u32 %v1584_v57, %v1588_v16  ;;  %v1594_v0 = vadd.s32 %v1588_v16, %v1584_v57  ;;  %v1590_v52 = vshll.u32 %v1586_v58, 16 }
  0xc6   : > { %v1478_v28 = vsub.s32 %v1474_v33, %v1477_v15  ;;  %v1593_v38 = vsel %vm1592_vm6, 1, %v7955_v3  ;;  %v1615_v51 = vsel %vm1614_vm5, 1, %v7955_v3  ;;  %v1616_v39 = vadd.s32 %v1610_v14, %v1606_v63 }
  0xc7   : > { %v1570_v20 = vsel %vm1564_vm0, %v1567_v18, %v1569_v62  ;;  %v1595_v55 = vadd.s32 %v1593_v38, %v1587_v21  ;;  %vm1596_vm8 = vc.u32 %v1594_v0, %v1590_v52  ;;  %v1611_v29 = vshrl.u32 %v1607_v5, 16 }
  0xc8   : > { %vm1479_vm7 = vcmp.lt.s32.totalorder %v1478_v28, 0  ;;  %v1480_v50 = vsub.s32 0, %v1478_v28  ;;  %v1617_v40 = vadd.s32 %v1615_v51, %v1609_v23  ;;  %vm1618_vm9 = vc.u32 %v1616_v39, %v1612_v27 }
  0xc9   : > { %v1589_v56 = vshrl.u32 %v1585_v13, 16  ;;  %v1597_v60 = vsel %vm1596_vm8, 1, %v7955_v3  ;;  %v1619_v1 = vsel %vm1618_vm9, 1, %v7955_v3  ;;  %v1501_v63 = vsel %vm1378_vm3, %v1500_v30, %v1476_v8 }
  0xca   : > { %v1481_v33 = vsel %vm1479_vm7, %v1480_v50, %v1478_v28  ;;  %v1599_v14 = vadd.s32 %v1597_v60, %v1595_v55  ;;  %v1621_v57 = vadd.s32 %v1619_v1, %v1617_v40  ;;  %v4910_v10 = vshrl.u32 %v4810_v42, 5 }
  0xcb   : > { %v1482_v15 = vclz %v1481_v33  ;;  %v4913_v18 = vsel %vm1232_vm2, %v1231_v26, 0  ;;  %v1591_v5 = vshrl.u32 %v1586_v58, 16  ;;  %v7943_v62 = vand.u32 2147483647, %v4753_v19 }
  0xcc   : > { %v1600_v16 = vadd.s32 %v1599_v14, %v1589_v56  ;;  %v1613_v21 = vshrl.u32 %v1608_v61, 16  ;;  %v1622_v23 = vadd.s32 %v1621_v57, %v1611_v29  ;;  %v1470_v0 = vadd.s32 %v4843_v11, %v4847_v22 }
  0xcd   : > { %v4504_v13 = vadd.s32 4294967294, %v1482_v15  ;;  %v1503_v8 = vsel %vm4897_vm4, 0, %v1501_v63  ;;  %v4920_v30 = vadd.s32 %v1616_v39, %v1612_v27  ;;  %v1624_v42 = vmul.u32 %v4795_v9, %v1570_v20 }
  0xce   : > { %v4923_v26 = vadd.s32 %v1600_v16, %v1591_v5  ;;  %v1623_v58 = vadd.s32 %v1622_v23, %v1613_v21  ;;  %v1087_v52 = vshrl.u32 %v7949_v45, %v4887_v7  ;;  %v1073_v61 = vand.u32 8388607, %v7943_v62 }
  0xcf   : > { %vm4505_vm10 = vcmp.lt.s32.totalorder %v4504_v13, 0  ;;  %v1086_v11 = vshll.u32 %v7951_v41, %v4868_v25  ;;  %v1090_v22 = vshrl.u32 %v7947_v49, %v4887_v7  ;;  %v1084_v9 = vshrl.u32 %v7951_v41, %v4887_v7 }
  0xd0   : > { %v1485_v38 = vsel %vm4505_vm10, 0, %v4504_v13  ;;  %v1089_v39 = vshll.u32 %v7949_v45, %v4868_v25  ;;  %vm1626_vm11 = vc.u32 %v4923_v26, %v4920_v30  ;;  %v1627_v20 = vadd.s32 1, %v1623_v58 }
  0xd1   : > { %v1486_v27 = vsub.s32 32, %v1485_v38  ;;  %v1490_v51 = vsub.s32 4294967266, %v1485_v38  ;;  %v1487_v50 = vshll.u32 %v1478_v28, %v1485_v38  ;;  %v4939_v55 = vor.u32 %v1087_v52, %v1086_v11 }
  0xd2   : > { %v1092_v33 = vshll.u32 %v7947_v49, %v4868_v25  ;;  %v1093_v56 = vshrl.u32 %v7957_v6, %v4887_v7  ;;  %v1628_v60 = vsel %vm1626_vm11, %v1627_v20, %v1623_v58  ;;  %v1091_v1 = vor.u32 %v1090_v22, %v1089_v39 }
  0xd3   : > { %v1488_v29 = vshrl.u32 %v1470_v0, %v1486_v27  ;;  %v1491_v40 = vadd.s32 127, %v1490_v51  ;;  %v1095_v15 = vshll.u32 %v7957_v6, %v4868_v25  ;;  %v1096_v28 = vshrl.u32 %v7944_v12, %v4887_v7 }
  0xd4   : > { %v1629_v57 = vadd.s32 %v1628_v60, %v1624_v42  ;;  %v1094_v5 = vor.u32 %v1093_v56, %v1092_v33  ;;  %v4951_v13 = vshrl.u32 %v604_v37, 23  ;;  %v1074_v16 = vor.u32 8388608, %v1073_v61 }
  0xd5   : > { %v1489_v63 = vor.u32 %v1488_v29, %v1487_v50  ;;  %v1492_v14 = vshll.u32 %v1491_v40, 23  ;;  %v1083_v21 = vshll.u32 %v7953_v54, %v4868_v25  ;;  %v1097_v23 = vor.u32 %v1096_v28, %v1095_v15 }
  0xd6   : > { %v4956_v0 = vand.u32 31, %v4913_v18  ;;  %v1520_v52 = vadd.s32 3, %v1503_v8  ;;  %v1630_v38 = vadd.s32 536870912, %v1629_v57  ;;  %vm1098_vm12 = vcmp.lt.s32.totalorder %v4910_v10, 1 }
  0xd7   : > { %v1493_v58 = vor.u32 4788187, %v1492_v14  ;;  %v1496_v11 = vcvt.s32.f32 %v1489_v63  ;;  %v1085_v22 = vor.u32 %v1084_v9, %v1083_v21  ;;  %vm1101_vm13 = vcmp.lt.s32.totalorder %v4910_v10, 4 }
  0xd8   : > { %v4960_v37 = vshrl.u32 %v1630_v38, 30  ;;  %v1107_v61 = vsel %vm1101_vm13, %v1094_v5, 920167782  ;;  %v1110_v25 = vsel %vm1098_vm12, %v4939_v55, %v1091_v1  ;;  %v4968_v27 = vadd.s32 4294967169, %v4880_v46 }
  0xd9   : > { %v1494_v42 = vand.u32 2147483647, %v1493_v58  ;;  %vm1100_vm14 = vcmp.lt.s32.totalorder %v4910_v10, 3  ;;  %v1111_v8 = vsel %vm1101_vm13, %v1097_v23, 1326507024  ;;  %v4973_v51 = vshll.u32 %v1074_v16, 8 }
  0xda   : > { %v1632_v39 = vshll.u32 %v4960_v37, 30  ;;  %vm1099_vm15 = vcmp.lt.s32.totalorder %v4910_v10, 2  ;;  %v1112_v50 = vsel %vm1100_vm14, %v1094_v5, %v1111_v8  ;;  %v4980_v20 = vsub.s32 32, %v4956_v0 }
  0xdb   : > { %v1497_v9 = vmul.f32 %v1496_v11, %v1494_v42  ;;  %v1106_v46 = vsel %vm1098_vm12, %v1085_v22, %v4939_v55  ;;  %v1108_v29 = vsel %vm1100_vm14, %v1091_v1, %v1107_v61  ;;  %v1113_v40 = vsel %vm1099_vm15, %v1110_v25, %v1112_v50 }
  0xdc   : > { %v4989_v56 = vand.u32 3, %v1520_v52  ;;  %v4991_v60 = vsub.s32 %v1629_v57, %v1632_v39  ;;  %v1117_v15 = vand.u32 65535, %v1113_v40  ;;  %v1082_v28 = vshrl.u32 %v7953_v54, %v4887_v7 }
  0xdd   : > { %v1498_v33 = vxor.u32 2147483648, %v1497_v9  ;;  %v1115_v63 = vand.u32 65535, %v4973_v51  ;;  %v1116_v14 = vshrl.u32 %v4973_v51, 16  ;;  %v1118_v5 = vshrl.u32 %v1113_v40, 16 }
  0xde   : > { %vm1634_vm0 = vcmp.lt.s32.totalorder %v4991_v60, 0  ;;  %v1635_v21 = vsub.s32 0, %v4991_v60  ;;  %v1109_v57 = vsel %vm1099_vm15, %v1106_v46, %v1108_v29  ;;  %v1103_v7 = vsel %vm1101_vm13, %v1091_v1, 2102212464 }
  0xdf   : > { %v1499_v16 = vsel %vm1378_vm3, %v1498_v33, %v1497_v9  ;;  %v1120_v58 = vmul.u32 %v1118_v5, %v1115_v63  ;;  %v5010_v52 = vmul.u32 %v1117_v15, %v1116_v14  ;;  %v1625_v11 = vadd.s32 %v4920_v30, %v4923_v26 }
  0xe0   : > { %v5006_v23 = vsel %vm4897_vm4, %v4747_v2, %v1499_v16  ;;  %v1636_v42 = vsel %vm1634_vm0, %v1635_v21, %v4991_v60  ;;  %v1102_v61 = vsel %vm1098_vm12, %v1082_v28, %v1085_v22  ;;  %vm1533_vm1 = vcmp.lt.s32.totalorder %v4749_v4, 0 }
  0xe1   : > { %v1504_v38 = vmul.f32 %v5006_v23, %v5006_v23  ;;  %v1637_v17 = vclz %v1636_v42  ;;  %v1119_v25 = vmul.u32 %v1117_v15, %v1115_v63  ;;  %v1123_v8 = vshll.u32 %v1120_v58, 16 }
  0xe2   : > { %v1140_v1 = vshrl.u32 %v1109_v57, 16  ;;  %v1104_v50 = vsel %vm1100_vm14, %v4939_v55, %v1103_v7  ;;  %v1139_v46 = vand.u32 65535, %v1109_v57  ;;  %v1122_v30 = vmul.u32 %v1118_v5, %v1116_v14 }
  0xe3   : > { %v1505_v9 = vmul.f32 -0.001358992, %v1504_v38  ;;  %v1512_v39 = vmul.f32 -0.00019511016, %v1504_v38  ;;  %v4507_v29 = vadd.s32 4294967294, %v1637_v17  ;;  %v1125_v26 = vshll.u32 %v5010_v52, 16 }
  0xe4   : > { %vm1127_vm2 = vc.u32 %v1119_v25, %v1123_v8  ;;  %v1129_v28 = vadd.s32 %v1123_v8, %v1119_v25  ;;  %v1655_v15 = vsub.s32 4, %v4960_v37  ;;  %v1142_v21 = vmul.u32 %v1140_v1, %v1115_v63 }
  0xe5   : > { %v1506_v40 = vadd.f32 0.041655596, %v1505_v9  ;;  %v1513_v22 = vadd.f32 0.008332121, %v1512_v39  ;;  %v1128_v33 = vsel %vm1127_vm2, 1, %v7955_v3  ;;  %vm4508_vm3 = vcmp.lt.s32.totalorder %v4507_v29, 0 }
  0xe6   : > { %v1130_v16 = vadd.s32 %v1128_v33, %v1122_v30  ;;  %v1640_v12 = vsel %vm4508_vm3, 0, %v4507_v29  ;;  %vm1131_vm4 = vc.u32 %v1129_v28, %v1125_v26  ;;  %vm5028_vm5 = vcmp.le.f32.partialorder %v1531_v24, 0.7853982 }
  0xe7   : > { %v1507_v42 = vmul.f32 %v1506_v40, %v1504_v38  ;;  %v1514_v62 = vmul.f32 %v1513_v22, %v1504_v38  ;;  %v1641_v5 = vsub.s32 32, %v1640_v12  ;;  %v1645_v57 = vsub.s32 4294967266, %v1640_v12 }
  0xe8   : > { %v1132_v7 = vsel %vm1131_vm4, 1, %v7955_v3  ;;  %v1141_v17 = vmul.u32 %v1139_v46, %v1115_v63  ;;  %v1143_v39 = vmul.u32 %v1139_v46, %v1116_v14  ;;  %vm1523_vm6 = vcmp.eq.s32.totalorder %v4989_v56, 0 }
  0xe9   : > { %v1508_v25 = vadd.f32 -0.4999988, %v1507_v42  ;;  %v1515_v8 = vadd.f32 -0.16666654, %v1514_v62  ;;  %v1134_v9 = vadd.s32 %v1132_v7, %v1130_v16  ;;  %v1642_v29 = vshll.u32 %v4991_v60, %v1640_v12 }
  0xea   : > { %v1643_v30 = vshrl.u32 %v1625_v11, %v1641_v5  ;;  %v1646_v26 = vadd.s32 127, %v1645_v57  ;;  %v1145_v40 = vshll.u32 %v1142_v21, 16  ;;  %v1656_v33 = vsel %vm1533_vm1, %v1655_v15, %v4960_v37 }
  0xeb   : > { %v1509_v24 = vmul.f32 %v1508_v25, %v1504_v38  ;;  %v1516_v22 = vmul.f32 %v1515_v8, %v1504_v38  ;;  %v1124_v28 = vshrl.u32 %v1120_v58, 16  ;;  %vm1519_vm7 = vweird.f32 %v4747_v2 }
  0xec   : > { %v1644_v63 = vor.u32 %v1643_v30, %v1642_v29  ;;  %v1647_v62 = vshll.u32 %v1646_v26, 23  ;;  %v1144_v16 = vmul.u32 %v1140_v1, %v1116_v14  ;;  %vm1149_vm8 = vc.u32 %v1141_v17, %v1145_v40 }
  0xed   : > { %v1510_v46 = vadd.f32 1.0, %v1509_v24  ;;  %v1517_v42 = vadd.f32 1.0, %v1516_v22  ;;  %v1135_v7 = vadd.s32 %v1134_v9, %v1124_v28  ;;  %v1150_v12 = vsel %vm1149_vm8, 1, %v7955_v3 }
  0xee   : > { %v1648_v60 = vor.u32 4788187, %v1647_v62  ;;  %v1147_v11 = vshll.u32 %v1143_v39, 16  ;;  %v1151_v5 = vadd.s32 %v1145_v40, %v1141_v17  ;;  %v1152_v38 = vadd.s32 %v1150_v12, %v1144_v16 }
  0xef   : > { %v1518_v57 = vmul.f32 %v1517_v42, %v5006_v23  ;;  %vm1526_vm9 = vcmp.eq.s32.totalorder %v4989_v56, 2  ;;  %v1527_v37 = vxor.u32 2147483648, %v1510_v46  ;;  %v1105_v58 = vsel %vm1099_vm15, %v1102_v61, %v1104_v50 }
  0xf0   : > { %v1649_v15 = vand.u32 2147483647, %v1648_v60  ;;  %v1651_v14 = vcvt.s32.f32 %v1644_v63  ;;  %v1126_v1 = vshrl.u32 %v5010_v52, 16  ;;  %vm1153_vm10 = vc.u32 %v1151_v5, %v1147_v11 }
  0xf1   : > { %v1524_v25 = vxor.u32 2147483648, %v1518_v57  ;;  %v1658_v8 = vsel %vm5028_vm5, 0, %v1656_v33  ;;  %v1146_v9 = vshrl.u32 %v1142_v21, 16  ;;  %v1154_v17 = vsel %vm1153_vm10, 1, %v7955_v3 }
  0xf2   : > { %v1652_v29 = vmul.f32 %v1651_v14, %v1649_v15  ;;  %v5048_v23 = vadd.s32 %v1135_v7, %v1126_v1  ;;  %v1156_v30 = vadd.s32 %v1154_v17, %v1152_v38  ;;  %v1221_v26 = vand.u32 2147483647, %v4766_v34 }
  0xf3   : > { %vm1522_vm11 = vcmp.lt.s32.totalorder %v4989_v56, 2  ;;  %v1525_v10 = vsel %vm1523_vm6, %v1510_v46, %v1524_v25  ;;  %v1528_v52 = vsel %vm1526_vm9, %v1527_v37, %v1518_v57  ;;  %v1148_v61 = vshrl.u32 %v1143_v39, 16 }
  0xf4   : > { %v1529_v50 = vsel %vm1522_vm11, %v1525_v10, %v1528_v52  ;;  %v1653_v40 = vxor.u32 2147483648, %v1652_v29  ;;  %v5056_v21 = vadd.s32 %v1151_v5, %v1147_v11  ;;  %v1157_v24 = vadd.s32 %v1156_v30, %v1146_v9 }
  0xf5   : > { %v5059_v22 = vshrl.u32 %v4913_v18, 5  ;;  %v1530_v33 = vsel %vm1519_vm7, nan, %v1529_v50  ;;  %v1675_v28 = vadd.s32 3, %v1658_v8  ;;  %v1159_v63 = vmul.u32 %v4973_v51, %v1105_v58 }
  0xf6   : > { %1739 = vmatpush.msra.mxu0 %v1530_v33  ;;  %v1654_v56 = vsel %vm1533_vm1, %v1653_v40, %v1652_v29  ;;  %v1158_v62 = vadd.s32 %v1157_v24, %v1148_v61  ;;  %vm1161_vm12 = vc.u32 %v5048_v23, %v5056_v21  ;;  %v1228_v39 = vand.u32 8388607, %v1221_v26 }
  0xf7   : > { %v1657_v18 = vsel %vm5028_vm5, %v4749_v4, %v1654_v56  ;;  %v1238_v2 = vshll.u32 %v7953_v54, %v4956_v0  ;;  %v1242_v51 = vshrl.u32 %v7949_v45, %v4980_v20  ;;  %v1245_v16 = vshrl.u32 %v7947_v49, %v4980_v20 }
  0xf8   : > { %v1659_v46 = vmul.f32 %v1657_v18, %v1657_v18  ;;  %v1162_v42 = vadd.s32 1, %v1158_v62  ;;  %v1239_v7 = vshrl.u32 %v7951_v41, %v4980_v20  ;;  %v1248_v12 = vshrl.u32 %v7957_v6, %v4980_v20 }
  0xf9   : > { %v1241_v55 = vshll.u32 %v7951_v41, %v4956_v0  ;;  %v1244_v60 = vshll.u32 %v7949_v45, %v4956_v0  ;;  %v1247_v11 = vshll.u32 %v7947_v49, %v4956_v0  ;;  %v8024_v5 = vmov 1326507024  }
  0xfa   : > { %v1251_v38 = vshrl.u32 %v8024_v5, %v4980_v20  ;;  %v1660_v57 = vmul.f32 -0.001358992, %v1659_v46  ;;  %v1667_v37 = vmul.f32 -0.00019511016, %v1659_v46  ;;  %v1163_v58 = vsel %vm1161_vm12, %v1162_v42, %v1158_v62 }
  0xfb   : > { %v1250_v15 = vshll.u32 %v7957_v6, %v4956_v0  ;;  %v1164_v14 = vadd.s32 %v1163_v58, %v1159_v63  ;;  %v5096_v1 = vor.u32 %v1242_v51, %v1241_v55  ;;  %v1246_v25 = vor.u32 %v1245_v16, %v1244_v60 }
  0xfc   : > { %v1249_v8 = vor.u32 %v1248_v12, %v1247_v11  ;;  %v5099_v9 = vadd.s32 4294967169, %v4951_v13  ;;  %v1661_v17 = vadd.f32 0.041655596, %v1660_v57  ;;  %v1668_v29 = vadd.f32 0.008332121, %v1667_v37 }
  0xfd   : > { %v1252_v30 = vor.u32 %v1251_v38, %v1250_v15  ;;  %v1676_v10 = vand.u32 3, %v1675_v28  ;;  %v1165_v52 = vadd.s32 536870912, %v1164_v14  ;;  %v1229_v61 = vor.u32 8388608, %v1228_v39 }
  0xfe   : > { %v1240_v50 = vor.u32 %v1239_v7, %v1238_v2  ;;  %v1662_v40 = vmul.f32 %v1661_v17, %v1659_v46  ;;  %v1669_v24 = vmul.f32 %v1668_v29, %v1659_v46  ;;  %vm1253_vm13 = vcmp.lt.s32.totalorder %v5059_v22, 1 }
  0xff   : > { %vm1256_vm14 = vcmp.lt.s32.totalorder %v5059_v22, 4  ;;  %v5103_v0 = vshrl.u32 %v1165_v52, 30  ;;  %vm1255_vm15 = vcmp.lt.s32.totalorder %v5059_v22, 3  ;;  %v1265_v33 = vsel %vm1253_vm13, %v5096_v1, %v1246_v25 }
 0x100   : > { %v1262_v13 = vsel %vm1256_vm14, %v1249_v8, 920167782  ;;  %v1663_v28 = vadd.f32 -0.4999988, %v1662_v40  ;;  %v1670_v63 = vadd.f32 -0.16666654, %v1669_v24  ;;  %vm1674_vm3 = vweird.f32 %v4749_v4 }
 0x101   : > { %v1266_v56 = vsel %vm1256_vm14, %v1252_v30, 1326507024  ;;  %v1167_v62 = vshll.u32 %v5103_v0, 30  ;;  %vm1254_vm0 = vcmp.lt.s32.totalorder %v5059_v22, 2  ;;  %v5117_v2 = vshll.u32 %v1229_v61, 8 }
 0x102   : > { %v1267_v39 = vsel %vm1255_vm15, %v1249_v8, %v1266_v56  ;;  %v1664_v51 = vmul.f32 %v1663_v28, %v1659_v46  ;;  %v1671_v16 = vmul.f32 %v1670_v63, %v1659_v46  ;;  %vm1677_vm1 = vcmp.lt.s32.totalorder %v1676_v10, 2 }
 0x103   : > { %vm1678_vm2 = vcmp.eq.s32.totalorder %v1676_v10, 0  ;;  %v1268_v42 = vsel %vm1254_vm0, %v1265_v33, %v1267_v39  ;;  %v1168_v7 = vsub.s32 %v1164_v14, %v1167_v62  ;;  %v1237_v12 = vshrl.u32 %v7953_v54, %v4980_v20 }
 0x104   : > { %v1261_v55 = vsel %vm1253_vm13, %v1240_v50, %v5096_v1  ;;  %v1263_v60 = vsel %vm1255_vm15, %v1246_v25, %v1262_v13  ;;  %v1665_v11 = vadd.f32 1.0, %v1664_v51  ;;  %v1672_v46 = vadd.f32 1.0, %v1671_v16 }
 0x105   : > { %v1271_v38 = vshrl.u32 %v5117_v2, 16  ;;  %v1272_v57 = vand.u32 65535, %v1268_v42  ;;  %vm1169_vm4 = vcmp.lt.s32.totalorder %v1168_v7, 0  ;;  %v1170_v37 = vsub.s32 0, %v1168_v7 }
 0x106   : > { %v1270_v58 = vand.u32 65535, %v5117_v2  ;;  %v1273_v15 = vshrl.u32 %v1268_v42, 16  ;;  %v1673_v14 = vmul.f32 %v1672_v46, %v1657_v18  ;;  %v1682_v8 = vxor.u32 2147483648, %v1665_v11 }
 0x107   : > { %v1264_v20 = vsel %vm1254_vm0, %v1261_v55, %v1263_v60  ;;  %v5133_v17 = vmul.u32 %v1272_v57, %v1271_v38  ;;  %vm1681_vm5 = vcmp.eq.s32.totalorder %v1676_v10, 2  ;;  %v1160_v29 = vadd.s32 %v5056_v21, %v5048_v23 }
 0x108   : > { %v1171_v30 = vsel %vm1169_vm4, %v1170_v37, %v1168_v7  ;;  %v1275_v52 = vmul.u32 %v1273_v15, %v1270_v58  ;;  %v1679_v61 = vxor.u32 2147483648, %v1673_v14  ;;  %v1257_v24 = vsel %vm1253_vm13, %v1237_v12, %v1240_v50 }
 0x109   : > { %v1172_v40 = vclz %v1171_v30  ;;  %v1258_v18 = vsel %vm1256_vm14, %v1246_v25, 2102212464  ;;  %v1274_v13 = vmul.u32 %v1272_v57, %v1270_v58  ;;  %v1277_v33 = vmul.u32 %v1273_v15, %v1271_v38 }
 0x10a   : > { %v1278_v28 = vshll.u32 %v1275_v52, 16  ;;  %v1294_v63 = vand.u32 65535, %v1264_v20  ;;  %v1680_v56 = vsel %vm1678_vm2, %v1665_v11, %v1679_v61  ;;  %v1683_v62 = vsel %vm1681_vm5, %v1682_v8, %v1673_v14 }
 0x10b   : > { %v4498_v39 = vadd.s32 4294967294, %v1172_v40  ;;  %v1280_v23 = vshll.u32 %v5133_v17, 16  ;;  %v1684_v21 = vsel %vm1677_vm1, %v1680_v56, %v1683_v62  ;;  %v1295_v16 = vshrl.u32 %v1264_v20, 16 }
 0x10c   : > { %vm1282_vm6 = vc.u32 %v1274_v13, %v1278_v28  ;;  %v1284_v51 = vadd.s32 %v1278_v28, %v1274_v13  ;;  %v1685_v50 = vsel %vm1674_vm3, nan, %v1684_v21  ;;  %v1259_v25 = vsel %vm1255_vm15, %v5096_v1, %v1258_v18 }
 0x10d   : > { %vm4499_vm7 = vcmp.lt.s32.totalorder %v4498_v39, 0  ;;  %v1283_v42 = vsel %vm1282_vm6, 1, %v7955_v3  ;;  %1768 = vmatpush.msra.mxu1 %v1685_v50  ;;  %v1297_v60 = vmul.u32 %v1295_v16, %v1270_v58  ;;  %v1279_v46 = vshrl.u32 %v1275_v52, 16 }
 0x10e   : > { %v1175_v12 = vsel %vm4499_vm7, 0, %v4498_v39  ;;  %v1285_v55 = vadd.s32 %v1283_v42, %v1277_v33  ;;  %vm1286_vm8 = vc.u32 %v1284_v51, %v1280_v23  ;;  %v1296_v4 = vmul.u32 %v1294_v63, %v1270_v58 }
 0x10f   : > { %v1176_v10 = vsub.s32 32, %v1175_v12  ;;  %v1180_v11 = vsub.s32 4294967266, %v1175_v12  ;;  %v1287_v57 = vsel %vm1286_vm8, 1, %v7955_v3  ;;  %v1298_v15 = vmul.u32 %v1294_v63, %v1271_v38 }
 0x110   : > { %v1289_v37 = vadd.s32 %v1287_v57, %v1285_v55  ;;  %v1300_v14 = vshll.u32 %v1297_v60, 16  ;;  %v1177_v8 = vshll.u32 %v1168_v7, %v1175_v12  ;;  %v1190_v1 = vsub.s32 4, %v5103_v0 }
 0x111   : > { %v1178_v20 = vshrl.u32 %v1160_v29, %v1176_v10  ;;  %v1181_v30 = vadd.s32 127, %v1180_v11  ;;  %v1299_v40 = vmul.u32 %v1295_v16, %v1271_v38  ;;  %v1302_v18 = vshll.u32 %v1298_v15, 16 }
 0x112   : > { %v1290_v61 = vadd.s32 %v1289_v37, %v1279_v46  ;;  %vm1304_vm9 = vc.u32 %v1296_v4, %v1300_v14  ;;  %v1306_v52 = vadd.s32 %v1300_v14, %v1296_v4  ;;  %v8025_v56 = vand.u32 2147483647, %v4753_v19 }
 0x113   : > { %v1179_v13 = vor.u32 %v1178_v20, %v1177_v8  ;;  %v1182_v33 = vshll.u32 %v1181_v30, 23  ;;  %v1305_v28 = vsel %vm1304_vm9, 1, %v7955_v3  ;;  %vm1068_vm11 = vcmp.lt.s32.totalorder %v4753_v19, 0 }
 0x114   : > { %vm5155_vm10 = vcmp.le.f32.partialorder %v8025_v56, 0.7853982  ;;  %v1307_v7 = vadd.s32 %v1305_v28, %v1299_v40  ;;  %v756_v29 = vand.u32 2147483647, %v4741_v43  ;;  %v1260_v38 = vsel %vm1254_vm0, %v1257_v24, %v1259_v25 }
 0x115   : > { %v1183_v63 = vor.u32 4788187, %v1182_v33  ;;  %v1281_v62 = vshrl.u32 %v5133_v17, 16  ;;  %vm1308_vm12 = vc.u32 %v1306_v52, %v1302_v18  ;;  %v1191_v39 = vsel %vm1068_vm11, %v1190_v1, %v5103_v0 }
 0x116   : > { %v1301_v23 = vshrl.u32 %v1297_v60, 16  ;;  %v1303_v21 = vshrl.u32 %v1298_v15, 16  ;;  %v1309_v51 = vsel %vm1308_vm12, 1, %v7955_v3  ;;  %v1186_v50 = vcvt.s32.f32 %v1179_v13 }
 0x117   : > { %v1184_v16 = vand.u32 2147483647, %v1183_v63  ;;  %v5168_v42 = vadd.s32 %v1290_v61, %v1281_v62  ;;  %v1311_v12 = vadd.s32 %v1309_v51, %v1307_v7  ;;  %v5170_v55 = vadd.s32 %v1306_v52, %v1302_v18 }
 0x118   : > { %v763_v22 = vand.u32 8388607, %v756_v29  ;;  %v773_v17 = vshll.u32 %v7953_v54, %v4760_v31  ;;  %v776_v0 = vshll.u32 %v7951_v41, %v4760_v31  ;;  %v777_v60 = vshrl.u32 %v7949_v45, %v4775_v47 }
 0x119   : > { %v1187_v24 = vmul.f32 %v1186_v50, %v1184_v16  ;;  %v1312_v25 = vadd.s32 %v1311_v12, %v1301_v23  ;;  %v779_v10 = vshll.u32 %v7949_v45, %v4760_v31  ;;  %v774_v11 = vshrl.u32 %v7951_v41, %v4775_v47 }
 0x11a   : > { %v780_v46 = vshrl.u32 %v7947_v49, %v4775_v47  ;;  %v782_v57 = vshll.u32 %v7947_v49, %v4760_v31  ;;  %v783_v37 = vshrl.u32 %v7957_v6, %v4775_v47  ;;  %v1193_v15 = vsel %vm5155_vm10, 0, %v1191_v39 }
 0x11b   : > { %v1188_v4 = vxor.u32 2147483648, %v1187_v24  ;;  %v1313_v14 = vadd.s32 %v1312_v25, %v1303_v21  ;;  %v785_v8 = vshll.u32 %v7957_v6, %v4760_v31  ;;  %v1314_v20 = vmul.u32 %v5117_v2, %v1260_v38 }
 0x11c   : > { %vm1316_vm13 = vc.u32 %v5168_v42, %v5170_v55  ;;  %v784_v30 = vor.u32 %v783_v37, %v782_v57  ;;  %v786_v1 = vshrl.u32 %v8024_v5, %v4775_v47  ;;  %v5201_v18 = vor.u32 %v777_v60, %v776_v0 }
 0x11d   : > { %v1189_v61 = vsel %vm1068_vm11, %v1188_v4, %v1187_v24  ;;  %v1317_v40 = vadd.s32 1, %v1313_v14  ;;  %v781_v13 = vor.u32 %v780_v46, %v779_v10  ;;  %v764_v2 = vor.u32 8388608, %v763_v22 }
 0x11e   : > { %v5206_v31 = vsel %vm5155_vm10, %v4753_v19, %v1189_v61  ;;  %v5208_v33 = vor.u32 %v774_v11, %v773_v17  ;;  %v787_v28 = vor.u32 %v786_v1, %v785_v8  ;;  %v1210_v56 = vadd.s32 3, %v1193_v15 }
 0x11f   : > { %v1194_v52 = vmul.f32 %v5206_v31, %v5206_v31  ;;  %v1318_v7 = vsel %vm1316_vm13, %v1317_v40, %v1313_v14  ;;  %vm791_vm14 = vcmp.lt.s32.totalorder %v4768_v35, 4  ;;  %vm788_vm15 = vcmp.lt.s32.totalorder %v4768_v35, 1 }
 0x120   : > { %v1319_v63 = vadd.s32 %v1318_v7, %v1314_v20  ;;  %vm789_vm0 = vcmp.lt.s32.totalorder %v4768_v35, 2  ;;  %v797_v58 = vsel %vm791_vm14, %v784_v30, 920167782  ;;  %vm790_vm1 = vcmp.lt.s32.totalorder %v4768_v35, 3 }
 0x121   : > { %v1195_v38 = vmul.f32 -0.001358992, %v1194_v52  ;;  %v1202_v62 = vmul.f32 -0.00019511016, %v1194_v52  ;;  %v800_v39 = vsel %vm788_vm15, %v5201_v18, %v781_v13  ;;  %v796_v21 = vsel %vm788_vm15, %v5208_v33, %v5201_v18 }
 0x122   : > { %v1320_v23 = vadd.s32 536870912, %v1319_v63  ;;  %v801_v51 = vsel %vm791_vm14, %v787_v28, 1326507024  ;;  %v5227_v16 = vshll.u32 %v764_v2, 8  ;;  %v798_v22 = vsel %vm790_vm1, %v781_v13, %v797_v58 }
 0x123   : > { %v1196_v50 = vadd.f32 0.041655596, %v1195_v38  ;;  %v1203_v12 = vadd.f32 0.008332121, %v1202_v62  ;;  %v802_v17 = vsel %vm790_vm1, %v784_v30, %v801_v51  ;;  %v5233_v0 = vand.u32 3, %v1210_v56 }
 0x124   : > { %v1321_v24 = vshrl.u32 %v1320_v23, 30  ;;  %v803_v25 = vsel %vm789_vm0, %v800_v39, %v802_v17  ;;  %v805_v60 = vand.u32 65535, %v5227_v16  ;;  %v5239_v37 = vadd.s32 1, %v4968_v27 }
 0x125   : > { %v1197_v10 = vmul.f32 %v1196_v50, %v1194_v52  ;;  %v1204_v11 = vmul.f32 %v1203_v12, %v1194_v52  ;;  %v807_v46 = vand.u32 65535, %v803_v25  ;;  %v808_v57 = vshrl.u32 %v803_v25, 16 }
 0x126   : > { %v1322_v4 = vshll.u32 %v1321_v24, 30  ;;  %v799_v15 = vsel %vm789_vm0, %v796_v21, %v798_v22  ;;  %v806_v14 = vshrl.u32 %v5227_v16, 16  ;;  %v5245_v8 = vadd.s32 1, %v5099_v9 }
 0x127   : > { %v1198_v20 = vadd.f32 -0.4999988, %v1197_v10  ;;  %v1205_v30 = vadd.f32 -0.16666654, %v1204_v11  ;;  %v5247_v1 = vmul.u32 %v808_v57, %v805_v60  ;;  %vm1213_vm2 = vcmp.eq.s32.totalorder %v5233_v0, 0 }
 0x128   : > { %vm1223_vm3 = vcmp.lt.s32.totalorder %v4766_v34, 0  ;;  %v5251_v61 = vsub.s32 %v1319_v63, %v1322_v4  ;;  %v772_v27 = vshrl.u32 %v7953_v54, %v4775_v47  ;;  %v793_v40 = vsel %vm791_vm14, %v781_v13, 2102212464 }
 0x129   : > { %v5257_v2 = vmul.u32 %v807_v46, %v806_v14  ;;  %v1199_v9 = vmul.f32 %v1198_v20, %v1194_v52  ;;  %v1206_v28 = vmul.f32 %v1205_v30, %v1194_v52  ;;  %vm1212_vm4 = vcmp.lt.s32.totalorder %v5233_v0, 2 }
 0x12a   : > { %v813_v56 = vshll.u32 %v5247_v1, 16  ;;  %v829_v7 = vand.u32 65535, %v799_v15  ;;  %vm1209_vm5 = vweird.f32 %v4753_v19  ;;  %vm1324_vm6 = vcmp.lt.s32.totalorder %v5251_v61, 0 }
 0x12b   : > { %v1325_v63 = vsub.s32 0, %v5251_v61  ;;  %v1345_v58 = vsub.s32 4, %v1321_v24  ;;  %v809_v47 = vmul.u32 %v807_v46, %v805_v60  ;;  %vm457_vm7 = vcmp.gt.s32.totalorder %v5239_v37, 0 }
 0x12c   : > { %v1200_v13 = vadd.f32 1.0, %v1199_v9  ;;  %v1207_v38 = vadd.f32 1.0, %v1206_v28  ;;  %v812_v62 = vmul.u32 %v808_v57, %v806_v14  ;;  %v830_v39 = vshrl.u32 %v799_v15, 16 }
 0x12d   : > { %v1326_v52 = vsel %vm1324_vm6, %v1325_v63, %v5251_v61  ;;  %v815_v23 = vshll.u32 %v5257_v2, 16  ;;  %vm817_vm8 = vc.u32 %v809_v47, %v813_v56  ;;  %v819_v21 = vadd.s32 %v813_v56, %v809_v47 }
 0x12e   : > { %v1208_v51 = vmul.f32 %v1207_v38, %v5206_v31  ;;  %v1217_v50 = vxor.u32 2147483648, %v1200_v13  ;;  %v1327_v12 = vclz %v1326_v52  ;;  %v818_v22 = vsel %vm817_vm8, 1, %v7955_v3 }
 0x12f   : > { %vm1216_vm9 = vcmp.eq.s32.totalorder %v5233_v0, 2  ;;  %v1315_v17 = vadd.s32 %v5170_v55, %v5168_v42  ;;  %v792_v25 = vsel %vm788_vm15, %v772_v27, %v5208_v33  ;;  %v820_v10 = vadd.s32 %v818_v22, %v812_v62 }
 0x130   : > { %v1214_v11 = vxor.u32 2147483648, %v1208_v51  ;;  %v4501_v46 = vadd.s32 4294967294, %v1327_v12  ;;  %v794_v31 = vsel %vm790_vm1, %v5201_v18, %v793_v40  ;;  %vm821_vm10 = vc.u32 %v819_v21, %v815_v23 }
 0x131   : > { %v822_v57 = vsel %vm821_vm10, 1, %v7955_v3  ;;  %v831_v4 = vmul.u32 %v829_v7, %v805_v60  ;;  %v832_v15 = vmul.u32 %v830_v39, %v805_v60  ;;  %v833_v20 = vmul.u32 %v829_v7, %v806_v14 }
 0x132   : > { %v1215_v42 = vsel %vm1213_vm2, %v1200_v13, %v1214_v11  ;;  %v1218_v55 = vsel %vm1216_vm9, %v1217_v50, %v1208_v51  ;;  %vm4502_vm11 = vcmp.lt.s32.totalorder %v4501_v46, 0  ;;  %v5283_v33 = vsel %vm1223_vm3, %v1345_v58, %v1321_v24 }
 0x133   : > { %v1219_v30 = vsel %vm1212_vm4, %v1215_v42, %v1218_v55  ;;  %v1330_v27 = vsel %vm4502_vm11, 0, %v4501_v46  ;;  %v824_v18 = vadd.s32 %v822_v57, %v820_v10  ;;  %v835_v40 = vshll.u32 %v832_v15, 16 }
 0x134   : > { %v1220_v9 = vsel %vm1209_vm5, nan, %v1219_v30  ;;  %v1331_v60 = vsub.s32 32, %v1330_v27  ;;  %v1335_v28 = vsub.s32 4294967266, %v1330_v27  ;;  %v814_v56 = vshrl.u32 %v5247_v1, 16 }
 0x135   : > { %1740 = vmatpush.msra.mxu0 %v1220_v9  ;;  %v1332_v7 = vshll.u32 %v5251_v61, %v1330_v27  ;;  %v834_v63 = vmul.u32 %v830_v39, %v806_v14  ;;  %v837_v47 = vshll.u32 %v833_v20, 16  ;;  %vm839_vm12 = vc.u32 %v831_v4, %v835_v40 }
 0x136   : > { %v1333_v24 = vshrl.u32 %v1315_v17, %v1331_v60  ;;  %v1336_v58 = vadd.s32 127, %v1335_v28  ;;  %v840_v0 = vsel %vm839_vm12, 1, %v7955_v3  ;;  %v841_v13 = vadd.s32 %v835_v40, %v831_v4 }
 0x137   : > { %v5295_v19 = vsel %vm457_vm7, %v5239_v37, 0  ;;  %v825_v38 = vadd.s32 %v824_v18, %v814_v56  ;;  %v842_v62 = vadd.s32 %v840_v0, %v834_v63  ;;  %v911_v1 = vand.u32 2147483647, %v4743_v44 }
 0x138   : > { %vm5300_vm13 = vcmp.le.f32.partialorder %v1221_v26, 0.7853982  ;;  %v1334_v61 = vor.u32 %v1333_v24, %v1332_v7  ;;  %v1337_v39 = vshll.u32 %v1336_v58, 23  ;;  %vm843_vm14 = vc.u32 %v841_v13, %v837_v47 }
 0x139   : > { %v1348_v52 = vsel %vm5300_vm13, 0, %v5283_v33  ;;  %v795_v37 = vsel %vm789_vm0, %v792_v25, %v794_v31  ;;  %v816_v23 = vshrl.u32 %v5257_v2, 16  ;;  %v844_v21 = vsel %vm843_vm14, 1, %v7955_v3 }
 0x13a   : > { %v1338_v51 = vor.u32 4788187, %v1337_v39  ;;  %v836_v50 = vshrl.u32 %v832_v15, 16  ;;  %v838_v26 = vshrl.u32 %v833_v20, 16  ;;  %v846_v12 = vadd.s32 %v844_v21, %v842_v62 }
 0x13b   : > { %v1341_v22 = vcvt.s32.f32 %v1334_v61  ;;  %v5311_v17 = vadd.s32 %v825_v38, %v816_v23  ;;  %v5313_v10 = vadd.s32 %v841_v13, %v837_v47  ;;  %v918_v11 = vand.u32 8388607, %v911_v1 }
 0x13c   : > { %v1339_v46 = vand.u32 2147483647, %v1338_v51  ;;  %v847_v57 = vadd.s32 %v846_v12, %v836_v50  ;;  %v928_v35 = vshll.u32 %v7953_v54, %v4762_v32  ;;  %v931_v2 = vshll.u32 %v7951_v41, %v4762_v32 }
 0x13d   : > { %v932_v25 = vshrl.u32 %v7949_v45, %v4778_v48  ;;  %v934_v31 = vshll.u32 %v7949_v45, %v4762_v32  ;;  %v935_v4 = vshrl.u32 %v7947_v49, %v4778_v48  ;;  %v937_v15 = vshll.u32 %v7947_v49, %v4762_v32 }
 0x13e   : > { %v1342_v20 = vmul.f32 %v1341_v22, %v1339_v46  ;;  %v848_v42 = vadd.s32 %v847_v57, %v838_v26  ;;  %v929_v55 = vshrl.u32 %v7951_v41, %v4778_v48  ;;  %v938_v33 = vshrl.u32 %v7957_v6, %v4778_v48 }
 0x13f   : > { %vm612_vm15 = vcmp.gt.s32.totalorder %v5245_v8, 0  ;;  %vm851_vm0 = vc.u32 %v5311_v17, %v5313_v10  ;;  %v5336_v30 = vor.u32 %v932_v25, %v931_v2  ;;  %v940_v27 = vshll.u32 %v7957_v6, %v4762_v32 }
 0x140   : > { %v941_v18 = vshrl.u32 %v8024_v5, %v4778_v48  ;;  %v1343_v40 = vxor.u32 2147483648, %v1342_v20  ;;  %v852_v9 = vadd.s32 1, %v848_v42  ;;  %v5342_v60 = vor.u32 %v935_v4, %v934_v31 }
 0x141   : > { %v939_v28 = vor.u32 %v938_v33, %v937_v15  ;;  %v5345_v56 = vand.u32 31, %v5295_v19  ;;  %v849_v7 = vmul.u32 %v5227_v16, %v795_v37  ;;  %v919_v63 = vor.u32 8388608, %v918_v11 }
 0x142   : > { %v942_v47 = vor.u32 %v941_v18, %v940_v27  ;;  %v1344_v24 = vsel %vm1223_vm3, %v1343_v40, %v1342_v20  ;;  %v1365_v58 = vadd.s32 3, %v1348_v52  ;;  %v853_v32 = vsel %vm851_vm0, %v852_v9, %v848_v42 }
 0x143   : > { %v5350_v0 = vor.u32 %v929_v55, %v928_v35  ;;  %v5355_v13 = vsel %vm5300_vm13, %v4766_v34, %v1344_v24  ;;  %v854_v38 = vadd.s32 %v853_v32, %v849_v7  ;;  %vm943_vm1 = vcmp.lt.s32.totalorder %v4770_v36, 1 }
 0x144   : > { %vm946_vm2 = vcmp.lt.s32.totalorder %v4770_v36, 4  ;;  %v1349_v16 = vmul.f32 %v5355_v13, %v5355_v13  ;;  %vm944_vm4 = vcmp.lt.s32.totalorder %v4770_v36, 2  ;;  %v955_v14 = vsel %vm943_vm1, %v5336_v30, %v5342_v60 }
 0x145   : > { %v952_v62 = vsel %vm946_vm2, %v939_v28, 920167782  ;;  %v855_v61 = vadd.s32 536870912, %v854_v38  ;;  %vm945_vm3 = vcmp.lt.s32.totalorder %v4770_v36, 3  ;;  %v956_v39 = vsel %vm946_vm2, %v942_v47, 1326507024 }
 0x146   : > { %v5371_v52 = vshll.u32 %v919_v63, 8  ;;  %v1350_v37 = vmul.f32 -0.001358992, %v1349_v16  ;;  %v1357_v23 = vmul.f32 -0.00019511016, %v1349_v16  ;;  %v951_v21 = vsel %vm943_vm1, %v5350_v0, %v5336_v30 }
 0x147   : > { %v957_v51 = vsel %vm945_vm3, %v939_v28, %v956_v39  ;;  %v856_v50 = vshrl.u32 %v855_v61, 30  ;;  %v953_v26 = vsel %vm945_vm3, %v5342_v60, %v952_v62  ;;  %v1366_v2 = vand.u32 3, %v1365_v58 }
 0x148   : > { %v958_v12 = vsel %vm944_vm4, %v955_v14, %v957_v51  ;;  %v960_v22 = vand.u32 65535, %v5371_v52  ;;  %v1351_v11 = vadd.f32 0.041655596, %v1350_v37  ;;  %v1358_v46 = vadd.f32 0.008332121, %v1357_v23 }
 0x149   : > { %v962_v57 = vand.u32 65535, %v958_v12  ;;  %v963_v35 = vshrl.u32 %v958_v12, 16  ;;  %v857_v25 = vshll.u32 %v856_v50, 30  ;;  %v961_v31 = vshrl.u32 %v5371_v52, 16 }
 0x14a   : > { %v5389_v4 = vsel %vm612_vm15, %v5245_v8, 0  ;;  %v1352_v15 = vmul.f32 %v1351_v11, %v1349_v16  ;;  %v1359_v20 = vmul.f32 %v1358_v46, %v1349_v16  ;;  %v5392_v55 = vsub.s32 32, %v5345_v56 }
 0x14b   : > { %v965_v42 = vmul.u32 %v963_v35, %v960_v22  ;;  %v5394_v33 = vsub.s32 %v854_v38, %v857_v25  ;;  %v954_v27 = vsel %vm944_vm4, %v951_v21, %v953_v26  ;;  %v5398_v18 = vmul.u32 %v962_v57, %v961_v31 }
 0x14c   : > { %v1353_v40 = vadd.f32 -0.4999988, %v1352_v15  ;;  %v1360_v9 = vadd.f32 -0.16666654, %v1359_v20  ;;  %vm758_vm5 = vcmp.lt.s32.totalorder %v4741_v43, 0  ;;  %vm1368_vm6 = vcmp.eq.s32.totalorder %v1366_v2, 0 }
 0x14d   : > { %v968_v28 = vshll.u32 %v965_v42, 16  ;;  %vm1371_vm7 = vcmp.eq.s32.totalorder %v1366_v2, 2  ;;  %vm859_vm8 = vcmp.lt.s32.totalorder %v5394_v33, 0  ;;  %v860_v8 = vsub.s32 0, %v5394_v33 }
 0x14e   : > { %v880_v7 = vsub.s32 4, %v856_v50  ;;  %v964_v63 = vmul.u32 %v962_v57, %v960_v22  ;;  %v1354_v47 = vmul.f32 %v1353_v40, %v1349_v16  ;;  %v1361_v24 = vmul.f32 %v1360_v9, %v1349_v16 }
 0x14f   : > { %vm1367_vm9 = vcmp.lt.s32.totalorder %v1366_v2, 2  ;;  %v967_v58 = vmul.u32 %v963_v35, %v961_v31  ;;  %v985_v32 = vshrl.u32 %v954_v27, 16  ;;  %vm1364_vm10 = vweird.f32 %v4766_v34 }
 0x150   : > { %v861_v38 = vsel %vm859_vm8, %v860_v8, %v5394_v33  ;;  %v970_v62 = vshll.u32 %v5398_v18, 16  ;;  %vm972_vm11 = vc.u32 %v964_v63, %v968_v28  ;;  %v974_v14 = vadd.s32 %v968_v28, %v964_v63 }
 0x151   : > { %v1355_v61 = vadd.f32 1.0, %v1354_v47  ;;  %v1362_v39 = vadd.f32 1.0, %v1361_v24  ;;  %v862_v37 = vclz %v861_v38  ;;  %v973_v23 = vsel %vm972_vm11, 1, %v7955_v3 }
 0x152   : > { %v850_v21 = vadd.s32 %v5313_v10, %v5311_v17  ;;  %v927_v16 = vshrl.u32 %v7953_v54, %v4778_v48  ;;  %v975_v51 = vadd.s32 %v973_v23, %v967_v58  ;;  %v984_v26 = vand.u32 65535, %v954_v27 }
 0x153   : > { %v1363_v12 = vmul.f32 %v1362_v39, %v5355_v13  ;;  %v1372_v11 = vxor.u32 2147483648, %v1355_v61  ;;  %vm5414_vm12 = vcmp.le.f32.partialorder %v756_v29, 0.7853982  ;;  %v4492_v57 = vadd.s32 4294967294, %v862_v37 }
 0x154   : > { %vm976_vm13 = vc.u32 %v974_v14, %v970_v62  ;;  %v881_v35 = vsel %vm758_vm5, %v880_v7, %v856_v50  ;;  %v948_v48 = vsel %vm946_vm2, %v5342_v60, 2102212464  ;;  %v987_v10 = vmul.u32 %v985_v32, %v960_v22 }
 0x155   : > { %v977_v17 = vsel %vm976_vm13, 1, %v7955_v3  ;;  %v1369_v13 = vxor.u32 2147483648, %v1363_v12  ;;  %vm4493_vm14 = vcmp.lt.s32.totalorder %v4492_v57, 0  ;;  %v969_v25 = vshrl.u32 %v965_v42, 16 }
 0x156   : > { %v979_v15 = vadd.s32 %v977_v17, %v975_v51  ;;  %v865_v29 = vsel %vm4493_vm14, 0, %v4492_v57  ;;  %v986_v20 = vmul.u32 %v984_v26, %v960_v22  ;;  %v988_v27 = vmul.u32 %v984_v26, %v961_v31 }
 0x157   : > { %v990_v40 = vshll.u32 %v987_v10, 16  ;;  %v1370_v9 = vsel %vm1368_vm6, %v1355_v61, %v1369_v13  ;;  %v1373_v28 = vsel %vm1371_vm7, %v1372_v11, %v1363_v12  ;;  %v866_v50 = vsub.s32 32, %v865_v29 }
 0x158   : > { %v870_v8 = vsub.s32 4294967266, %v865_v29  ;;  %v1374_v7 = vsel %vm1367_vm9, %v1370_v9, %v1373_v28  ;;  %v867_v60 = vshll.u32 %v5394_v33, %v865_v29  ;;  %v980_v63 = vadd.s32 %v979_v15, %v969_v25 }
 0x159   : > { %v989_v47 = vmul.u32 %v985_v32, %v961_v31  ;;  %v1375_v42 = vsel %vm1364_vm10, nan, %v1374_v7  ;;  %v868_v24 = vshrl.u32 %v850_v21, %v866_v50  ;;  %vm994_vm15 = vc.u32 %v986_v20, %v990_v40 }
 0x15a   : > { %v871_v58 = vadd.s32 127, %v870_v8  ;;  %1769 = vmatpush.msra.mxu1 %v1375_v42  ;;  %v971_v22 = vshrl.u32 %v5398_v18, 16  ;;  %v992_v38 = vshll.u32 %v988_v27, 16  ;;  %v995_v62 = vsel %vm994_vm15, 1, %v7955_v3 }
 0x15b   : > { %v996_v14 = vadd.s32 %v990_v40, %v986_v20  ;;  %v869_v61 = vor.u32 %v868_v24, %v867_v60  ;;  %v947_v33 = vsel %vm943_vm1, %v927_v16, %v5350_v0  ;;  %v997_v31 = vadd.s32 %v995_v62, %v989_v47 }
 0x15c   : > { %v872_v2 = vshll.u32 %v871_v58, 23  ;;  %v883_v34 = vsel %vm5414_vm12, 0, %v881_v35  ;;  %v949_v32 = vsel %vm945_vm3, %v5336_v30, %v948_v48  ;;  %v5440_v39 = vadd.s32 %v980_v63, %v971_v22 }
 0x15d   : > { %vm998_vm0 = vc.u32 %v996_v14, %v992_v38  ;;  %v5443_v18 = vshrl.u32 %v5295_v19, 5  ;;  %v446_v21 = vand.u32 2147483647, %v4782_v53  ;;  %v5448_v0 = vand.u32 31, %v5389_v4 }
 0x15e   : > { %v873_v37 = vor.u32 4788187, %v872_v2  ;;  %v999_v23 = vsel %vm998_vm0, 1, %v7955_v3  ;;  %v991_v16 = vshrl.u32 %v987_v10, 16  ;;  %v5450_v51 = vadd.s32 %v996_v14, %v992_v38 }
 0x15f   : > { %v1001_v26 = vadd.s32 %v999_v23, %v997_v31  ;;  %v876_v30 = vcvt.s32.f32 %v869_v61  ;;  %v900_v11 = vadd.s32 3, %v883_v34  ;;  %v950_v57 = vsel %vm944_vm4, %v947_v33, %v949_v32 }
 0x160   : > { %v874_v12 = vand.u32 2147483647, %v873_v37  ;;  %v993_v19 = vshrl.u32 %v988_v27, 16  ;;  %vm1006_vm1 = vc.u32 %v5440_v39, %v5450_v51  ;;  %v467_v48 = vshrl.u32 %v7949_v45, %v5392_v55 }
 0x161   : > { %v1002_v35 = vadd.s32 %v1001_v26, %v991_v16  ;;  %v453_v10 = vand.u32 8388607, %v446_v21  ;;  %v464_v13 = vshrl.u32 %v7951_v41, %v5392_v55  ;;  %v470_v25 = vshrl.u32 %v7947_v49, %v5392_v55 }
 0x162   : > { %v877_v17 = vmul.f32 %v876_v30, %v874_v12  ;;  %v466_v15 = vshll.u32 %v7951_v41, %v5345_v56  ;;  %v469_v29 = vshll.u32 %v7949_v45, %v5345_v56  ;;  %v473_v20 = vshrl.u32 %v7957_v6, %v5392_v55 }
 0x163   : > { %v1003_v36 = vadd.s32 %v1002_v35, %v993_v19  ;;  %v463_v40 = vshll.u32 %v7953_v54, %v5345_v56  ;;  %v475_v9 = vshll.u32 %v7957_v6, %v5345_v56  ;;  %v476_v28 = vshrl.u32 %v8024_v5, %v5392_v55 }
 0x164   : > { %v878_v27 = vxor.u32 2147483648, %v877_v17  ;;  %v5476_v8 = vor.u32 %v467_v48, %v466_v15  ;;  %v5478_v7 = vor.u32 %v470_v25, %v469_v29  ;;  %v472_v60 = vshll.u32 %v7947_v49, %v5345_v56 }
 0x165   : > { %v1007_v50 = vadd.s32 1, %v1003_v36  ;;  %v1004_v47 = vmul.u32 %v5371_v52, %v950_v57  ;;  %v454_v42 = vor.u32 8388608, %v453_v10  ;;  %v477_v24 = vor.u32 %v476_v28, %v475_v9 }
 0x166   : > { %v879_v63 = vsel %vm758_vm5, %v878_v27, %v877_v17  ;;  %v5491_v38 = vor.u32 %v464_v13, %v463_v40  ;;  %v474_v62 = vor.u32 %v473_v20, %v472_v60  ;;  %vm478_vm2 = vcmp.lt.s32.totalorder %v5443_v18, 1 }
 0x167   : > { %v882_v58 = vsel %vm5414_vm12, %v4741_v43, %v879_v63  ;;  %v1008_v22 = vsel %vm1006_vm1, %v1007_v50, %v1003_v36  ;;  %vm481_vm4 = vcmp.lt.s32.totalorder %v5443_v18, 4  ;;  %v5495_v52 = vand.u32 3, %v900_v11 }
 0x168   : > { %v884_v14 = vmul.f32 %v882_v58, %v882_v58  ;;  %v1009_v56 = vadd.s32 %v1008_v22, %v1004_v47  ;;  %vm479_vm3 = vcmp.lt.s32.totalorder %v5443_v18, 2  ;;  %v490_v46 = vsel %vm478_vm2, %v5476_v8, %v5478_v7 }
 0x169   : > { %v491_v61 = vsel %vm481_vm4, %v477_v24, 1326507024  ;;  %vm480_vm5 = vcmp.lt.s32.totalorder %v5443_v18, 3  ;;  %v486_v34 = vsel %vm478_vm2, %v5491_v38, %v5476_v8  ;;  %v487_v32 = vsel %vm481_vm4, %v474_v62, 920167782 }
 0x16a   : > { %v885_v2 = vmul.f32 -0.001358992, %v884_v14  ;;  %v892_v33 = vmul.f32 -0.00019511016, %v884_v14  ;;  %v1010_v31 = vadd.s32 536870912, %v1009_v56  ;;  %v492_v37 = vsel %vm480_vm5, %v474_v62, %v491_v61 }
 0x16b   : > { %v5513_v23 = vshll.u32 %v454_v42, 8  ;;  %v493_v30 = vsel %vm479_vm3, %v490_v46, %v492_v37  ;;  %v488_v13 = vsel %vm480_vm5, %v5478_v7, %v487_v32  ;;  %v5534_v15 = vsub.s32 32, %v5448_v0 }
 0x16c   : > { %v886_v16 = vadd.f32 0.041655596, %v885_v2  ;;  %v893_v26 = vadd.f32 0.008332121, %v892_v33  ;;  %v5515_v12 = vshrl.u32 %v1010_v31, 30  ;;  %v497_v19 = vand.u32 65535, %v493_v30 }
 0x16d   : > { %v5520_v11 = vand.u32 65535, %v5513_v23  ;;  %v5523_v57 = vshrl.u32 %v5513_v23, 16  ;;  %v498_v35 = vshrl.u32 %v493_v30, 16  ;;  %v462_v40 = vshrl.u32 %v7953_v54, %v5392_v55 }
 0x16e   : > { %v887_v48 = vmul.f32 %v886_v16, %v884_v14  ;;  %v894_v17 = vmul.f32 %v893_v26, %v884_v14  ;;  %v1012_v10 = vshll.u32 %v5515_v12, 30  ;;  %v489_v9 = vsel %vm479_vm3, %v486_v34, %v488_v13 }
 0x16f   : > { %v500_v25 = vmul.u32 %v498_v35, %v5520_v11  ;;  %v5531_v36 = vmul.u32 %v497_v19, %v5523_v57  ;;  %v499_v28 = vmul.u32 %v497_v19, %v5520_v11  ;;  %vm902_vm6 = vcmp.lt.s32.totalorder %v5495_v52, 2 }
 0x170   : > { %v888_v29 = vadd.f32 -0.4999988, %v887_v48  ;;  %v895_v20 = vadd.f32 -0.16666654, %v894_v17  ;;  %v1013_v27 = vsub.s32 %v1009_v56, %v1012_v10  ;;  %vm899_vm8 = vweird.f32 %v4741_v43 }
 0x171   : > { %v503_v50 = vshll.u32 %v500_v25, 16  ;;  %v502_v42 = vmul.u32 %v498_v35, %v5523_v57  ;;  %v505_v24 = vshll.u32 %v5531_v36, 16  ;;  %vm913_vm11 = vcmp.lt.s32.totalorder %v4743_v44, 0 }
 0x172   : > { %v889_v60 = vmul.f32 %v888_v29, %v884_v14  ;;  %v896_v63 = vmul.f32 %v895_v20, %v884_v14  ;;  %vm1014_vm7 = vcmp.lt.s32.totalorder %v1013_v27, 0  ;;  %v1015_v47 = vsub.s32 0, %v1013_v27 }
 0x173   : > { %vm507_vm9 = vc.u32 %v499_v28, %v503_v50  ;;  %v509_v55 = vadd.s32 %v503_v50, %v499_v28  ;;  %v483_v14 = vsel %vm481_vm4, %v5478_v7, 2102212464  ;;  %v519_v32 = vand.u32 65535, %v489_v9 }
 0x174   : > { %v890_v22 = vadd.f32 1.0, %v889_v60  ;;  %v897_v62 = vadd.f32 1.0, %v896_v63  ;;  %v1016_v56 = vsel %vm1014_vm7, %v1015_v47, %v1013_v27  ;;  %v508_v46 = vsel %vm507_vm9, 1, %v7955_v3 }
 0x175   : > { %v1017_v61 = vclz %v1016_v56  ;;  %v510_v2 = vadd.s32 %v508_v46, %v502_v42  ;;  %vm511_vm10 = vc.u32 %v509_v55, %v505_v24  ;;  %vm903_vm12 = vcmp.eq.s32.totalorder %v5495_v52, 0 }
 0x176   : > { %v898_v33 = vmul.f32 %v897_v62, %v882_v58  ;;  %v907_v31 = vxor.u32 2147483648, %v890_v22  ;;  %v512_v34 = vsel %vm511_vm10, 1, %v7955_v3  ;;  %vm906_vm13 = vcmp.eq.s32.totalorder %v5495_v52, 2 }
 0x177   : > { %v1005_v37 = vadd.s32 %v5450_v51, %v5440_v39  ;;  %v4495_v16 = vadd.s32 4294967294, %v1017_v61  ;;  %v482_v7 = vsel %vm478_vm2, %v462_v40, %v5491_v38  ;;  %v514_v58 = vadd.s32 %v512_v34, %v510_v2 }
 0x178   : > { %v904_v26 = vxor.u32 2147483648, %v898_v33  ;;  %v520_v30 = vshrl.u32 %v489_v9, 16  ;;  %v908_v19 = vsel %vm906_vm13, %v907_v31, %v898_v33  ;;  %v484_v35 = vsel %vm480_vm5, %v5476_v8, %v483_v14 }
 0x179   : > { %vm4496_vm14 = vcmp.lt.s32.totalorder %v4495_v16, 0  ;;  %v504_v48 = vshrl.u32 %v500_v25, 16  ;;  %v523_v39 = vmul.u32 %v519_v32, %v5523_v57  ;;  %v1035_v20 = vsub.s32 4, %v5515_v12 }
 0x17a   : > { %v905_v17 = vsel %vm903_vm12, %v890_v22, %v904_v26  ;;  %v1020_v10 = vsel %vm4496_vm14, 0, %v4495_v16  ;;  %v522_v13 = vmul.u32 %v520_v30, %v5520_v11  ;;  %v521_v8 = vmul.u32 %v519_v32, %v5520_v11 }
 0x17b   : > { %v909_v51 = vsel %vm902_vm6, %v905_v17, %v908_v19  ;;  %v1021_v29 = vsub.s32 32, %v1020_v10  ;;  %v1025_v38 = vsub.s32 4294967266, %v1020_v10  ;;  %v515_v9 = vadd.s32 %v514_v58, %v504_v48 }
 0x17c   : > { %v910_v40 = vsel %vm899_vm8, nan, %v909_v51  ;;  %v525_v25 = vshll.u32 %v522_v13, 16  ;;  %v1022_v28 = vshll.u32 %v1013_v27, %v1020_v10  ;;  %v506_v63 = vshrl.u32 %v5531_v36, 16 }
 0x17d   : > { %1741 = vmatpush.msra.mxu0 %v910_v40  ;;  %v1023_v50 = vshrl.u32 %v1005_v37, %v1021_v29  ;;  %v1026_v60 = vadd.s32 127, %v1025_v38  ;;  %v524_v52 = vmul.u32 %v520_v30, %v5523_v57  ;;  %v527_v47 = vshll.u32 %v523_v39, 16 }
 0x17e   : > { %vm529_vm15 = vc.u32 %v521_v8, %v525_v25  ;;  %v531_v42 = vadd.s32 %v525_v25, %v521_v8  ;;  %v1036_v43 = vsel %vm913_vm11, %v1035_v20, %v5515_v12  ;;  %v5575_v22 = vadd.s32 %v515_v9, %v506_v63 }
 0x17f   : > { %v1024_v24 = vor.u32 %v1023_v50, %v1022_v28  ;;  %v1027_v55 = vshll.u32 %v1026_v60, 23  ;;  %v530_v11 = vsel %vm529_vm15, 1, %v7955_v3  ;;  %v601_v62 = vand.u32 2147483647, %v4788_v59 }
 0x180   : > { %v532_v27 = vadd.s32 %v530_v11, %v524_v52  ;;  %vm533_vm0 = vc.u32 %v531_v42, %v527_v47  ;;  %v5579_v36 = vshrl.u32 %v5389_v4, 5  ;;  %vm5583_vm1 = vcmp.le.f32.partialorder %v911_v1, 0.7853982 }
 0x181   : > { %v1028_v56 = vor.u32 4788187, %v1027_v55  ;;  %v534_v12 = vsel %vm533_vm0, 1, %v7955_v3  ;;  %v485_v46 = vsel %vm479_vm3, %v482_v7, %v484_v35  ;;  %v526_v61 = vshrl.u32 %v522_v13, 16 }
 0x182   : > { %v5590_v14 = vadd.s32 %v531_v42, %v527_v47  ;;  %v536_v2 = vadd.s32 %v534_v12, %v532_v27  ;;  %v1031_v31 = vcvt.s32.f32 %v1024_v24  ;;  %v1038_v4 = vsel %vm5583_vm1, 0, %v1036_v43 }
 0x183   : > { %v1029_v33 = vand.u32 2147483647, %v1028_v56  ;;  %v528_v34 = vshrl.u32 %v523_v39, 16  ;;  %v608_v32 = vand.u32 8388607, %v601_v62  ;;  %v622_v18 = vshrl.u32 %v7949_v45, %v5534_v15 }
 0x184   : > { %v537_v1 = vadd.s32 %v536_v2, %v526_v61  ;;  %vm541_vm2 = vc.u32 %v5575_v22, %v5590_v14  ;;  %v619_v16 = vshrl.u32 %v7951_v41, %v5534_v15  ;;  %v621_v26 = vshll.u32 %v7951_v41, %v5448_v0 }
 0x185   : > { %v1032_v37 = vmul.f32 %v1031_v31, %v1029_v33  ;;  %v625_v7 = vshrl.u32 %v7947_v49, %v5534_v15  ;;  %v624_v30 = vshll.u32 %v7949_v45, %v5448_v0  ;;  %v627_v19 = vshll.u32 %v7947_v49, %v5448_v0 }
 0x186   : > { %v538_v58 = vadd.s32 %v537_v1, %v528_v34  ;;  %v628_v35 = vshrl.u32 %v7957_v6, %v5534_v15  ;;  %v618_v17 = vshll.u32 %v7953_v54, %v5448_v0  ;;  %v630_v10 = vshll.u32 %v7957_v6, %v5448_v0 }
 0x187   : > { %v1033_v48 = vxor.u32 2147483648, %v1032_v37  ;;  %v631_v13 = vshrl.u32 %v8024_v5, %v5534_v15  ;;  %v5618_v51 = vor.u32 %v622_v18, %v621_v26  ;;  %v5620_v29 = vor.u32 %v625_v7, %v624_v30 }
 0x188   : > { %v542_v39 = vadd.s32 1, %v538_v58  ;;  %v629_v38 = vor.u32 %v628_v35, %v627_v19  ;;  %v539_v40 = vmul.u32 %v5513_v23, %v485_v46  ;;  %v609_v9 = vor.u32 8388608, %v608_v32 }
 0x189   : > { %v1034_v20 = vsel %vm913_vm11, %v1033_v48, %v1032_v37  ;;  %v632_v8 = vor.u32 %v631_v13, %v630_v10  ;;  %v5631_v28 = vor.u32 %v619_v16, %v618_v17  ;;  %vm636_vm4 = vcmp.lt.s32.totalorder %v5579_v36, 4 }
 0x18a   : > { %v1037_v0 = vsel %vm5583_vm1, %v4743_v44, %v1034_v20  ;;  %v543_v25 = vsel %vm541_vm2, %v542_v39, %v538_v58  ;;  %vm633_vm3 = vcmp.lt.s32.totalorder %v5579_v36, 1  ;;  %v642_v23 = vsel %vm636_vm4, %v629_v38, 920167782 }
 0x18b   : > { %v1039_v50 = vmul.f32 %v1037_v0, %v1037_v0  ;;  %v544_v60 = vadd.s32 %v543_v25, %v539_v40  ;;  %v1055_v63 = vadd.s32 3, %v1038_v4  ;;  %vm634_vm5 = vcmp.lt.s32.totalorder %v5579_v36, 2 }
 0x18c   : > { %v645_v52 = vsel %vm633_vm3, %v5618_v51, %v5620_v29  ;;  %v646_v47 = vsel %vm636_vm4, %v632_v8, 1326507024  ;;  %vm635_vm6 = vcmp.lt.s32.totalorder %v5579_v36, 3  ;;  %v641_v43 = vsel %vm633_vm3, %v5631_v28, %v5618_v51 }
 0x18d   : > { %v1040_v42 = vmul.f32 -0.001358992, %v1039_v50  ;;  %v1047_v24 = vmul.f32 -0.00019511016, %v1039_v50  ;;  %v545_v55 = vadd.s32 536870912, %v544_v60  ;;  %v643_v11 = vsel %vm635_vm6, %v5620_v29, %v642_v23 }
 0x18e   : > { %v647_v27 = vsel %vm635_vm6, %v629_v38, %v646_v47  ;;  %v5654_v57 = vshll.u32 %v609_v9, 8  ;;  %v644_v58 = vsel %vm634_vm5, %v641_v43, %v643_v11  ;;  %v1056_v30 = vand.u32 3, %v1055_v63 }
 0x18f   : > { %v1041_v56 = vadd.f32 0.041655596, %v1040_v42  ;;  %v1048_v12 = vadd.f32 0.008332121, %v1047_v24  ;;  %v5656_v46 = vshrl.u32 %v545_v55, 30  ;;  %v648_v61 = vsel %vm634_vm5, %v645_v52, %v647_v27 }
 0x190   : > { %v650_v2 = vand.u32 65535, %v5654_v57  ;;  %v651_v33 = vshrl.u32 %v5654_v57, 16  ;;  %v652_v31 = vand.u32 65535, %v648_v61  ;;  %v653_v4 = vshrl.u32 %v648_v61, 16 }
 0x191   : > { %v1042_v34 = vmul.f32 %v1041_v56, %v1039_v50  ;;  %v1049_v1 = vmul.f32 %v1048_v12, %v1039_v50  ;;  %v547_v32 = vshll.u32 %v5656_v46, 30  ;;  %v675_v38 = vshrl.u32 %v644_v58, 16 }
 0x192   : > { %v655_v18 = vmul.u32 %v653_v4, %v650_v2  ;;  %v5663_v37 = vmul.u32 %v652_v31, %v651_v33  ;;  %v654_v19 = vmul.u32 %v652_v31, %v650_v2  ;;  %v674_v23 = vand.u32 65535, %v644_v58 }
 0x193   : > { %v1043_v16 = vadd.f32 -0.4999988, %v1042_v34  ;;  %v1050_v26 = vadd.f32 -0.16666654, %v1049_v1  ;;  %v548_v7 = vsub.s32 %v544_v60, %v547_v32  ;;  %v657_v60 = vmul.u32 %v653_v4, %v651_v33 }
 0x194   : > { %v658_v35 = vshll.u32 %v655_v18, 16  ;;  %v660_v13 = vshll.u32 %v5663_v37, 16  ;;  %vm1054_vm10 = vweird.f32 %v4743_v44  ;;  %vm1057_vm11 = vcmp.lt.s32.totalorder %v1056_v30, 2 }
 0x195   : > { %v1044_v48 = vmul.f32 %v1043_v16, %v1039_v50  ;;  %v1051_v17 = vmul.f32 %v1050_v26, %v1039_v50  ;;  %vm549_vm7 = vcmp.lt.s32.totalorder %v548_v7, 0  ;;  %v550_v10 = vsub.s32 0, %v548_v7 }
 0x196   : > { %vm662_vm8 = vc.u32 %v654_v19, %v658_v35  ;;  %v664_v39 = vadd.s32 %v658_v35, %v654_v19  ;;  %vm1058_vm12 = vcmp.eq.s32.totalorder %v1056_v30, 0  ;;  %vm1061_vm13 = vcmp.eq.s32.totalorder %v1056_v30, 2 }
 0x197   : > { %v1045_v20 = vadd.f32 1.0, %v1044_v48  ;;  %v1052_v40 = vadd.f32 1.0, %v1051_v17  ;;  %v551_v9 = vsel %vm549_vm7, %v550_v10, %v548_v7  ;;  %v663_v8 = vsel %vm662_vm8, 1, %v7955_v3 }
 0x198   : > { %v552_v25 = vclz %v551_v9  ;;  %vm666_vm9 = vc.u32 %v664_v39, %v660_v13  ;;  %v665_v47 = vadd.s32 %v663_v8, %v657_v60  ;;  %v677_v55 = vmul.u32 %v675_v38, %v650_v2 }
 0x199   : > { %v1053_v63 = vmul.f32 %v1052_v40, %v1037_v0  ;;  %v1062_v50 = vxor.u32 2147483648, %v1045_v20  ;;  %v667_v24 = vsel %vm666_vm9, 1, %v7955_v3  ;;  %v540_v11 = vadd.s32 %v5590_v14, %v5575_v22 }
 0x19a   : > { %v4486_v52 = vadd.s32 4294967294, %v552_v25  ;;  %v676_v27 = vmul.u32 %v674_v23, %v650_v2  ;;  %v678_v12 = vmul.u32 %v674_v23, %v651_v33  ;;  %v680_v61 = vshll.u32 %v677_v55, 16 }
 0x19b   : > { %v1059_v42 = vxor.u32 2147483648, %v1053_v63  ;;  %v1063_v43 = vsel %vm1061_vm13, %v1062_v50, %v1053_v63  ;;  %v669_v1 = vadd.s32 %v667_v24, %v665_v47  ;;  %v659_v16 = vshrl.u32 %v655_v18, 16 }
 0x19c   : > { %vm4487_vm14 = vcmp.lt.s32.totalorder %v4486_v52, 0  ;;  %v679_v26 = vmul.u32 %v675_v38, %v651_v33  ;;  %vm684_vm15 = vc.u32 %v676_v27, %v680_v61  ;;  %v682_v14 = vshll.u32 %v678_v12, 16 }
 0x19d   : > { %v1060_v56 = vsel %vm1058_vm12, %v1045_v20, %v1059_v42  ;;  %v555_v0 = vsel %vm4487_vm14, 0, %v4486_v52  ;;  %v685_v2 = vsel %vm684_vm15, 1, %v7955_v3  ;;  %v686_v35 = vadd.s32 %v680_v61, %v676_v27 }
 0x19e   : > { %v1064_v31 = vsel %vm1057_vm11, %v1060_v56, %v1063_v43  ;;  %v556_v4 = vsub.s32 32, %v555_v0  ;;  %v560_v34 = vsub.s32 4294967266, %v555_v0  ;;  %v557_v58 = vshll.u32 %v548_v7, %v555_v0 }
 0x19f   : > { %v1065_v32 = vsel %vm1054_vm10, nan, %v1064_v31  ;;  %v670_v17 = vadd.s32 %v669_v1, %v659_v16  ;;  %v687_v10 = vadd.s32 %v685_v2, %v679_v26  ;;  %v617_v13 = vshrl.u32 %v7953_v54, %v5534_v15 }
 0x1a0   : > { %1770 = vmatpush.msra.mxu1 %v1065_v32  ;;  %v558_v19 = vshrl.u32 %v540_v11, %v556_v4  ;;  %v561_v22 = vadd.s32 127, %v560_v34  ;;  %v638_v44 = vsel %vm636_vm4, %v5620_v29, 2102212464  ;;  %vm688_vm0 = vc.u32 %v686_v35, %v682_v14 }
 0x1a1   : > { %v661_v18 = vshrl.u32 %v5663_v37, 16  ;;  %v689_v7 = vsel %vm688_vm0, 1, %v7955_v3  ;;  %v637_v39 = vsel %vm633_vm3, %v617_v13, %v5631_v28  ;;  %v681_v38 = vshrl.u32 %v677_v55, 16 }
 0x1a2   : > { %v559_v48 = vor.u32 %v558_v19, %v557_v58  ;;  %v562_v30 = vshll.u32 %v561_v22, 23  ;;  %v691_v20 = vadd.s32 %v689_v7, %v687_v10  ;;  %v639_v15 = vsel %vm635_vm6, %v5618_v51, %v638_v44 }
 0x1a3   : > { %v671_v8 = vadd.s32 %v670_v17, %v661_v18  ;;  %v683_v29 = vshrl.u32 %v678_v12, 16  ;;  %v690_v23 = vadd.s32 %v686_v35, %v682_v14  ;;  %v640_v37 = vsel %vm634_vm5, %v637_v39, %v639_v15 }
 0x1a4   : > { %v563_v33 = vor.u32 4788187, %v562_v30  ;;  %v566_v9 = vcvt.s32.f32 %v559_v48  ;;  %v692_v25 = vadd.s32 %v691_v20, %v681_v38  ;;  %vm448_vm2 = vcmp.lt.s32.totalorder %v4782_v53, 0 }
 0x1a5   : > { %vm696_vm1 = vc.u32 %v671_v8, %v690_v23  ;;  %vm5695_vm4 = vcmp.le.f32.partialorder %v446_v21, 0.7853982  ;;  %v694_v47 = vmul.u32 %v5654_v57, %v640_v37  ;;  %v570_v42 = vsub.s32 4, %v5656_v46 }
 0x1a6   : > { %v564_v40 = vand.u32 2147483647, %v563_v33  ;;  %v693_v63 = vadd.s32 %v692_v25, %v683_v29  ;;  %vm589_vm5 = vweird.f32 %v4782_v53  ;;  %v695_v39 = vadd.s32 %v690_v23, %v671_v8  ;;  %v1687_v23 = vld [vmem:[%s7936_s3 + $0x8] sm:$0xff] }
 0x1a7   : > { %v571_v21 = vsel %vm448_vm2, %v570_v42, %v5656_v46  ;;  %vm1714_vm10 = vcmask 261120   ;;  %vm603_vm11 = vcmp.lt.s32.totalorder %v4788_v59, 0  ;;  %vm5718_vm12 = vcmp.le.f32.partialorder %v601_v62, 0.7853982 }
 0x1a8   : > { %v567_v60 = vmul.f32 %v566_v9, %v564_v40  ;;  %v697_v28 = vadd.s32 1, %v693_v63  ;;  %v573_v57 = vsel %vm5695_vm4, 0, %v571_v21  ;;  %vm744_vm0 = vweird.f32 %v4788_v59 }
 0x1a9   : > { %v590_v26 = vadd.s32 3, %v573_v57 }
 0x1aa   : > { %v568_v50 = vxor.u32 2147483648, %v567_v60  ;;  %v698_v24 = vsel %vm696_vm1, %v697_v28, %v693_v63 }
 0x1ab   : > { %v699_v43 = vadd.s32 %v698_v24, %v694_v47  ;;  %v591_v35 = vand.u32 3, %v590_v26 }
 0x1ac   : > { %v569_v51 = vsel %vm448_vm2, %v568_v50, %v567_v60 }
 0x1ad   : > { %v572_v36 = vsel %vm5695_vm4, %v4782_v53, %v569_v51  ;;  %v700_v56 = vadd.s32 536870912, %v699_v43  ;;  %vm593_vm6 = vcmp.eq.s32.totalorder %v591_v35, 0  ;;  %vm596_vm7 = vcmp.eq.s32.totalorder %v591_v35, 2  ;;  %v1686_v53 = vld [vmem:[%s7936_s3] sm:$0xff] }
 0x1ae   : > { %v574_v55 = vmul.f32 %v572_v36, %v572_v36  ;;  %vm592_vm9 = vcmp.lt.s32.totalorder %v591_v35, 2  ;;  %v5741_v35 = vpop.permute.xlu2 %1706 }
 0x1af   : > { %v701_v61 = vshrl.u32 %v700_v56, 30 }
 0x1b0   : > { %v575_v11 = vmul.f32 -0.001358992, %v574_v55  ;;  %v582_v27 = vmul.f32 -0.00019511016, %v574_v55 }
 0x1b1   : > { %v702_v34 = vshll.u32 %v701_v61, 30  ;;  %v725_v47 = vsub.s32 4, %v701_v61 }
 0x1b2   : > { %v576_v0 = vadd.f32 0.041655596, %v575_v11  ;;  %v583_v12 = vadd.f32 0.008332121, %v582_v27  ;;  %v1688_v11 = vld [vmem:[%s7936_s3 + $0x10] sm:$0xff] }
 0x1b3   : > { %v703_v16 = vsub.s32 %v699_v43, %v702_v34  ;;  %v726_v43 = vsel %vm603_vm11, %v725_v47, %v701_v61  ;;  %v1689_v61 = vld [vmem:[%s7936_s3 + $0x18] sm:$0xff] }
 0x1b4   : > { %v577_v31 = vmul.f32 %v576_v0, %v574_v55  ;;  %v584_v4 = vmul.f32 %v583_v12, %v574_v55  ;;  %v728_v56 = vsel %vm5718_vm12, 0, %v726_v43 }
 0x1b5   : > { %vm704_vm3 = vcmp.lt.s32.totalorder %v703_v16, 0  ;;  %v705_v22 = vsub.s32 0, %v703_v16 }
 0x1b6   : > { %v578_v1 = vadd.f32 -0.4999988, %v577_v31  ;;  %v585_v32 = vadd.f32 -0.16666654, %v584_v4  ;;  %v745_v31 = vadd.s32 3, %v728_v56 }
 0x1b7   : > { %v706_v46 = vsel %vm704_vm3, %v705_v22, %v703_v16 }
 0x1b8   : > { %v579_v58 = vmul.f32 %v578_v1, %v574_v55  ;;  %v586_v19 = vmul.f32 %v585_v32, %v574_v55  ;;  %v707_v48 = vclz %v706_v46 }
 0x1ba   : > { %v580_v14 = vadd.f32 1.0, %v579_v58  ;;  %v587_v2 = vadd.f32 1.0, %v586_v19  ;;  %v4489_v10 = vadd.s32 4294967294, %v707_v48  ;;  %v5743_v48 = vpop.permute.xlu1 %1711 }
 0x1bc   : > { %v588_v30 = vmul.f32 %v587_v2, %v572_v36  ;;  %v597_v17 = vxor.u32 2147483648, %v580_v14  ;;  %vm4490_vm8 = vcmp.lt.s32.totalorder %v4489_v10, 0 }
 0x1bd   : > { %v710_v18 = vsel %vm4490_vm8, 0, %v4489_v10 }
 0x1be   : > { %v594_v13 = vxor.u32 2147483648, %v588_v30  ;;  %v598_v33 = vsel %vm596_vm7, %v597_v17, %v588_v30  ;;  %v711_v38 = vsub.s32 32, %v710_v18  ;;  %v715_v20 = vsub.s32 4294967266, %v710_v18  ;;  %v1697_v17 = vpop.permute.xlu2 %1696 }
 0x1bf   : > { %v712_v9 = vshll.u32 %v703_v16, %v710_v18  ;;  %v746_v16 = vand.u32 3, %v745_v31 }
 0x1c0   : > { %v595_v44 = vsel %vm593_vm6, %v580_v14, %v594_v13  ;;  %v713_v15 = vshrl.u32 %v695_v39, %v711_v38  ;;  %v716_v29 = vadd.s32 127, %v715_v20 }
 0x1c1   : > { %v599_v7 = vsel %vm592_vm9, %v595_v44, %v598_v33  ;;  %vm748_vm13 = vcmp.eq.s32.totalorder %v746_v16, 0  ;;  %vm751_vm14 = vcmp.eq.s32.totalorder %v746_v16, 2  ;;  %vm747_vm15 = vcmp.lt.s32.totalorder %v746_v16, 2 }
 0x1c2   : > { %v600_v40 = vsel %vm589_vm5, nan, %v599_v7  ;;  %v714_v25 = vor.u32 %v713_v15, %v712_v9  ;;  %v717_v60 = vshll.u32 %v716_v29, 23  ;;  %v1702_v13 = vpop.permute.xlu1 %1701 }
 0x1c3   : > { %1742 = vmatpush.msra.mxu0 %v600_v40 }
 0x1c4   : > { %v718_v37 = vor.u32 4788187, %v717_v60  ;;  %4509 = vmatmul.msk.f32.vlgmr.msra.gmra.mxu0 %vm1714_vm10, %v1686_v53  ;;  %v721_v50 = vcvt.s32.f32 %v714_v25 }
 0x1c6   : > { %v719_v63 = vand.u32 2147483647, %v718_v37 }
 0x1c8   : > { %v722_v8 = vmul.f32 %v721_v50, %v719_v63 }
 0x1ca   : > { %v723_v28 = vxor.u32 2147483648, %v722_v8 }
 0x1cc   : > { %v724_v51 = vsel %vm603_vm11, %v723_v28, %v722_v8  ;;  %4510 = vmatmul.msk.f32.gmra.mxu0 %vm1714_vm10, %v1687_v23 }
 0x1cd   : > { %v727_v42 = vsel %vm5718_vm12, %v4788_v59, %v724_v51 }
 0x1ce   : > { %v729_v36 = vmul.f32 %v727_v42, %v727_v42 }
 0x1d0   : > { %v730_v24 = vmul.f32 -0.001358992, %v729_v36  ;;  %v737_v55 = vmul.f32 -0.00019511016, %v729_v36 }
 0x1d2   : > { %v731_v62 = vadd.f32 0.041655596, %v730_v24  ;;  %v738_v27 = vadd.f32 0.008332121, %v737_v55 }
 0x1d4   : > { %v732_v21 = vmul.f32 %v731_v62, %v729_v36  ;;  %v739_v0 = vmul.f32 %v738_v27, %v729_v36  ;;  %4511 = vmatmul.msk.f32.gmra.mxu0 %vm1714_vm10, %v1688_v11 }
 0x1d6   : > { %v733_v12 = vadd.f32 -0.4999988, %v732_v21  ;;  %v740_v57 = vadd.f32 -0.16666654, %v739_v0 }
 0x1d8   : > { %v734_v4 = vmul.f32 %v733_v12, %v729_v36  ;;  %v741_v34 = vmul.f32 %v740_v57, %v729_v36 }
 0x1da   : > { %v735_v1 = vadd.f32 1.0, %v734_v4  ;;  %v742_v32 = vadd.f32 1.0, %v741_v34 }
 0x1dc   : > { %v743_v26 = vmul.f32 %v742_v32, %v727_v42  ;;  %v752_v58 = vxor.u32 2147483648, %v735_v1  ;;  %4512 = vmatmul.msk.f32.gmra.mxu0 %vm1714_vm10, %v1689_v61 }
 0x1de   : > { %v749_v19 = vxor.u32 2147483648, %v743_v26  ;;  %v753_v14 = vsel %vm751_vm14, %v752_v58, %v743_v26 }
 0x1e0   : > { %v750_v22 = vsel %vm748_vm13, %v735_v1, %v749_v19 }
 0x1e1   : > { %v754_v2 = vsel %vm747_vm15, %v750_v22, %v753_v14 }
 0x1e2   : > { %v755_v46 = vsel %vm744_vm0, nan, %v754_v2 }
 0x1e3   : > { %1771 = vmatpush.msra.mxu1 %v755_v46 }
 0x1e4   : > { %4513 = vmatmul.msk.f32.vlgmr.msra.gmra.mxu1 %vm1714_vm10, %v1686_v53 }
 0x1ec   : > { %4514 = vmatmul.msk.f32.gmra.mxu1 %vm1714_vm10, %v1687_v23 }
 0x1f4   : > { %4515 = vmatmul.msk.f32.gmra.mxu1 %vm1714_vm10, %v1688_v11 }
 0x1fc   : > { %4516 = vmatmul.msk.f32.gmra.mxu1 %vm1714_vm10, %v1689_v61 }
 0x241   : > { %v1744_v30 = vpop.f32.mrf.mxu0 }
 0x242   : > { %v5745_v10 = vadd.f32 %v1744_v30, %v1697_v17 }
 0x244   : > { %8038 = vst [vmem:[#allocation2_spill] sm:$0xff] %v5745_v10  ;;  %v1788_v59 = vand.u32 2139095040, %v5745_v10 }
 0x246   : > { %v1789_v33 = vshrl.u32 %v1788_v59, 23 }
 0x248   : > { %v4517_v39 = vadd.s32 4294967169, %v1789_v33 }
 0x249   : > { %v1747_v44 = vpop.f32.mrf.mxu0 }
 0x24a   : > { %v5748_v18 = vadd.f32 %v1747_v44, %v1702_v13  ;;  %v1795_v40 = vadd.s32 1, %v4517_v39 }
 0x24c   : > { %v2098_v7 = vand.u32 2139095040, %v5748_v18  ;;  %vm1796_vm1 = vcmp.gt.s32.totalorder %v1795_v40, 0 }
 0x24d   : > { %v1797_v50 = vsel %vm1796_vm1, %v1795_v40, 0 }
 0x24e   : > { %v2099_v38 = vshrl.u32 %v2098_v7, 23  ;;  %v5761_v51 = vand.u32 31, %v1797_v50  ;;  %v5779_v32 = vshrl.u32 %v1797_v50, 5 }
 0x250   : > { %v4523_v20 = vadd.s32 4294967169, %v2099_v38  ;;  %8040 = vst [vmem:[#allocation4_spill] sm:$0xff] %v5761_v51  ;;  %v5769_v62 = vsub.s32 32, %v5761_v51  ;;  %v1814_v16 = vshll.u32 %v7957_v6, %v5761_v51  ;;  %v1811_v30 = vshll.u32 %v7947_v49, %v5761_v51 }
 0x251   : > { %v1750_v9 = vpop.f32.mrf.mxu0  ;;  %8045 = vst [vmem:[#allocation9_spill] sm:$0xff] %v5779_v32  ;;  %vm1820_vm6 = vcmp.lt.s32.totalorder %v5779_v32, 4 }
 0x252   : > { %v5752_v15 = vadd.f32 %v1750_v9, %v5741_v35  ;;  %v2105_v60 = vadd.s32 1, %v4523_v20  ;;  %8043 = vst [vmem:[#allocation7_spill] sm:$0xff] %v5769_v62  ;;  %v1815_v31 = vshrl.u32 %v8024_v5, %v5769_v62  ;;  %v1812_v14 = vshrl.u32 %v7957_v6, %v5769_v62 }
 0x254   : > { %v2408_v53 = vand.u32 2139095040, %v5752_v15  ;;  %vm2106_vm2 = vcmp.gt.s32.totalorder %v2105_v60, 0  ;;  %v1816_v2 = vor.u32 %v1815_v31, %v1814_v16  ;;  %v5807_v40 = vor.u32 %v1812_v14, %v1811_v30 }
 0x255   : > { %v2107_v42 = vsel %vm2106_vm2, %v2105_v60, 0 }
 0x256   : > { %v2409_v37 = vshrl.u32 %v2408_v53, 23  ;;  %v5766_v43 = vand.u32 31, %v2107_v42  ;;  %8048 = vst [vmem:[#allocation12_spill] sm:$0xff] %v5807_v40  ;;  %v5811_v9 = vsel %vm1820_vm6, %v1816_v2, 1326507024 }
 0x257   : > { %8049 = vst [vmem:[#allocation13_spill] sm:$0xff] %v5811_v9 }
 0x258   : > { %v4529_v8 = vadd.s32 4294967169, %v2409_v37  ;;  %8042 = vst [vmem:[#allocation6_spill] sm:$0xff] %v5766_v43  ;;  %v5775_v57 = vsub.s32 32, %v5766_v43  ;;  %v2124_v59 = vshll.u32 %v7957_v6, %v5766_v43 }
 0x259   : > { %v1753_v23 = vpop.f32.mrf.mxu0 }
 0x25a   : > { %v2415_v28 = vadd.s32 1, %v4529_v8  ;;  %v5759_v52 = vadd.f32 %v1753_v23, %v5743_v48  ;;  %8044 = vst [vmem:[#allocation8_spill] sm:$0xff] %v5775_v57  ;;  %v2122_v58 = vshrl.u32 %v7957_v6, %v5775_v57  ;;  %v2125_v19 = vshrl.u32 %v8024_v5, %v5775_v57 }
 0x25c   : > { %vm2416_vm4 = vcmp.gt.s32.totalorder %v2415_v28, 0  ;;  %v2718_v55 = vand.u32 2139095040, %v5759_v52  ;;  %v2126_v38 = vor.u32 %v2125_v19, %v2124_v59 }
 0x25d   : > { %v2417_v11 = vsel %vm2416_vm4, %v2415_v28, 0 }
 0x25e   : > { %v2719_v21 = vshrl.u32 %v2718_v55, 23  ;;  %v5772_v0 = vand.u32 31, %v2417_v11  ;;  %v5815_v37 = vshrl.u32 %v2417_v11, 5 }
 0x260   : > { %v4535_v12 = vadd.s32 4294967169, %v2719_v21  ;;  %v5784_v26 = vsub.s32 32, %v5772_v0  ;;  %v2431_v60 = vshll.u32 %v7947_v49, %v5772_v0  ;;  %vm2440_vm9 = vcmp.lt.s32.totalorder %v5815_v37, 4 }
 0x261   : > { %v1773_v29 = vpop.f32.mrf.mxu1 }
 0x262   : > { %v5754_v25 = vadd.f32 %v1773_v29, %v1697_v17  ;;  %v2725_v1 = vadd.s32 1, %v4535_v12  ;;  %v2121_v17 = vshll.u32 %v7947_v49, %v5766_v43  ;;  %v2432_v44 = vshrl.u32 %v7957_v6, %v5784_v26 }
 0x263   : > { %v2435_v20 = vshrl.u32 %v8024_v5, %v5784_v26  ;;  %v7946_v12 = vand.u32 2147483647, %v5759_v52 }
 0x264   : > { %8039 = vst [vmem:[#allocation3_spill] sm:$0xff] %v5754_v25  ;;  %v1943_v63 = vand.u32 2139095040, %v5754_v25  ;;  %vm2726_vm3 = vcmp.gt.s32.totalorder %v2725_v1, 0  ;;  %v5803_v39 = vor.u32 %v2122_v58, %v2121_v17  ;;  %v5825_v28 = vor.u32 %v2432_v44, %v2431_v60 }
 0x265   : > { %v2727_v22 = vsel %vm2726_vm3, %v2725_v1, 0  ;;  %v2722_v59 = vand.u32 8388607, %v7946_v12 }
 0x266   : > { %v1944_v47 = vshrl.u32 %v1943_v63, 23  ;;  %v2729_v33 = vand.u32 31, %v2727_v22  ;;  %8047 = vst [vmem:[#allocation11_spill] sm:$0xff] %v5803_v39  ;;  %v2434_v63 = vshll.u32 %v7957_v6, %v5772_v0  ;;  %v2728_v58 = vshrl.u32 %v2727_v22, 5 }
 0x268   : > { %v4520_v27 = vadd.s32 4294967169, %v1944_v47  ;;  %v2730_v8 = vsub.s32 32, %v2729_v33  ;;  %v2741_v21 = vshll.u32 %v7947_v49, %v2729_v33  ;;  %v2735_v44 = vshll.u32 %v7951_v41, %v2729_v33 }
 0x269   : > { %v1776_v36 = vpop.f32.mrf.mxu1  ;;  %vm2750_vm11 = vcmp.lt.s32.totalorder %v2728_v58, 4  ;;  %vm2747_vm13 = vcmp.lt.s32.totalorder %v2728_v58, 1  ;;  %vm2749_vm14 = vcmp.lt.s32.totalorder %v2728_v58, 3  ;;  %vm2748_vm15 = vcmp.lt.s32.totalorder %v2728_v58, 2 }
 0x26a   : > { %v5763_v24 = vadd.f32 %v1776_v36, %v1702_v13  ;;  %v1950_v4 = vadd.s32 1, %v4520_v27  ;;  %v5799_v13 = vshrl.u32 %v2107_v42, 5  ;;  %v2742_v55 = vshrl.u32 %v7957_v6, %v2730_v8 }
 0x26b   : > { %v2745_v27 = vshrl.u32 %v8024_v5, %v2730_v8  ;;  %v2733_v30 = vshrl.u32 %v7951_v41, %v2730_v8  ;;  %v2739_v22 = vshrl.u32 %v7947_v49, %v2730_v8  ;;  %v8056_v58 = vmov 0  }
 0x26c   : > { %8041 = vst [vmem:[#allocation5_spill] sm:$0xff] %v5763_v24  ;;  %v2253_v56 = vand.u32 2139095040, %v5763_v24  ;;  %vm1951_vm5 = vcmp.gt.s32.totalorder %v1950_v4, 0  ;;  %vm2130_vm7 = vcmp.lt.s32.totalorder %v5799_v13, 4  ;;  %v2743_v19 = vor.u32 %v2742_v55, %v2741_v21 }
 0x26d   : > { %8046 = vst [vmem:[#allocation10_spill] sm:$0xff] %v5799_v13  ;;  %v1952_v7 = vsel %vm1951_vm5, %v1950_v4, 0  ;;  %v5833_v42 = vsel %vm2130_vm7, %v5803_v39, 920167782  ;;  %v5837_v36 = vsel %vm2130_vm7, %v2126_v38, 1326507024  ;;  %v2731_v21 = vshrl.u32 %v7953_v54, %v2730_v8 }
 0x26e   : > { %v2254_v34 = vshrl.u32 %v2253_v56, 23  ;;  %v5822_v23 = vand.u32 31, %v1952_v7  ;;  %8051 = vst [vmem:[#allocation15_spill] sm:$0xff] %v5833_v42  ;;  %v5840_v11 = vshrl.u32 %v1952_v7, 5  ;;  %v5854_v4 = vsel %vm2440_vm9, %v5825_v28, 920167782 }
 0x26f   : > { %8052 = vst [vmem:[#allocation16_spill] sm:$0xff] %v5837_v36  ;;  %v2736_v7 = vshrl.u32 %v7949_v45, %v2730_v8 }
 0x270   : > { %v4526_v46 = vadd.s32 4294967169, %v2254_v34  ;;  %8050 = vst [vmem:[#allocation14_spill] sm:$0xff] %v5822_v23  ;;  %v5849_v31 = vsub.s32 32, %v5822_v23  ;;  %v2744_v34 = vshll.u32 %v7957_v6, %v2729_v33 }
 0x271   : > { %v1779_v61 = vpop.f32.mrf.mxu1  ;;  %8053 = vst [vmem:[#allocation17_spill] sm:$0xff] %v5840_v11 }
 0x272   : > { %v2260_v29 = vadd.s32 1, %v4526_v46  ;;  %v5820_v50 = vadd.f32 %v1779_v61, %v5741_v35  ;;  %v2436_v35 = vor.u32 %v2435_v20, %v2434_v63  ;;  %8054 = vst [vmem:[#allocation18_spill] sm:$0xff] %v5849_v31  ;;  %v2746_v14 = vor.u32 %v2745_v27, %v2744_v34 }
 0x273   : > { %v2732_v46 = vshll.u32 %v7953_v54, %v2729_v33  ;;  %v2737_v63 = vor.u32 %v2736_v7, %v2735_v44 }
 0x274   : > { %vm2261_vm8 = vcmp.gt.s32.totalorder %v2260_v29, 0  ;;  %v2563_v56 = vand.u32 2139095040, %v5820_v50  ;;  %v5859_v16 = vsel %vm2440_vm9, %v2436_v35, 1326507024  ;;  %v2756_v35 = vsel %vm2750_vm11, %v2743_v19, 920167782 }
 0x275   : > { %v2262_v1 = vsel %vm2261_vm8, %v2260_v29, 0  ;;  %v2734_v20 = vor.u32 %v2733_v30, %v2732_v46  ;;  %v2738_v29 = vshll.u32 %v7949_v45, %v2729_v33  ;;  %v2760_v55 = vsel %vm2750_vm11, %v2746_v14, 1326507024 }
 0x276   : > { %v2564_v17 = vshrl.u32 %v2563_v56, 23  ;;  %v5869_v60 = vshrl.u32 %v2262_v1, 5  ;;  %v2723_v56 = vor.u32 8388608, %v2722_v59  ;;  %v2761_v30 = vsel %vm2749_vm14, %v2743_v19, %v2760_v55 }
 0x277   : > { %v2740_v27 = vor.u32 %v2739_v22, %v2738_v29  ;;  %v2751_v44 = vsel %vm2747_vm13, %v2731_v21, %v2734_v20 }
 0x279   : > { %v1782_v53 = vpop.f32.mrf.mxu1  ;;  %v2752_v33 = vsel %vm2750_vm11, %v2740_v27, 2102212464  ;;  %v2757_v46 = vsel %vm2749_vm14, %v2740_v27, %v2756_v35 }
 0x27a   : > { %v5828_v47 = vadd.f32 %v1782_v53, %v5743_v48  ;;  %v5871_v53 = vand.u32 31, %v2262_v1  ;;  %v2759_v1 = vsel %vm2747_vm13, %v2737_v63, %v2740_v27  ;;  %v2753_v59 = vsel %vm2749_vm14, %v2737_v63, %v2752_v33 }
 0x27b   : > { %v2762_v7 = vsel %vm2748_vm15, %v2759_v1, %v2761_v30 }
 0x27c   : > { %v2873_v48 = vand.u32 2139095040, %v5828_v47  ;;  %8055 = vst [vmem:[#allocation19_spill] sm:$0xff] %v5871_v53  ;;  %v2766_v29 = vand.u32 65535, %v2762_v7  ;;  %v2767_v22 = vshrl.u32 %v2762_v7, 16  ;;  %v5894_v27 = vsub.s32 32, %v5871_v53 }
 0x27d   : > { %v5904_v33 = vshll.u32 %v7957_v6, %v5871_v53  ;;  %v5910_v7 = vsel %vm2748_vm15, %v2751_v44, %v2753_v59  ;;  %v7965_v11 = vand.u32 2147483647, %v5828_v47 }
 0x27e   : > { %v2874_v61 = vshrl.u32 %v2873_v48, 23 }
 0x280   : > { %v4538_v2 = vadd.s32 4294967169, %v2874_v61  ;;  %v2755_v61 = vsel %vm2747_vm13, %v2734_v20, %v2737_v63 }
 0x281   : > { %v2758_v8 = vsel %vm2748_vm15, %v2755_v61, %v2757_v46 }
 0x282   : > { %v2880_v38 = vadd.s32 1, %v4538_v2  ;;  %v4532_v2 = vadd.s32 4294967169, %v2564_v17  ;;  %v2789_v55 = vshrl.u32 %v2758_v8, 16  ;;  %v2788_v21 = vand.u32 65535, %v2758_v8 }
 0x284   : > { %vm2881_vm12 = vcmp.gt.s32.totalorder %v2880_v38, 0  ;;  %v2570_v30 = vadd.s32 1, %v4532_v2 }
 0x285   : > { %v2882_v48 = vsel %vm2881_vm12, %v2880_v38, 0  ;;  %v5883_v38 = vshll.u32 %v2723_v56, 8 }
 0x286   : > { %v5874_v34 = vand.u32 31, %v2882_v48  ;;  %v5876_v12 = vshrl.u32 %v2882_v48, 5  ;;  %v5898_v48 = vshll.u32 %v7947_v49, %v5871_v53  ;;  %vm2571_vm2 = vcmp.gt.s32.totalorder %v2570_v30, 0 }
 0x287   : > { %v2764_v20 = vand.u32 65535, %v5883_v38  ;;  %v2765_v63 = vshrl.u32 %v5883_v38, 16 }
 0x288   : > { %v5879_v14 = vsub.s32 32, %v5874_v34  ;;  %v2896_v17 = vshll.u32 %v7947_v49, %v5874_v34  ;;  %v2899_v61 = vshll.u32 %v7957_v6, %v5874_v34  ;;  %vm2905_vm0 = vcmp.lt.s32.totalorder %v5876_v12, 4 }
 0x289   : > { %v2769_v46 = vmul.u32 %v2767_v22, %v2764_v20  ;;  %v2770_v1 = vmul.u32 %v2766_v29, %v2765_v63  ;;  %v2791_v49 = vmul.u32 %v2789_v55, %v2764_v20  ;;  %v2790_v54 = vmul.u32 %v2788_v21, %v2764_v20 }
 0x28a   : > { %v2897_v19 = vshrl.u32 %v7957_v6, %v5879_v14  ;;  %v2900_v35 = vshrl.u32 %v8024_v5, %v5879_v14  ;;  %v2792_v3 = vmul.u32 %v2788_v21, %v2765_v63  ;;  %v2793_v59 = vmul.u32 %v2789_v55, %v2765_v63 }
 0x28b   : > { %v2772_v8 = vshll.u32 %v2769_v46, 16  ;;  %v2794_v6 = vshll.u32 %v2791_v49, 16  ;;  %v2774_v25 = vshll.u32 %v2770_v1, 16  ;;  %v2773_v40 = vshrl.u32 %v2769_v46, 16 }
 0x28c   : > { %v5900_v56 = vor.u32 %v2897_v19, %v2896_v17  ;;  %v2901_v45 = vor.u32 %v2900_v35, %v2899_v61  ;;  %v2768_v17 = vmul.u32 %v2766_v29, %v2764_v20  ;;  %v2771_v19 = vmul.u32 %v2767_v22, %v2765_v63 }
 0x28d   : > { %v2796_v35 = vshll.u32 %v2792_v3, 16  ;;  %vm2798_vm4 = vc.u32 %v2790_v54, %v2794_v6  ;;  %v2800_v61 = vadd.s32 %v2794_v6, %v2790_v54  ;;  %v2795_v32 = vshrl.u32 %v2791_v49, 16 }
 0x28e   : > { %v2911_v41 = vsel %vm2905_vm0, %v5900_v56, 920167782  ;;  %vm2776_vm1 = vc.u32 %v2768_v17, %v2772_v8  ;;  %v2778_v2 = vadd.s32 %v2772_v8, %v2768_v17  ;;  %v2799_v22 = vsel %vm2798_vm4, 1, %v8056_v58 }
 0x28f   : > { %v2777_v44 = vsel %vm2776_vm1, 1, %v8056_v58  ;;  %v2801_v21 = vadd.s32 %v2799_v22, %v2793_v59  ;;  %v2877_v17 = vand.u32 8388607, %v7965_v11  ;;  %v2775_v8 = vshrl.u32 %v2770_v1, 16 }
 0x290   : > { %v2779_v29 = vadd.s32 %v2777_v44, %v2771_v19  ;;  %vm2780_vm3 = vc.u32 %v2778_v2, %v2774_v25  ;;  %vm2802_vm5 = vc.u32 %v2800_v61, %v2796_v35  ;;  %v8057_v19 = vmov 683565275  }
 0x291   : > { %v2781_v20 = vsel %vm2780_vm3, 1, %v8056_v58  ;;  %v2803_v63 = vsel %vm2802_vm5, 1, %v8056_v58  ;;  %v2878_v55 = vor.u32 8388608, %v2877_v17  ;;  %v2887_v25 = vshll.u32 %v8057_v19, %v5874_v34 }
 0x292   : > { %v2783_v9 = vadd.s32 %v2781_v20, %v2779_v29  ;;  %v8058_v2 = vmov 2475754826   ;;  %v2805_v46 = vadd.s32 %v2803_v63, %v2801_v21  ;;  %v8059_v59 = vmov 2131351028  }
 0x293   : > { %v2888_v54 = vshrl.u32 %v8058_v2, %v5879_v14  ;;  %v2890_v44 = vshll.u32 %v8058_v2, %v5874_v34  ;;  %v2891_v1 = vshrl.u32 %v8059_v59, %v5879_v14  ;;  %v2915_v49 = vsel %vm2905_vm0, %v2901_v45, 1326507024 }
 0x294   : > { %v2784_v6 = vadd.s32 %v2783_v9, %v2773_v40  ;;  %v2893_v22 = vshll.u32 %v8059_v59, %v5874_v34  ;;  %v8060_v20 = vmov 2102212464   ;;  %v2797_v40 = vshrl.u32 %v2792_v3, 16 }
 0x295   : > { %v2889_v29 = vor.u32 %v2888_v54, %v2887_v25  ;;  %v2894_v17 = vshrl.u32 %v8060_v20, %v5879_v14  ;;  %v2806_v9 = vadd.s32 %v2805_v46, %v2795_v32  ;;  %v2892_v21 = vor.u32 %v2891_v1, %v2890_v44 }
 0x296   : > { %v5936_v11 = vadd.s32 %v2784_v6, %v2775_v8  ;;  %v5938_v63 = vadd.s32 %v2800_v61, %v2796_v35  ;;  %vm2902_vm8 = vcmp.lt.s32.totalorder %v5876_v12, 1  ;;  %v5941_v62 = vshll.u32 %v2878_v55, 8 }
 0x297   : > { %v2895_v51 = vor.u32 %v2894_v17, %v2893_v22  ;;  %v2807_v45 = vadd.s32 %v2806_v9, %v2797_v40  ;;  %vm2903_vm11 = vcmp.lt.s32.totalorder %v5876_v12, 2  ;;  %vm2904_vm12 = vcmp.lt.s32.totalorder %v5876_v12, 3 }
 0x298   : > { %v2910_v34 = vsel %vm2902_vm8, %v2889_v29, %v2892_v21  ;;  %vm2810_vm13 = vc.u32 %v5936_v11, %v5938_v63  ;;  %v2916_v35 = vsel %vm2904_vm12, %v5900_v56, %v2915_v49  ;;  %v2572_v61 = vsel %vm2571_vm2, %v2570_v30, 0 }
 0x299   : > { %v2912_v3 = vsel %vm2904_vm12, %v2895_v51, %v2911_v41  ;;  %v2914_v32 = vsel %vm2902_vm8, %v2892_v21, %v2895_v51  ;;  %v2811_v8 = vadd.s32 1, %v2807_v45  ;;  %v2808_v54 = vmul.u32 %v5883_v38, %v5910_v7 }
 0x29a   : > { %v2913_v55 = vsel %vm2903_vm11, %v2910_v34, %v2912_v3  ;;  %v2917_v25 = vsel %vm2903_vm11, %v2914_v32, %v2916_v35  ;;  %v2919_v41 = vand.u32 65535, %v5941_v62  ;;  %v2920_v6 = vshrl.u32 %v5941_v62, 16 }
 0x29b   : > { %v2921_v46 = vand.u32 65535, %v2917_v25  ;;  %v2812_v44 = vsel %vm2810_vm13, %v2811_v8, %v2807_v45  ;;  %v2922_v1 = vshrl.u32 %v2917_v25, 16  ;;  %v2943_v56 = vand.u32 65535, %v2913_v55 }
 0x29c   : > { %v2944_v49 = vshrl.u32 %v2913_v55, 16  ;;  %v8061_v30 = vmov 920167782   ;;  %v5969_v17 = vshrl.u32 %v2572_v61, 5  ;;  %v2813_v40 = vadd.s32 %v2812_v44, %v2808_v54 }
 0x29d   : > { %v5967_v22 = vshrl.u32 %v8061_v30, %v5894_v27  ;;  %v2925_v9 = vmul.u32 %v2921_v46, %v2920_v6  ;;  %v5971_v34 = vand.u32 31, %v2572_v61  ;;  %v2886_v38 = vshrl.u32 %v8057_v19, %v5879_v14 }
 0x29e   : > { %v2924_v7 = vmul.u32 %v2922_v1, %v2919_v41  ;;  %v2946_v3 = vmul.u32 %v2944_v49, %v2919_v41  ;;  %v2814_v32 = vadd.s32 536870912, %v2813_v40  ;;  %v2907_v45 = vsel %vm2905_vm0, %v2895_v51, 2102212464 }
 0x29f   : > { %v2923_v35 = vmul.u32 %v2921_v46, %v2919_v41  ;;  %v2947_v8 = vmul.u32 %v2943_v56, %v2920_v6  ;;  %v2926_v55 = vmul.u32 %v2922_v1, %v2920_v6  ;;  %v2945_v10 = vmul.u32 %v2943_v56, %v2919_v41 }
 0x2a0   : > { %v2927_v25 = vshll.u32 %v2924_v7, 16  ;;  %v2949_v31 = vshll.u32 %v2946_v3, 16  ;;  %v2815_v23 = vshrl.u32 %v2814_v32, 30  ;;  %v2929_v54 = vshll.u32 %v2925_v9, 16 }
 0x2a1   : > { %v2948_v44 = vmul.u32 %v2944_v49, %v2920_v6  ;;  %v2951_v61 = vshll.u32 %v2947_v8, 16  ;;  %v2906_v42 = vsel %vm2902_vm8, %v2886_v38, %v2889_v29  ;;  %vm2717_vm0 = vcmp.lt.s32.totalorder %v5759_v52, 0 }
 0x2a2   : > { %vm2931_vm14 = vc.u32 %v2923_v35, %v2927_v25  ;;  %v2933_v53 = vadd.s32 %v2927_v25, %v2923_v35  ;;  %vm2953_vm15 = vc.u32 %v2945_v10, %v2949_v31  ;;  %v2955_v14 = vadd.s32 %v2949_v31, %v2945_v10 }
 0x2a3   : > { %v2816_v24 = vshll.u32 %v2815_v23, 30  ;;  %v2932_v51 = vsel %vm2931_vm14, 1, %v8056_v58  ;;  %v2954_v46 = vsel %vm2953_vm15, 1, %v8056_v58  ;;  %v2908_v56 = vsel %vm2904_vm12, %v2892_v21, %v2907_v45 }
 0x2a4   : > { %v2934_v41 = vadd.s32 %v2932_v51, %v2926_v55  ;;  %vm2935_vm1 = vc.u32 %v2933_v53, %v2929_v54  ;;  %v2956_v1 = vadd.s32 %v2954_v46, %v2948_v44  ;;  %vm2957_vm2 = vc.u32 %v2955_v14, %v2951_v61 }
 0x2a5   : > { %v5982_v6 = vsub.s32 %v2813_v40, %v2816_v24  ;;  %v2936_v10 = vsel %vm2935_vm1, 1, %v8056_v58  ;;  %v2958_v31 = vsel %vm2957_vm2, 1, %v8056_v58  ;;  %v2928_v29 = vshrl.u32 %v2924_v7, 16 }
 0x2a6   : > { %v2938_v49 = vadd.s32 %v2936_v10, %v2934_v41  ;;  %v2950_v38 = vshrl.u32 %v2946_v3, 16  ;;  %v2960_v32 = vadd.s32 %v2958_v31, %v2956_v1  ;;  %v5989_v35 = vsub.s32 32, %v5971_v34 }
 0x2a7   : > { %v2586_v53 = vshll.u32 %v8060_v20, %v5971_v34  ;;  %v8062_v24 = vand.u32 2147483647, %v5759_v52  ;;  %vm2818_vm3 = vcmp.lt.s32.totalorder %v5982_v6, 0  ;;  %v2819_v21 = vsub.s32 0, %v5982_v6 }
 0x2a8   : > { %v2930_v7 = vshrl.u32 %v2925_v9, 16  ;;  %v2939_v45 = vadd.s32 %v2938_v49, %v2928_v29  ;;  %v2952_v3 = vshrl.u32 %v2947_v8, 16  ;;  %v2961_v55 = vadd.s32 %v2960_v32, %v2950_v38 }
 0x2a9   : > { %vm5995_vm4 = vcmp.le.f32.partialorder %v8062_v24, 0.7853982  ;;  %v2820_v25 = vsel %vm2818_vm3, %v2819_v21, %v5982_v6  ;;  %v2839_v54 = vsub.s32 4, %v2815_v23  ;;  %v2909_v44 = vsel %vm2903_vm11, %v2906_v42, %v2908_v56 }
 0x2aa   : > { %v7979_v51 = vand.u32 2147483647, %v5752_v15  ;;  %v2821_v46 = vclz %v2820_v25  ;;  %v6005_v41 = vadd.s32 %v2939_v45, %v2930_v7  ;;  %v6007_v1 = vadd.s32 %v2955_v14, %v2951_v61 }
 0x2ab   : > { %v2962_v10 = vadd.s32 %v2961_v55, %v2952_v3  ;;  %v2587_v9 = vshrl.u32 %v8061_v30, %v5989_v35  ;;  %v2589_v8 = vshll.u32 %v8061_v30, %v5971_v34  ;;  %v2590_v31 = vshrl.u32 %v8024_v5, %v5989_v35 }
 0x2ac   : > { %v2809_v42 = vadd.s32 %v5938_v63, %v5936_v11  ;;  %v4536_v12 = vadd.s32 4294967294, %v2821_v46  ;;  %v2963_v56 = vmul.u32 %v5941_v62, %v2909_v44  ;;  %vm2965_vm5 = vc.u32 %v6005_v41, %v6007_v1 }
 0x2ad   : > { %v2966_v61 = vadd.s32 1, %v2962_v10  ;;  %v2840_v14 = vsel %vm2717_vm0, %v2839_v54, %v2815_v23  ;;  %v2412_v29 = vand.u32 8388607, %v7979_v51  ;;  %v2422_v49 = vshll.u32 %v8057_v19, %v5772_v0 }
 0x2ae   : > { %v2423_v38 = vshrl.u32 %v8058_v2, %v5784_v26  ;;  %vm2595_vm8 = vcmp.lt.s32.totalorder %v5969_v17, 4  ;;  %vm4537_vm11 = vcmp.lt.s32.totalorder %v4536_v12, 0  ;;  %v2425_v11 = vshll.u32 %v8058_v2, %v5772_v0 }
 0x2af   : > { %v2967_v62 = vsel %vm2965_vm5, %v2966_v61, %v2962_v10  ;;  %v2426_v63 = vshrl.u32 %v8059_v59, %v5784_v26  ;;  %v2824_v23 = vsel %vm4537_vm11, 0, %v4536_v12  ;;  %v2428_v24 = vshll.u32 %v8059_v59, %v5772_v0 }
 0x2b0   : > { %v2968_v32 = vadd.s32 %v2967_v62, %v2963_v56  ;;  %v2429_v21 = vshrl.u32 %v8060_v20, %v5784_v26  ;;  %v2825_v7 = vsub.s32 32, %v2824_v23  ;;  %v2829_v45 = vsub.s32 4294967266, %v2824_v23 }
 0x2b1   : > { %v2842_v3 = vsel %vm5995_vm4, 0, %v2840_v14  ;;  %v6039_v55 = vor.u32 %v2426_v63, %v2425_v11  ;;  %v2413_v54 = vor.u32 8388608, %v2412_v29  ;;  %v2424_v44 = vor.u32 %v2423_v38, %v2422_v49 }
 0x2b2   : > { %v2969_v25 = vadd.s32 536870912, %v2968_v32  ;;  %v2430_v46 = vor.u32 %v2429_v21, %v2428_v24  ;;  %v2826_v10 = vshll.u32 %v5982_v6, %v2824_v23  ;;  %v2827_v12 = vshrl.u32 %v2809_v42, %v2825_v7 }
 0x2b3   : > { %v2830_v56 = vadd.s32 127, %v2829_v45  ;;  %vm2437_vm12 = vcmp.lt.s32.totalorder %v5815_v37, 1  ;;  %v6043_v0 = vor.u32 %v2587_v9, %v2586_v53  ;;  %v2591_v61 = vor.u32 %v2590_v31, %v2589_v8 }
 0x2b4   : > { %v2970_v62 = vshrl.u32 %v2969_v25, 30  ;;  %v2449_v14 = vsel %vm2437_vm12, %v6039_v55, %v2430_v46  ;;  %v2828_v11 = vor.u32 %v2827_v12, %v2826_v10  ;;  %v2859_v51 = vadd.s32 3, %v2842_v3 }
 0x2b5   : > { %v2831_v63 = vshll.u32 %v2830_v56, 23  ;;  %vm2439_vm13 = vcmp.lt.s32.totalorder %v5815_v37, 3  ;;  %vm2438_vm14 = vcmp.lt.s32.totalorder %v5815_v37, 2  ;;  %v2445_v6 = vsel %vm2437_vm12, %v2424_v44, %v6039_v55 }
 0x2b6   : > { %v2971_v29 = vshll.u32 %v2970_v62, 30  ;;  %v2451_v53 = vsel %vm2439_vm13, %v5825_v28, %v5859_v16  ;;  %v2447_v8 = vsel %vm2439_vm13, %v2430_v46, %v5854_v4  ;;  %v6062_v42 = vshll.u32 %v2413_v54, 8 }
 0x2b7   : > { %v2832_v9 = vor.u32 4788187, %v2831_v63  ;;  %v2452_v31 = vsel %vm2438_vm14, %v2449_v14, %v2451_v53  ;;  %v6066_v49 = vsel %vm2595_vm8, %v2591_v61, 1326507024  ;;  %v2835_v28 = vcvt.s32.f32 %v2828_v11 }
 0x2b8   : > { %v6068_v38 = vsub.s32 %v2968_v32, %v2971_v29  ;;  %v2456_v23 = vand.u32 65535, %v2452_v31  ;;  %v2457_v24 = vshrl.u32 %v2452_v31, 16  ;;  %vm2872_vm15 = vcmp.lt.s32.totalorder %v5828_v47, 0 }
 0x2b9   : > { %v2833_v21 = vand.u32 2147483647, %v2832_v9  ;;  %v2454_v16 = vand.u32 65535, %v6062_v42  ;;  %v2448_v7 = vsel %vm2438_vm14, %v2445_v6, %v2447_v8  ;;  %v2455_v45 = vshrl.u32 %v6062_v42, 16 }
 0x2ba   : > { %vm2973_vm1 = vcmp.lt.s32.totalorder %v6068_v38, 0  ;;  %v2974_v4 = vsub.s32 0, %v6068_v38  ;;  %v6077_v32 = vand.u32 3, %v2859_v51  ;;  %v2421_v25 = vshrl.u32 %v8057_v19, %v5784_v26 }
 0x2bb   : > { %v2836_v3 = vmul.f32 %v2835_v28, %v2833_v21  ;;  %v2459_v54 = vmul.u32 %v2457_v24, %v2454_v16  ;;  %v2964_v10 = vadd.s32 %v6007_v1, %v6005_v41  ;;  %v2458_v56 = vmul.u32 %v2456_v23, %v2454_v16 }
 0x2bc   : > { %v2975_v12 = vsel %vm2973_vm1, %v2974_v4, %v6068_v38  ;;  %v6084_v61 = vmul.u32 %v2456_v23, %v2455_v45  ;;  %v2479_v29 = vshrl.u32 %v2448_v7, 16  ;;  %v2994_v6 = vsub.s32 4, %v2970_v62 }
 0x2bd   : > { %v2837_v14 = vxor.u32 2147483648, %v2836_v3  ;;  %v2976_v11 = vclz %v2975_v12  ;;  %v2462_v63 = vshll.u32 %v2459_v54, 16  ;;  %v6088_v51 = vsel %vm2437_vm12, %v2421_v25, %v2424_v44 }
 0x2be   : > { %v2442_v26 = vsel %vm2440_vm9, %v2430_v46, 2102212464  ;;  %v2478_v53 = vand.u32 65535, %v2448_v7  ;;  %v2461_v9 = vmul.u32 %v2457_v24, %v2455_v45  ;;  %v8065_v31 = vand.u32 2147483647, %v5828_v47 }
 0x2bf   : > { %v2838_v41 = vsel %vm2717_vm0, %v2837_v14, %v2836_v3  ;;  %v4539_v1 = vadd.s32 4294967294, %v2976_v11  ;;  %vm2466_vm2 = vc.u32 %v2458_v56, %v2462_v63  ;;  %v2464_v46 = vshll.u32 %v6084_v61, 16 }
 0x2c0   : > { %v6097_v8 = vsel %vm5995_vm4, %v5759_v52, %v2838_v41  ;;  %vm6101_vm3 = vcmp.le.f32.partialorder %v8065_v31, 0.7853982  ;;  %v2467_v23 = vsel %vm2466_vm2, 1, %v8056_v58  ;;  %v2468_v21 = vadd.s32 %v2462_v63, %v2458_v56 }
 0x2c1   : > { %v2843_v24 = vmul.f32 %v6097_v8, %v6097_v8  ;;  %vm4540_vm9 = vcmp.lt.s32.totalorder %v4539_v1, 0  ;;  %v2469_v28 = vadd.s32 %v2467_v23, %v2461_v9  ;;  %v2481_v4 = vmul.u32 %v2479_v29, %v2454_v16 }
 0x2c2   : > { %v2979_v40 = vsel %vm4540_vm9, 0, %v4539_v1  ;;  %v2995_v7 = vsel %vm2872_vm15, %v2994_v6, %v2970_v62  ;;  %vm2470_vm0 = vc.u32 %v2468_v21, %v2464_v46  ;;  %v2480_v3 = vmul.u32 %v2478_v53, %v2454_v16 }
 0x2c3   : > { %v2844_v25 = vmul.f32 -0.001358992, %v2843_v24  ;;  %v2851_v12 = vmul.f32 -0.00019511016, %v2843_v24  ;;  %v2980_v14 = vsub.s32 32, %v2979_v40  ;;  %v2482_v11 = vmul.u32 %v2478_v53, %v2455_v45 }
 0x2c4   : > { %v2981_v41 = vshll.u32 %v6068_v38, %v2979_v40  ;;  %v2984_v31 = vsub.s32 4294967266, %v2979_v40  ;;  %v2471_v56 = vsel %vm2470_vm0, 1, %v8056_v58  ;;  %v2484_v63 = vshll.u32 %v2481_v4, 16 }
 0x2c5   : > { %v2845_v30 = vadd.f32 0.041655596, %v2844_v25  ;;  %v2852_v39 = vadd.f32 0.008332121, %v2851_v12  ;;  %v2982_v9 = vshrl.u32 %v2964_v10, %v2980_v14  ;;  %v2473_v23 = vadd.s32 %v2471_v56, %v2469_v28 }
 0x2c6   : > { %v2985_v1 = vadd.s32 127, %v2984_v31  ;;  %v2463_v36 = vshrl.u32 %v2459_v54, 16  ;;  %v2483_v13 = vmul.u32 %v2479_v29, %v2455_v45  ;;  %vm2488_vm4 = vc.u32 %v2480_v3, %v2484_v63 }
 0x2c7   : > { %v2846_v62 = vmul.f32 %v2845_v30, %v2843_v24  ;;  %v2853_v16 = vmul.f32 %v2852_v39, %v2843_v24  ;;  %v2983_v6 = vor.u32 %v2982_v9, %v2981_v41  ;;  %v2486_v46 = vshll.u32 %v2482_v11, 16 }
 0x2c8   : > { %v2986_v21 = vshll.u32 %v2985_v1, 23  ;;  %v2474_v53 = vadd.s32 %v2473_v23, %v2463_v36  ;;  %v2489_v38 = vsel %vm2488_vm4, 1, %v8056_v58  ;;  %v2490_v40 = vadd.s32 %v2484_v63, %v2480_v3 }
 0x2c9   : > { %v2847_v43 = vadd.f32 -0.4999988, %v2846_v62  ;;  %v2854_v57 = vadd.f32 -0.16666654, %v2853_v16  ;;  %v2997_v25 = vsel %vm6101_vm3, 0, %v2995_v7  ;;  %v2443_v54 = vsel %vm2439_vm13, %v6039_v55, %v2442_v26 }
 0x2ca   : > { %vm2862_vm5 = vcmp.eq.s32.totalorder %v6077_v32, 0  ;;  %v2987_v30 = vor.u32 4788187, %v2986_v21  ;;  %v2465_v39 = vshrl.u32 %v6084_v61, 16  ;;  %v2491_v45 = vadd.s32 %v2489_v38, %v2483_v13 }
 0x2cb   : > { %vm2492_vm11 = vc.u32 %v2490_v40, %v2486_v46  ;;  %v2848_v36 = vmul.f32 %v2847_v43, %v2843_v24  ;;  %v2855_v10 = vmul.f32 %v2854_v57, %v2843_v24  ;;  %vm2861_vm12 = vcmp.lt.s32.totalorder %v6077_v32, 2 }
 0x2cc   : > { %v2485_v29 = vshrl.u32 %v2481_v4, 16  ;;  %v2493_v28 = vsel %vm2492_vm11, 1, %v8056_v58  ;;  %vm2858_vm1 = vweird.f32 %v5759_v52  ;;  %v2988_v7 = vand.u32 2147483647, %v2987_v30 }
 0x2cd   : > { %v2990_v3 = vcvt.s32.f32 %v2983_v6  ;;  %v6124_v12 = vadd.s32 %v2474_v53, %v2465_v39  ;;  %v2495_v55 = vadd.s32 %v2493_v28, %v2491_v45  ;;  %v2849_v26 = vadd.f32 1.0, %v2848_v36 }
 0x2ce   : > { %v2856_v14 = vadd.f32 1.0, %v2855_v10  ;;  %v2444_v13 = vsel %vm2438_vm14, %v6088_v51, %v2443_v54  ;;  %v2560_v43 = vand.u32 2147483647, %v5820_v50  ;;  %v2487_v61 = vshrl.u32 %v2482_v11, 16 }
 0x2cf   : > { %v2991_v57 = vmul.f32 %v2990_v3, %v2988_v7  ;;  %v6130_v24 = vadd.s32 %v2490_v40, %v2486_v46  ;;  %v2496_v4 = vadd.s32 %v2495_v55, %v2485_v29  ;;  %vm2865_vm13 = vcmp.eq.s32.totalorder %v6077_v32, 2 }
 0x2d0   : > { %v2857_v41 = vmul.f32 %v2856_v14, %v6097_v8  ;;  %v2866_v31 = vxor.u32 2147483648, %v2849_v26  ;;  %v3014_v56 = vadd.s32 3, %v2997_v25  ;;  %v2498_v23 = vmul.u32 %v6062_v42, %v2444_v13 }
 0x2d1   : > { %v2992_v63 = vxor.u32 2147483648, %v2991_v57  ;;  %v2497_v9 = vadd.s32 %v2496_v4, %v2487_v61  ;;  %vm2500_vm14 = vc.u32 %v6124_v12, %v6130_v24  ;;  %v2567_v51 = vand.u32 8388607, %v2560_v43 }
 0x2d2   : > { %v2863_v37 = vxor.u32 2147483648, %v2857_v41  ;;  %v2578_v11 = vshrl.u32 %v8058_v2, %v5989_v35  ;;  %v2581_v8 = vshrl.u32 %v8059_v59, %v5989_v35  ;;  %v2867_v1 = vsel %vm2865_vm13, %v2866_v31, %v2857_v41 }
 0x2d3   : > { %v2993_v62 = vsel %vm2872_vm15, %v2992_v63, %v2991_v57  ;;  %v2501_v16 = vadd.s32 1, %v2497_v9  ;;  %v2580_v42 = vshll.u32 %v8058_v2, %v5971_v34  ;;  %v2583_v21 = vshll.u32 %v8059_v59, %v5971_v34 }
 0x2d4   : > { %v2864_v6 = vsel %vm2862_vm5, %v2849_v26, %v2863_v37  ;;  %v2996_v46 = vsel %vm6101_vm3, %v5828_v47, %v2993_v62  ;;  %v2584_v53 = vshrl.u32 %v8060_v20, %v5989_v35  ;;  %v2577_v54 = vshll.u32 %v8057_v19, %v5971_v34 }
 0x2d5   : > { %v2868_v38 = vsel %vm2861_vm12, %v2864_v6, %v2867_v1  ;;  %v2998_v40 = vmul.f32 %v2996_v46, %v2996_v46  ;;  %v2502_v25 = vsel %vm2500_vm14, %v2501_v16, %v2497_v9  ;;  %v2582_v44 = vor.u32 %v2581_v8, %v2580_v42 }
 0x2d6   : > { %v2869_v30 = vsel %vm2858_vm1, nan, %v2868_v38  ;;  %v2503_v39 = vadd.s32 %v2502_v25, %v2498_v23  ;;  %v2585_v45 = vor.u32 %v2584_v53, %v2583_v21  ;;  %v6164_v36 = vshrl.u32 %v8024_v5, %v5894_v27 }
 0x2d7   : > { %3077 = vmatpush.msra.mxu2 %v2869_v30  ;;  %v2999_v10 = vmul.f32 -0.001358992, %v2998_v40  ;;  %v3006_v29 = vmul.f32 -0.00019511016, %v2998_v40  ;;  %v2568_v32 = vor.u32 8388608, %v2567_v51  ;;  %v6169_v7 = vand.u32 3, %v3014_v56 }
 0x2d8   : > { %v2601_v28 = vsel %vm2595_vm8, %v6043_v0, 920167782  ;;  %v2504_v34 = vadd.s32 536870912, %v2503_v39  ;;  %v2579_v52 = vor.u32 %v2578_v11, %v2577_v54  ;;  %vm2592_vm15 = vcmp.lt.s32.totalorder %v5969_v17, 1 }
 0x2d9   : > { %v3000_v3 = vadd.f32 0.041655596, %v2999_v10  ;;  %v3007_v55 = vadd.f32 0.008332121, %v3006_v29  ;;  %vm2594_vm2 = vcmp.lt.s32.totalorder %v5969_v17, 3  ;;  %vm2593_vm3 = vcmp.lt.s32.totalorder %v5969_v17, 2 }
 0x2da   : > { %v6173_v26 = vshrl.u32 %v2504_v34, 30  ;;  %v2604_v14 = vsel %vm2592_vm15, %v2582_v44, %v2585_v45  ;;  %v2606_v13 = vsel %vm2594_vm2, %v6043_v0, %v6066_v49  ;;  %v6184_v41 = vshll.u32 %v2568_v32, 8 }
 0x2db   : > { %v3001_v57 = vmul.f32 %v3000_v3, %v2998_v40  ;;  %v3008_v61 = vmul.f32 %v3007_v55, %v2998_v40  ;;  %v2607_v4 = vsel %vm2593_vm3, %v2604_v14, %v2606_v13  ;;  %v2600_v56 = vsel %vm2592_vm15, %v2579_v52, %v2582_v44 }
 0x2dc   : > { %v2506_v31 = vshll.u32 %v6173_v26, 30  ;;  %v2602_v63 = vsel %vm2594_vm2, %v2585_v45, %v2601_v28  ;;  %v2612_v9 = vshrl.u32 %v2607_v4, 16  ;;  %v6193_v23 = vor.u32 %v5967_v22, %v5898_v48 }
 0x2dd   : > { %v2281_v0 = vor.u32 %v6164_v36, %v5904_v33  ;;  %v3002_v49 = vadd.f32 -0.4999988, %v3001_v57  ;;  %v3009_v37 = vadd.f32 -0.16666654, %v3008_v61  ;;  %vm3017_vm9 = vcmp.eq.s32.totalorder %v6169_v7, 0 }
 0x2de   : > { %v6198_v51 = vsub.s32 %v2503_v39, %v2506_v31  ;;  %v2609_v11 = vand.u32 65535, %v6184_v41  ;;  %v2611_v8 = vand.u32 65535, %v2607_v4  ;;  %vm3016_vm0 = vcmp.lt.s32.totalorder %v6169_v7, 2 }
 0x2df   : > { %v3003_v1 = vmul.f32 %v3002_v49, %v2998_v40  ;;  %v3010_v62 = vmul.f32 %v3009_v37, %v2998_v40  ;;  %vm3020_vm4 = vcmp.eq.s32.totalorder %v6169_v7, 2  ;;  %v2603_v48 = vsel %vm2593_vm3, %v2600_v56, %v2602_v63 }
 0x2e0   : > { %vm3013_vm5 = vweird.f32 %v5828_v47  ;;  %vm2508_vm11 = vcmp.lt.s32.totalorder %v6198_v51, 0  ;;  %v2509_v22 = vsub.s32 0, %v6198_v51  ;;  %v2610_v16 = vshrl.u32 %v6184_v41, 16 }
 0x2e1   : > { %v2614_v42 = vmul.u32 %v2612_v9, %v2609_v11  ;;  %v3004_v6 = vadd.f32 1.0, %v3003_v1  ;;  %v3011_v21 = vadd.f32 1.0, %v3010_v62  ;;  %v2576_v53 = vshrl.u32 %v8057_v19, %v5989_v35 }
 0x2e2   : > { %v2597_v38 = vsel %vm2595_vm8, %v2585_v45, 2102212464  ;;  %v2510_v40 = vsel %vm2508_vm11, %v2509_v22, %v6198_v51  ;;  %v6214_v25 = vmul.u32 %v2611_v8, %v2610_v16  ;;  %v2634_v30 = vshrl.u32 %v2603_v48, 16 }
 0x2e3   : > { %v2617_v54 = vshll.u32 %v2614_v42, 16  ;;  %v3012_v39 = vmul.f32 %v3011_v21, %v2996_v46  ;;  %v3021_v10 = vxor.u32 2147483648, %v3004_v6  ;;  %v2511_v29 = vclz %v2510_v40 }
 0x2e4   : > { %v2613_v32 = vmul.u32 %v2611_v8, %v2609_v11  ;;  %v2499_v28 = vadd.s32 %v6130_v24, %v6124_v12  ;;  %v2596_v34 = vsel %vm2592_vm15, %v2576_v53, %v2579_v52  ;;  %v2598_v35 = vsel %vm2594_vm2, %v2582_v44, %v2597_v38 }
 0x2e5   : > { %v2633_v45 = vand.u32 65535, %v2603_v48  ;;  %v3018_v3 = vxor.u32 2147483648, %v3012_v39  ;;  %v4530_v55 = vadd.s32 4294967294, %v2511_v29  ;;  %v2616_v14 = vmul.u32 %v2612_v9, %v2610_v16 }
 0x2e6   : > { %vm2621_vm8 = vc.u32 %v2613_v32, %v2617_v54  ;;  %v2619_v13 = vshll.u32 %v6214_v25, 16  ;;  %v2623_v57 = vadd.s32 %v2617_v54, %v2613_v32  ;;  %v2636_v61 = vmul.u32 %v2634_v30, %v2609_v11 }
 0x2e7   : > { %v2622_v46 = vsel %vm2621_vm8, 1, %v8056_v58  ;;  %v3019_v12 = vsel %vm3017_vm9, %v3004_v6, %v3018_v3  ;;  %v3022_v24 = vsel %vm3020_vm4, %v3021_v10, %v3012_v39  ;;  %vm4531_vm12 = vcmp.lt.s32.totalorder %v4530_v55, 0 }
 0x2e8   : > { %v2624_v52 = vadd.s32 %v2622_v46, %v2616_v14  ;;  %v3023_v44 = vsel %vm3016_vm0, %v3019_v12, %v3022_v24  ;;  %v2514_v4 = vsel %vm4531_vm12, 0, %v4530_v55  ;;  %vm2625_vm1 = vc.u32 %v2623_v57, %v2619_v13  ;;  %v8071_v24 = vld [vmem:[#allocation8_spill] sm:$0xff] }
 0x2e9   : > { %v2637_v31 = vmul.u32 %v2633_v45, %v2610_v16  ;;  %v3024_v56 = vsel %vm3013_vm5, nan, %v3023_v44  ;;  %v2515_v63 = vsub.s32 32, %v2514_v4  ;;  %v2519_v9 = vsub.s32 4294967266, %v2514_v4 }
 0x2ea   : > { %v2529_v49 = vsub.s32 4, %v6173_v26  ;;  %3106 = vmatpush.msra.mxu3 %v3024_v56  ;;  %v2618_v37 = vshrl.u32 %v2614_v42, 16  ;;  %v2626_v8 = vsel %vm2625_vm1, 1, %v8056_v58  ;;  %v2635_v1 = vmul.u32 %v2633_v45, %v2609_v11 }
 0x2eb   : > { %v2639_v62 = vshll.u32 %v2636_v61, 16  ;;  %v2516_v48 = vshll.u32 %v6198_v51, %v2514_v4  ;;  %v2517_v7 = vshrl.u32 %v2499_v28, %v2515_v63  ;;  %v2520_v22 = vadd.s32 127, %v2519_v9 }
 0x2ec   : > { %v2628_v6 = vadd.s32 %v2626_v8, %v2624_v52  ;;  %vm2285_vm13 = vcmp.lt.s32.totalorder %v5869_v60, 4  ;;  %v2638_v21 = vmul.u32 %v2634_v30, %v2610_v16  ;;  %v2641_v47 = vshll.u32 %v2637_v31, 16 }
 0x2ed   : > { %vm2643_vm14 = vc.u32 %v2635_v1, %v2639_v62  ;;  %v2645_v53 = vadd.s32 %v2639_v62, %v2635_v1  ;;  %v2518_v38 = vor.u32 %v2517_v7, %v2516_v48  ;;  %v2521_v40 = vshll.u32 %v2520_v22, 23 }
 0x2ee   : > { %v2629_v54 = vadd.s32 %v2628_v6, %v2618_v37  ;;  %v2644_v42 = vsel %vm2643_vm14, 1, %v8056_v58  ;;  %vm2407_vm15 = vcmp.lt.s32.totalorder %v5752_v15, 0  ;;  %v2095_v51 = vand.u32 2147483647, %v5748_v18  ;;  %v8073_v6 = vld [vmem:[#allocation10_spill] sm:$0xff] }
 0x2ef   : > { %v2646_v11 = vadd.s32 %v2644_v42, %v2638_v21  ;;  %vm2647_vm2 = vc.u32 %v2645_v53, %v2641_v47  ;;  %v8068_v39 = vand.u32 2147483647, %v5752_v15  ;;  %v2522_v16 = vor.u32 4788187, %v2521_v40  ;;  %v8076_v42 = vld [vmem:[#allocation15_spill] sm:$0xff] }
 0x2f0   : > { %v2620_v30 = vshrl.u32 %v6214_v25, 16  ;;  %v2648_v29 = vsel %vm2647_vm2, 1, %v8056_v58  ;;  %v2599_v32 = vsel %vm2593_vm3, %v2596_v34, %v2598_v35  ;;  %v2640_v28 = vshrl.u32 %v2636_v61, 16  ;;  %v8072_v61 = vld [vmem:[#allocation6_spill] sm:$0xff] }
 0x2f1   : > { %vm6241_vm9 = vcmp.le.f32.partialorder %v8068_v39, 0.7853982  ;;  %v2650_v45 = vadd.s32 %v2648_v29, %v2646_v11  ;;  %v2102_v3 = vand.u32 8388607, %v2095_v51  ;;  %v2523_v55 = vand.u32 2147483647, %v2522_v16 }
 0x2f2   : > { %v2525_v14 = vcvt.s32.f32 %v2518_v38  ;;  %v2530_v13 = vsel %vm2407_vm15, %v2529_v49, %v6173_v26  ;;  %v6254_v46 = vadd.s32 %v2629_v54, %v2620_v30  ;;  %v2642_v57 = vshrl.u32 %v2637_v31, 16  ;;  %v8075_v38 = vld [vmem:[#allocation11_spill] sm:$0xff] }
 0x2f3   : > { %v6256_v25 = vadd.s32 %v2645_v53, %v2641_v47  ;;  %v2651_v12 = vadd.s32 %v2650_v45, %v2640_v28  ;;  %v2113_v17 = vshrl.u32 %v8058_v2, %v8071_v24  ;;  %v2103_v35 = vor.u32 8388608, %v2102_v3  ;;  %v8074_v53 = vld [vmem:[#allocation16_spill] sm:$0xff] }
 0x2f4   : > { %v2526_v34 = vmul.f32 %v2525_v14, %v2523_v55  ;;  %v2112_v52 = vshll.u32 %v8057_v19, %v8072_v61  ;;  %v2116_v44 = vshrl.u32 %v8059_v59, %v8071_v24  ;;  %v2115_v26 = vshll.u32 %v8058_v2, %v8072_v61 }
 0x2f5   : > { %v2652_v4 = vadd.s32 %v2651_v12, %v2642_v57  ;;  %v2118_v31 = vshll.u32 %v8059_v59, %v8072_v61  ;;  %v2119_v56 = vshrl.u32 %v8060_v20, %v8071_v24  ;;  %v6273_v63 = vsel %vm2285_vm13, %v6193_v23, 920167782 }
 0x2f6   : > { %v2527_v9 = vxor.u32 2147483648, %v2526_v34  ;;  %v2532_v49 = vsel %vm6241_vm9, 0, %v2530_v13  ;;  %vm2655_vm3 = vc.u32 %v6254_v46, %v6256_v25  ;;  %v2114_v8 = vor.u32 %v2113_v17, %v2112_v52 }
 0x2f7   : > { %v2656_v37 = vadd.s32 1, %v2652_v4  ;;  %v2117_v1 = vor.u32 %v2116_v44, %v2115_v26  ;;  %v2120_v62 = vor.u32 %v2119_v56, %v2118_v31  ;;  %v6284_v48 = vsel %vm2285_vm13, %v2281_v0, 1326507024 }
 0x2f8   : > { %v2528_v7 = vsel %vm2407_vm15, %v2527_v9, %v2526_v34  ;;  %v2653_v22 = vmul.u32 %v6184_v41, %v2599_v32  ;;  %vm2129_vm0 = vcmp.lt.s32.totalorder %v8073_v6, 3  ;;  %v6299_v36 = vshll.u32 %v2103_v35, 8 }
 0x2f9   : > { %v6293_v21 = vsel %vm6241_vm9, %v5752_v15, %v2528_v7  ;;  %v2657_v47 = vsel %vm2655_vm3, %v2656_v37, %v2652_v4  ;;  %v2141_v33 = vsel %vm2129_vm0, %v8075_v38, %v8074_v53  ;;  %v2549_v40 = vadd.s32 3, %v2532_v49 }
 0x2fa   : > { %v2533_v0 = vmul.f32 %v6293_v21, %v6293_v21  ;;  %v2658_v41 = vadd.s32 %v2657_v47, %v2653_v22  ;;  %vm2127_vm4 = vcmp.lt.s32.totalorder %v8073_v6, 1  ;;  %vm2128_vm5 = vcmp.lt.s32.totalorder %v8073_v6, 2 }
 0x2fb   : > { %v2135_v54 = vsel %vm2127_vm4, %v2114_v8, %v2117_v1  ;;  %v2137_v11 = vsel %vm2129_vm0, %v2120_v62, %v8076_v42  ;;  %v2139_v39 = vsel %vm2127_vm4, %v2117_v1, %v2120_v62  ;;  %v2144_v32 = vand.u32 65535, %v6299_v36 }
 0x2fc   : > { %v2534_v10 = vmul.f32 -0.001358992, %v2533_v0  ;;  %v2541_v16 = vmul.f32 -0.00019511016, %v2533_v0  ;;  %v2659_v30 = vadd.s32 536870912, %v2658_v41  ;;  %v2142_v29 = vsel %vm2128_vm5, %v2139_v39, %v2141_v33 }
 0x2fd   : > { %v6316_v28 = vshrl.u32 %v6299_v36, 16  ;;  %v2146_v45 = vand.u32 65535, %v2142_v29  ;;  %v2147_v3 = vshrl.u32 %v2142_v29, 16  ;;  %v2138_v57 = vsel %vm2128_vm5, %v2135_v54, %v2137_v11 }
 0x2fe   : > { %v2535_v55 = vadd.f32 0.041655596, %v2534_v10  ;;  %v2542_v14 = vadd.f32 0.008332121, %v2541_v16  ;;  %v2660_v13 = vshrl.u32 %v2659_v30, 30  ;;  %v2111_v12 = vshrl.u32 %v8057_v19, %v8071_v24 }
 0x2ff   : > { %v2132_v17 = vsel %vm2130_vm7, %v2120_v62, 2102212464  ;;  %v2149_v34 = vmul.u32 %v2147_v3, %v2144_v32  ;;  %v6325_v35 = vmul.u32 %v2146_v45, %v6316_v28  ;;  %v2550_v44 = vand.u32 3, %v2549_v40 }
 0x300   : > { %v2536_v61 = vmul.f32 %v2535_v55, %v2533_v0  ;;  %v2543_v52 = vmul.f32 %v2542_v14, %v2533_v0  ;;  %v2661_v4 = vshll.u32 %v2660_v13, 30  ;;  %v2131_v26 = vsel %vm2127_vm4, %v2111_v12, %v2114_v8 }
 0x301   : > { %v2148_v31 = vmul.u32 %v2146_v45, %v2144_v32  ;;  %v2152_v56 = vshll.u32 %v2149_v34, 16  ;;  %v2169_v9 = vshrl.u32 %v2138_v57, 16  ;;  %vm2562_vm11 = vcmp.lt.s32.totalorder %v5820_v50, 0 }
 0x302   : > { %v2537_v49 = vadd.f32 -0.4999988, %v2536_v61  ;;  %v2544_v37 = vadd.f32 -0.16666654, %v2543_v52  ;;  %v6330_v24 = vsub.s32 %v2658_v41, %v2661_v4  ;;  %v2133_v62 = vsel %vm2129_vm0, %v2117_v1, %v2132_v17 }
 0x303   : > { %v2151_v7 = vmul.u32 %v2147_v3, %v6316_v28  ;;  %v2154_v22 = vshll.u32 %v6325_v35, 16  ;;  %vm2156_vm7 = vc.u32 %v2148_v31, %v2152_v56  ;;  %v2158_v47 = vadd.s32 %v2152_v56, %v2148_v31 }
 0x304   : > { %v2538_v53 = vmul.f32 %v2537_v49, %v2533_v0  ;;  %v2545_v8 = vmul.f32 %v2544_v37, %v2533_v0  ;;  %vm2551_vm8 = vcmp.lt.s32.totalorder %v2550_v44, 2  ;;  %vm2663_vm12 = vcmp.lt.s32.totalorder %v6330_v24, 0 }
 0x305   : > { %v2664_v38 = vsub.s32 0, %v6330_v24  ;;  %vm2548_vm1 = vweird.f32 %v5752_v15  ;;  %v2157_v33 = vsel %vm2156_vm7, 1, %v8056_v58  ;;  %vm2160_vm14 = vc.u32 %v2158_v47, %v2154_v22 }
 0x306   : > { %v2168_v40 = vand.u32 65535, %v2138_v57  ;;  %v2171_v1 = vmul.u32 %v2169_v9, %v2144_v32  ;;  %v2539_v41 = vadd.f32 1.0, %v2538_v53  ;;  %v2546_v54 = vadd.f32 1.0, %v2545_v8 }
 0x307   : > { %v2665_v42 = vsel %vm2663_vm12, %v2664_v38, %v6330_v24  ;;  %v2159_v11 = vadd.s32 %v2157_v33, %v2151_v7  ;;  %vm2552_vm15 = vcmp.eq.s32.totalorder %v2550_v44, 0  ;;  %vm6343_vm2 = vcmp.le.f32.partialorder %v2560_v43, 0.7853982 }
 0x308   : > { %v2666_v39 = vclz %v2665_v42  ;;  %v2684_v10 = vsub.s32 4, %v2660_v13  ;;  %v2161_v16 = vsel %vm2160_vm14, 1, %v8056_v58  ;;  %v2547_v30 = vmul.f32 %v2546_v54, %v6293_v21 }
 0x309   : > { %vm2555_vm9 = vcmp.eq.s32.totalorder %v2550_v44, 2  ;;  %v2556_v29 = vxor.u32 2147483648, %v2539_v41  ;;  %v2163_v45 = vadd.s32 %v2161_v16, %v2159_v11  ;;  %v2654_v3 = vadd.s32 %v6256_v25, %v6254_v46 }
 0x30a   : > { %v4533_v55 = vadd.s32 4294967294, %v2666_v39  ;;  %v6353_v14 = vsel %vm2128_vm5, %v2131_v26, %v2133_v62  ;;  %v2172_v43 = vmul.u32 %v2168_v40, %v6316_v28  ;;  %v2553_v57 = vxor.u32 2147483648, %v2547_v30  ;;  %v8079_v62 = vld [vmem:[#allocation5_spill] sm:$0xff]  ;;  %v8080_v39 = vld [vmem:[#allocation19_spill] sm:$0xff] }
 0x30b   : > { %v2153_v12 = vshrl.u32 %v2149_v34, 16  ;;  %v2170_v17 = vmul.u32 %v2168_v40, %v2144_v32  ;;  %v2174_v61 = vshll.u32 %v2171_v1, 16  ;;  %v2557_v52 = vsel %vm2555_vm9, %v2556_v29, %v2547_v30 }
 0x30c   : > { %vm4534_vm3 = vcmp.lt.s32.totalorder %v4533_v55, 0  ;;  %v2685_v21 = vsel %vm2562_vm11, %v2684_v10, %v2660_v13  ;;  %v2173_v4 = vmul.u32 %v2169_v9, %v6316_v28  ;;  %v2554_v46 = vsel %vm2552_vm15, %v2539_v41, %v2553_v57 }
 0x30d   : > { %v2669_v25 = vsel %vm4534_vm3, 0, %v4533_v55  ;;  %v2164_v31 = vadd.s32 %v2163_v45, %v2153_v12  ;;  %vm2178_vm0 = vc.u32 %v2170_v17, %v2174_v61  ;;  %v2558_v6 = vsel %vm2551_vm8, %v2554_v46, %v2557_v52 }
 0x30e   : > { %v2670_v26 = vsub.s32 32, %v2669_v25  ;;  %v2674_v56 = vsub.s32 4294967266, %v2669_v25  ;;  %v2176_v49 = vshll.u32 %v2172_v43, 16  ;;  %v2559_v32 = vsel %vm2548_vm1, nan, %v2558_v6 }
 0x30f   : > { %v2179_v34 = vsel %vm2178_vm0, 1, %v8056_v58  ;;  %v2180_v37 = vadd.s32 %v2174_v61, %v2170_v17  ;;  %v2250_v13 = vand.u32 2147483647, %v8079_v62  ;;  %3078 = vmatpush.msra.mxu2 %v2559_v32  ;;  %v2671_v28 = vshll.u32 %v6330_v24, %v2669_v25 }
 0x310   : > { %v2672_v9 = vshrl.u32 %v2654_v3, %v2670_v26  ;;  %v2675_v7 = vadd.s32 127, %v2674_v56  ;;  %v2181_v22 = vadd.s32 %v2179_v34, %v2173_v4  ;;  %v2687_v44 = vsel %vm6343_vm2, 0, %v2685_v21 }
 0x311   : > { %v2155_v47 = vshrl.u32 %v6325_v35, 16  ;;  %vm2182_vm4 = vc.u32 %v2180_v37, %v2176_v49  ;;  %v2257_v15 = vand.u32 8388607, %v2250_v13  ;;  %v2175_v38 = vshrl.u32 %v2171_v1, 16 }
 0x312   : > { %v2673_v53 = vor.u32 %v2672_v9, %v2671_v28  ;;  %v2676_v8 = vshll.u32 %v2675_v7, 23  ;;  %v2183_v33 = vsel %vm2182_vm4, 1, %v8056_v58  ;;  %v2177_v41 = vshrl.u32 %v2172_v43, 16 }
 0x313   : > { %v2165_v40 = vadd.s32 %v2164_v31, %v2155_v47  ;;  %v2184_v24 = vadd.s32 %v2180_v37, %v2176_v49  ;;  %v2185_v54 = vadd.s32 %v2183_v33, %v2181_v22  ;;  %v2258_v11 = vor.u32 8388608, %v2257_v15  ;;  %v8082_v22 = vld [vmem:[#allocation18_spill] sm:$0xff] }
 0x314   : > { %v2677_v42 = vor.u32 4788187, %v2676_v8  ;;  %v2267_v10 = vshll.u32 %v8057_v19, %v8080_v39  ;;  %v2268_v35 = vshrl.u32 %v8058_v2, %v5894_v27  ;;  %v2680_v16 = vcvt.s32.f32 %v2673_v53 }
 0x315   : > { %v2186_v30 = vadd.s32 %v2185_v54, %v2175_v38  ;;  %v2270_v29 = vshll.u32 %v8058_v2, %v8080_v39  ;;  %v2271_v1 = vshrl.u32 %v8059_v59, %v5894_v27  ;;  %v2273_v55 = vshll.u32 %v8059_v59, %v8080_v39 }
 0x316   : > { %v2678_v45 = vand.u32 2147483647, %v2677_v42  ;;  %v2269_v3 = vor.u32 %v2268_v35, %v2267_v10  ;;  %v2274_v43 = vshrl.u32 %v8060_v20, %v5894_v27  ;;  %vm2190_vm5 = vc.u32 %v2165_v40, %v2184_v24 }
 0x317   : > { %v2187_v57 = vadd.s32 %v2186_v30, %v2177_v41  ;;  %v6384_v12 = vor.u32 %v2271_v1, %v2270_v29  ;;  %vm2284_vm7 = vcmp.lt.s32.totalorder %v5869_v60, 3  ;;  %vm2282_vm8 = vcmp.lt.s32.totalorder %v5869_v60, 1 }
 0x318   : > { %v2681_v17 = vmul.f32 %v2680_v16, %v2678_v45  ;;  %v2275_v61 = vor.u32 %v2274_v43, %v2273_v55  ;;  %v2296_v52 = vsel %vm2284_vm7, %v6193_v23, %v6284_v48  ;;  %v2188_v21 = vmul.u32 %v6299_v36, %v6353_v14  ;;  %v8081_v48 = vld [vmem:[#allocation14_spill] sm:$0xff] }
 0x319   : > { %v2191_v4 = vadd.s32 1, %v2187_v57  ;;  %v2290_v46 = vsel %vm2282_vm8, %v2269_v3, %v6384_v12  ;;  %v6397_v25 = vshll.u32 %v2258_v11, 8  ;;  %vm2283_vm12 = vcmp.lt.s32.totalorder %v5869_v60, 2 }
 0x31a   : > { %v2682_v31 = vxor.u32 2147483648, %v2681_v17  ;;  %v2292_v6 = vsel %vm2284_vm7, %v2275_v61, %v6273_v63  ;;  %v2294_v23 = vsel %vm2282_vm8, %v6384_v12, %v2275_v61  ;;  %v6408_v36 = vshll.u32 %v8060_v20, %v8081_v48 }
 0x31b   : > { %v2704_v14 = vadd.s32 3, %v2687_v44  ;;  %v2192_v26 = vsel %vm2190_vm5, %v2191_v4, %v2187_v57  ;;  %v2297_v56 = vsel %vm2283_vm12, %v2294_v23, %v2296_v52  ;;  %v6417_v63 = vsel %vm2283_vm12, %v2290_v46, %v2292_v6 }
 0x31c   : > { %v2683_v49 = vsel %vm2562_vm11, %v2682_v31, %v2681_v17  ;;  %v2193_v32 = vadd.s32 %v2192_v26, %v2188_v21  ;;  %v2299_v34 = vand.u32 65535, %v6397_v25  ;;  %v6426_v28 = vshrl.u32 %v6397_v25, 16 }
 0x31d   : > { %v6423_v37 = vsel %vm6343_vm2, %v5820_v50, %v2683_v49  ;;  %v2301_v9 = vand.u32 65535, %v2297_v56  ;;  %v2302_v7 = vshrl.u32 %v2297_v56, 16  ;;  %v8083_v44 = vmov 920167782  }
 0x31e   : > { %v6430_v47 = vshrl.u32 %v8083_v44, %v8082_v22  ;;  %v6434_v15 = vshll.u32 %v8083_v44, %v8081_v48  ;;  %v2688_v53 = vmul.f32 %v6423_v37, %v6423_v37  ;;  %v2194_v8 = vadd.s32 536870912, %v2193_v32 }
 0x31f   : > { %v6440_v0 = vshrl.u32 %v8024_v5, %v8082_v22  ;;  %v2304_v38 = vmul.u32 %v2302_v7, %v2299_v34  ;;  %v6443_v33 = vmul.u32 %v2301_v9, %v6426_v28  ;;  %v2324_v41 = vshrl.u32 %v6417_v63, 16 }
 0x320   : > { %v2689_v54 = vmul.f32 -0.001358992, %v2688_v53  ;;  %v2696_v42 = vmul.f32 -0.00019511016, %v2688_v53  ;;  %v2195_v11 = vshrl.u32 %v2194_v8, 30  ;;  %v2266_v39 = vshrl.u32 %v8057_v19, %v5894_v27 }
 0x321   : > { %v6448_v10 = vand.u32 3, %v2704_v14  ;;  %v6450_v35 = vadd.s32 %v2184_v24, %v2165_v40  ;;  %v2303_v16 = vmul.u32 %v2301_v9, %v2299_v34  ;;  %v2307_v30 = vshll.u32 %v2304_v38, 16 }
 0x322   : > { %v2690_v29 = vadd.f32 0.041655596, %v2689_v54  ;;  %v2697_v1 = vadd.f32 0.008332121, %v2696_v42  ;;  %vm2097_vm11 = vcmp.lt.s32.totalorder %v5748_v18, 0  ;;  %v2196_v45 = vshll.u32 %v2195_v11, 30 }
 0x323   : > { %v6455_v55 = vsel %vm2282_vm8, %v2266_v39, %v2269_v3  ;;  %v2309_v43 = vshll.u32 %v6443_v33, 16  ;;  %vm2311_vm1 = vc.u32 %v2303_v16, %v2307_v30  ;;  %v2313_v57 = vadd.s32 %v2307_v30, %v2303_v16 }
 0x324   : > { %v6458_v27 = vmul.u32 %v2324_v41, %v2299_v34  ;;  %v2691_v17 = vmul.f32 %v2690_v29, %v2688_v53  ;;  %v2698_v40 = vmul.f32 %v2697_v1, %v2688_v53  ;;  %v6460_v24 = vsub.s32 %v2193_v32, %v2196_v45 }
 0x325   : > { %v2323_v52 = vand.u32 65535, %v6417_v63  ;;  %vm2710_vm14 = vcmp.eq.s32.totalorder %v6448_v10, 2  ;;  %v2287_v21 = vsel %vm2285_vm13, %v2275_v61, 2102212464  ;;  %v2306_v3 = vmul.u32 %v2302_v7, %v6426_v28 }
 0x326   : > { %v2312_v4 = vsel %vm2311_vm1, 1, %v8056_v58  ;;  %vm2315_vm15 = vc.u32 %v2313_v57, %v2309_v43  ;;  %v2692_v46 = vadd.f32 -0.4999988, %v2691_v17  ;;  %v2699_v31 = vadd.f32 -0.16666654, %v2698_v40 }
 0x327   : > { %vm2198_vm2 = vcmp.lt.s32.totalorder %v6460_v24, 0  ;;  %v2199_v6 = vsub.s32 0, %v6460_v24  ;;  %vm2707_vm9 = vcmp.eq.s32.totalorder %v6448_v10, 0  ;;  %v2219_v23 = vsub.s32 4, %v2195_v11 }
 0x328   : > { %v2314_v14 = vadd.s32 %v2312_v4, %v2306_v3  ;;  %v2316_v26 = vsel %vm2315_vm15, 1, %v8056_v58  ;;  %v2329_v56 = vshll.u32 %v6458_v27, 16  ;;  %v2693_v61 = vmul.f32 %v2692_v46, %v2688_v53  ;;  %v8084_v46 = vld [vmem:[#allocation2_spill] sm:$0xff] }
 0x329   : > { %v2700_v49 = vmul.f32 %v2699_v31, %v2688_v53  ;;  %vm2706_vm13 = vcmp.lt.s32.totalorder %v6448_v10, 2  ;;  %v2200_v32 = vsel %vm2198_vm2, %v2199_v6, %v6460_v24  ;;  %v2325_v63 = vmul.u32 %v2323_v52, %v2299_v34 }
 0x32a   : > { %vm2703_vm3 = vweird.f32 %v5820_v50  ;;  %v2201_v9 = vclz %v2200_v32  ;;  %v2288_v7 = vsel %vm2284_vm7, %v6384_v12, %v2287_v21  ;;  %v2318_v8 = vadd.s32 %v2316_v26, %v2314_v14 }
 0x32b   : > { %v2327_v54 = vmul.u32 %v2323_v52, %v6426_v28  ;;  %v2694_v42 = vadd.f32 1.0, %v2693_v61  ;;  %v2701_v39 = vadd.f32 1.0, %v2700_v49  ;;  %v2308_v16 = vshrl.u32 %v2304_v38, 16 }
 0x32c   : > { %vm2333_vm0 = vc.u32 %v2325_v63, %v2329_v56  ;;  %v4524_v53 = vadd.s32 4294967294, %v2201_v9  ;;  %v2220_v30 = vsel %vm2097_vm11, %v2219_v23, %v2195_v11  ;;  %v2310_v34 = vshrl.u32 %v6443_v33, 16 }
 0x32d   : > { %v2328_v29 = vmul.u32 %v2324_v41, %v6426_v28  ;;  %v2702_v1 = vmul.f32 %v2701_v39, %v6423_v37  ;;  %v2711_v45 = vxor.u32 2147483648, %v2694_v42  ;;  %v2319_v43 = vadd.s32 %v2318_v8, %v2308_v16  ;;  %v8087_v8 = vld [vmem:[#allocation7_spill] sm:$0xff] }
 0x32e   : > { %v2334_v12 = vsel %vm2333_vm0, 1, %v8056_v58  ;;  %vm4525_vm4 = vcmp.lt.s32.totalorder %v4524_v53, 0  ;;  %v2331_v57 = vshll.u32 %v2327_v54, 16  ;;  %v2335_v17 = vadd.s32 %v2329_v56, %v2325_v63 }
 0x32f   : > { %v2336_v40 = vadd.s32 %v2334_v12, %v2328_v29  ;;  %v2708_v38 = vxor.u32 2147483648, %v2702_v1  ;;  %v2712_v52 = vsel %vm2710_vm14, %v2711_v45, %v2702_v1  ;;  %v2204_v21 = vsel %vm4525_vm4, 0, %v4524_v53  ;;  %v8089_v1 = vld [vmem:[#allocation9_spill] sm:$0xff] }
 0x330   : > { %v2330_v11 = vshrl.u32 %v6458_v27, 16  ;;  %v2205_v33 = vsub.s32 32, %v2204_v21  ;;  %v2209_v3 = vsub.s32 4294967266, %v2204_v21  ;;  %v6489_v28 = vadd.s32 %v2319_v43, %v2310_v34 }
 0x331   : > { %vm2337_vm5 = vc.u32 %v2335_v17, %v2331_v57  ;;  %v2709_v37 = vsel %vm2707_vm9, %v2694_v42, %v2708_v38  ;;  %v2206_v41 = vshll.u32 %v6460_v24, %v2204_v21  ;;  %v1785_v31 = vand.u32 2147483647, %v8084_v46 }
 0x332   : > { %v2338_v4 = vsel %vm2337_vm5, 1, %v8056_v58  ;;  %v2713_v6 = vsel %vm2706_vm13, %v2709_v37, %v2712_v52  ;;  %v2207_v23 = vshrl.u32 %v6450_v35, %v2205_v33  ;;  %v2210_v27 = vadd.s32 127, %v2209_v3  ;;  %v8092_v37 = vld [vmem:[#allocation17_spill] sm:$0xff] }
 0x333   : > { %v2340_v14 = vadd.s32 %v2338_v4, %v2336_v40  ;;  %v6501_v26 = vor.u32 %v6430_v47, %v6408_v36  ;;  %v2714_v56 = vsel %vm2703_vm3, nan, %v2713_v6  ;;  %vm6507_vm7 = vcmp.le.f32.partialorder %v2095_v51, 0.7853982 }
 0x334   : > { %v2332_v61 = vshrl.u32 %v2327_v54, 16  ;;  %3107 = vmatpush.msra.mxu3 %v2714_v56  ;;  %v2208_v10 = vor.u32 %v2207_v23, %v2206_v41  ;;  %v2211_v49 = vshll.u32 %v2210_v27, 23  ;;  %v6511_v35 = vadd.s32 %v2335_v17, %v2331_v57  ;;  %v8090_v57 = vld [vmem:[#allocation13_spill] sm:$0xff]  ;;  %v8091_v17 = vld [vmem:[#allocation12_spill] sm:$0xff] }
 0x335   : > { %v2341_v32 = vadd.s32 %v2340_v14, %v2330_v11  ;;  %v1971_v36 = vor.u32 %v6440_v0, %v6434_v15  ;;  %v2222_v50 = vsel %vm6507_vm7, 0, %v2220_v30  ;;  %v2289_v51 = vsel %vm2283_vm12, %v6455_v55, %v2288_v7  ;;  %v8088_v0 = vld [vmem:[#allocation4_spill] sm:$0xff] }
 0x336   : > { %v1792_v47 = vand.u32 8388607, %v1785_v31  ;;  %v2212_v63 = vor.u32 4788187, %v2211_v49  ;;  %vm2345_vm8 = vc.u32 %v6489_v28, %v6511_v35  ;;  %v1803_v54 = vshrl.u32 %v8058_v2, %v8087_v8 }
 0x337   : > { %v2342_v9 = vadd.s32 %v2341_v32, %v2332_v61  ;;  %v2215_v42 = vcvt.s32.f32 %v2208_v10  ;;  %v1805_v39 = vshll.u32 %v8058_v2, %v8088_v0  ;;  %v1806_v60 = vshrl.u32 %v8059_v59, %v8087_v8 }
 0x338   : > { %v1793_v15 = vor.u32 8388608, %v1792_v47  ;;  %v2213_v55 = vand.u32 2147483647, %v2212_v63  ;;  %v1808_v16 = vshll.u32 %v8059_v59, %v8088_v0  ;;  %v1809_v53 = vshrl.u32 %v8060_v20, %v8087_v8 }
 0x339   : > { %v2346_v7 = vadd.s32 1, %v2342_v9  ;;  %v2343_v30 = vmul.u32 %v6397_v25, %v2289_v51  ;;  %v1802_v34 = vshll.u32 %v8057_v19, %v8088_v0  ;;  %v1807_v29 = vor.u32 %v1806_v60, %v1805_v39 }
 0x33a   : > { %vm1819_vm12 = vcmp.lt.s32.totalorder %v8089_v1, 3  ;;  %v2216_v45 = vmul.f32 %v2215_v42, %v2213_v55  ;;  %v1810_v12 = vor.u32 %v1809_v53, %v1808_v16  ;;  %v2239_v38 = vadd.s32 3, %v2222_v50 }
 0x33b   : > { %v2347_v43 = vsel %vm2345_vm8, %v2346_v7, %v2342_v9  ;;  %v1831_v40 = vsel %vm1819_vm12, %v8091_v17, %v8090_v57  ;;  %vm1817_vm1 = vcmp.lt.s32.totalorder %v8089_v1, 1  ;;  %v6543_v21 = vshll.u32 %v1793_v15, 8 }
 0x33c   : > { %v2348_v52 = vadd.s32 %v2347_v43, %v2343_v30  ;;  %v2217_v25 = vxor.u32 2147483648, %v2216_v45  ;;  %v1804_v11 = vor.u32 %v1803_v54, %v1802_v34  ;;  %vm1818_vm14 = vcmp.lt.s32.totalorder %v8089_v1, 2 }
 0x33d   : > { %v1829_v33 = vsel %vm1817_vm1, %v1807_v29, %v1810_v12  ;;  %v1826_v3 = vsel %vm1820_vm6, %v8091_v17, 920167782  ;;  %vm1975_vm15 = vcmp.lt.s32.totalorder %v8092_v37, 4  ;;  %v6566_v14 = vand.u32 65535, %v6543_v21 }
 0x33e   : > { %v2349_v41 = vadd.s32 536870912, %v2348_v52  ;;  %v1832_v4 = vsel %vm1818_vm14, %v1829_v33, %v1831_v40  ;;  %v6557_v6 = vsel %vm1975_vm15, %v6501_v26, 920167782  ;;  %v6561_v23 = vsel %vm1975_vm15, %v1971_v36, 1326507024 }
 0x33f   : > { %v2218_v27 = vsel %vm2097_vm11, %v2217_v25, %v2216_v45  ;;  %v1836_v10 = vand.u32 65535, %v1832_v4  ;;  %v1837_v49 = vshrl.u32 %v1832_v4, 16  ;;  %v6573_v50 = vand.u32 3, %v2239_v38 }
 0x340   : > { %v2221_v56 = vsel %vm6507_vm7, %v5748_v18, %v2218_v27  ;;  %v6571_v61 = vshrl.u32 %v2349_v41, 30  ;;  %v1801_v36 = vshrl.u32 %v8057_v19, %v8087_v8  ;;  %v1825_v51 = vsel %vm1817_vm1, %v1804_v11, %v1807_v29 }
 0x341   : > { %v2223_v32 = vmul.f32 %v2221_v56, %v2221_v56  ;;  %v1827_v63 = vsel %vm1819_vm12, %v1810_v12, %v1826_v3  ;;  %v1835_v24 = vshrl.u32 %v6543_v21, 16  ;;  %v1839_v9 = vmul.u32 %v1837_v49, %v6566_v14 }
 0x342   : > { %v2351_v47 = vshll.u32 %v6571_v61, 30  ;;  %v1822_v15 = vsel %vm1820_vm6, %v1810_v12, 2102212464  ;;  %v1821_v8 = vsel %vm1817_vm1, %v1801_v36, %v1804_v11  ;;  %v1828_v16 = vsel %vm1818_vm14, %v1825_v51, %v1827_v63 }
 0x343   : > { %v2224_v54 = vmul.f32 -0.001358992, %v2223_v32  ;;  %v2231_v42 = vmul.f32 -0.00019511016, %v2223_v32  ;;  %v6590_v39 = vmul.u32 %v1836_v10, %v1835_v24  ;;  %v1842_v60 = vshll.u32 %v1839_v9, 16 }
 0x344   : > { %v6586_v0 = vsub.s32 %v2348_v52, %v2351_v47  ;;  %v1838_v53 = vmul.u32 %v1836_v10, %v6566_v14  ;;  %v1823_v34 = vsel %vm1819_vm12, %v1807_v29, %v1822_v15  ;;  %v1841_v45 = vmul.u32 %v1837_v49, %v1835_v24 }
 0x345   : > { %v2225_v55 = vadd.f32 0.041655596, %v2224_v54  ;;  %v2232_v7 = vadd.f32 0.008332121, %v2231_v42  ;;  %v1844_v40 = vshll.u32 %v6590_v39, 16  ;;  %v1859_v52 = vshrl.u32 %v1828_v16, 16 }
 0x346   : > { %vm2353_vm11 = vcmp.lt.s32.totalorder %v6586_v0, 0  ;;  %v2354_v30 = vsub.s32 0, %v6586_v0  ;;  %vm1846_vm6 = vc.u32 %v1838_v53, %v1842_v60  ;;  %v1848_v57 = vadd.s32 %v1842_v60, %v1838_v53 }
 0x347   : > { %v2226_v43 = vmul.f32 %v2225_v55, %v2223_v32  ;;  %v2233_v12 = vmul.f32 %v2232_v7, %v2223_v32  ;;  %v1847_v38 = vsel %vm1846_vm6, 1, %v8056_v58  ;;  %vm2242_vm2 = vcmp.eq.s32.totalorder %v6573_v50, 0 }
 0x348   : > { %v2355_v17 = vsel %vm2353_vm11, %v2354_v30, %v6586_v0  ;;  %v1849_v3 = vadd.s32 %v1847_v38, %v1841_v45  ;;  %vm2245_vm9 = vcmp.eq.s32.totalorder %v6573_v50, 2  ;;  %vm1850_vm13 = vc.u32 %v1848_v57, %v1844_v40  ;;  %v8093_v30 = vld [vmem:[#allocation3_spill] sm:$0xff] }
 0x349   : > { %v2227_v25 = vadd.f32 -0.4999988, %v2226_v43  ;;  %v2234_v11 = vadd.f32 -0.16666654, %v2233_v12  ;;  %v2356_v33 = vclz %v2355_v17  ;;  %v1858_v29 = vand.u32 65535, %v1828_v16 }
 0x34a   : > { %vm2241_vm3 = vcmp.lt.s32.totalorder %v6573_v50, 2  ;;  %v1851_v10 = vsel %vm1850_vm13, 1, %v8056_v58  ;;  %vm2238_vm0 = vweird.f32 %v5748_v18  ;;  %v2344_v49 = vadd.s32 %v6511_v35, %v6489_v28 }
 0x34b   : > { %v2228_v41 = vmul.f32 %v2227_v25, %v2223_v32  ;;  %v2235_v4 = vmul.f32 %v2234_v11, %v2223_v32  ;;  %v4527_v27 = vadd.s32 4294967294, %v2356_v33  ;;  %v6611_v36 = vsel %vm1818_vm14, %v1821_v8, %v1823_v34 }
 0x34c   : > { %v1853_v51 = vadd.s32 %v1851_v10, %v1849_v3  ;;  %v1861_v47 = vmul.u32 %v1859_v52, %v6566_v14  ;;  %v2374_v32 = vsub.s32 4, %v6571_v61  ;;  %v1843_v15 = vshrl.u32 %v1839_v9, 16 }
 0x34d   : > { %v2229_v63 = vadd.f32 1.0, %v2228_v41  ;;  %v2236_v54 = vadd.f32 1.0, %v2235_v4  ;;  %vm4528_vm4 = vcmp.lt.s32.totalorder %v4527_v27, 0  ;;  %v1862_v60 = vmul.u32 %v1858_v29, %v1835_v24 }
 0x34e   : > { %v2359_v42 = vsel %vm4528_vm4, 0, %v4527_v27  ;;  %v1864_v55 = vshll.u32 %v1861_v47, 16  ;;  %v1860_v28 = vmul.u32 %v1858_v29, %v6566_v14  ;;  %v1854_v1 = vadd.s32 %v1853_v51, %v1843_v15 }
 0x34f   : > { %v2237_v7 = vmul.f32 %v2236_v54, %v2221_v56  ;;  %v2246_v16 = vxor.u32 2147483648, %v2229_v63  ;;  %v2360_v53 = vsub.s32 32, %v2359_v42  ;;  %v2364_v35 = vsub.s32 4294967266, %v2359_v42 }
 0x350   : > { %v1863_v8 = vmul.u32 %v1859_v52, %v1835_v24  ;;  %v1940_v34 = vand.u32 2147483647, %v8093_v30  ;;  %vm2252_vm5 = vcmp.lt.s32.totalorder %v8079_v62, 0  ;;  %v2361_v43 = vshll.u32 %v6586_v0, %v2359_v42 }
 0x351   : > { %v2243_v45 = vxor.u32 2147483648, %v2237_v7  ;;  %v2362_v12 = vshrl.u32 %v2344_v49, %v2360_v53  ;;  %vm1868_vm7 = vc.u32 %v1860_v28, %v1864_v55  ;;  %v2365_v9 = vadd.s32 127, %v2364_v35 }
 0x352   : > { %v1866_v57 = vshll.u32 %v1862_v60, 16  ;;  %v1869_v56 = vsel %vm1868_vm7, 1, %v8056_v58  ;;  %v1870_v17 = vadd.s32 %v1864_v55, %v1860_v28  ;;  %v2247_v24 = vsel %vm2245_vm9, %v2246_v16, %v2237_v7 }
 0x353   : > { %v2244_v14 = vsel %vm2242_vm2, %v2229_v63, %v2243_v45  ;;  %v2363_v40 = vor.u32 %v2362_v12, %v2361_v43  ;;  %v1871_v38 = vadd.s32 %v1869_v56, %v1863_v8  ;;  %v2366_v25 = vshll.u32 %v2365_v9, 23 }
 0x354   : > { %v2248_v52 = vsel %vm2241_vm3, %v2244_v14, %v2247_v24  ;;  %v1845_v0 = vshrl.u32 %v6590_v39, 16  ;;  %vm1872_vm8 = vc.u32 %v1870_v17, %v1866_v57  ;;  %vm6631_vm12 = vcmp.le.f32.partialorder %v2250_v13, 0.7853982 }
 0x355   : > { %v2249_v11 = vsel %vm2238_vm0, nan, %v2248_v52  ;;  %v1865_v3 = vshrl.u32 %v1861_v47, 16  ;;  %v1873_v29 = vsel %vm1872_vm8, 1, %v8056_v58  ;;  %v1947_v50 = vand.u32 8388607, %v1940_v34 }
 0x356   : > { %3079 = vmatpush.msra.mxu2 %v2249_v11  ;;  %v2367_v41 = vor.u32 4788187, %v2366_v25  ;;  %v6638_v4 = vadd.s32 %v1854_v1, %v1845_v0  ;;  %v1867_v39 = vshrl.u32 %v1862_v60, 16  ;;  %v1875_v27 = vadd.s32 %v1873_v29, %v1871_v38 }
 0x357   : > { %v2370_v18 = vcvt.s32.f32 %v2363_v40  ;;  %v1948_v10 = vor.u32 8388608, %v1947_v50  ;;  %v1957_v13 = vshll.u32 %v8057_v19, %v8081_v48  ;;  %v1958_v49 = vshrl.u32 %v8058_v2, %v8082_v22 }
 0x358   : > { %v2368_v51 = vand.u32 2147483647, %v2367_v41  ;;  %v1876_v47 = vadd.s32 %v1875_v27, %v1865_v3  ;;  %v1960_v63 = vshll.u32 %v8058_v2, %v8081_v48  ;;  %v1961_v54 = vshrl.u32 %v8059_v59, %v8082_v22 }
 0x359   : > { %v6648_v42 = vadd.s32 %v1870_v17, %v1866_v57  ;;  %v6650_v15 = vor.u32 %v1958_v49, %v1957_v13  ;;  %v1963_v60 = vshll.u32 %v8059_v59, %v8081_v48  ;;  %v1964_v55 = vshrl.u32 %v8060_v20, %v8082_v22 }
 0x35a   : > { %v2371_v7 = vmul.f32 %v2370_v18, %v2368_v51  ;;  %v2375_v16 = vsel %vm2252_vm5, %v2374_v32, %v6571_v61  ;;  %v1877_v53 = vadd.s32 %v1876_v47, %v1867_v39  ;;  %v6659_v28 = vor.u32 %v1961_v54, %v1960_v63 }
 0x35b   : > { %vm1880_vm1 = vc.u32 %v6638_v4, %v6648_v42  ;;  %v6663_v35 = vor.u32 %v1964_v55, %v1963_v60  ;;  %vm1974_vm14 = vcmp.lt.s32.totalorder %v8092_v37, 3  ;;  %v6666_v1 = vshll.u32 %v1948_v10, 8 }
 0x35c   : > { %v2372_v48 = vxor.u32 2147483648, %v2371_v7  ;;  %v1881_v8 = vadd.s32 1, %v1877_v53  ;;  %vm1972_vm11 = vcmp.lt.s32.totalorder %v8092_v37, 1  ;;  %v1986_v61 = vsel %vm1974_vm14, %v6501_v26, %v6561_v23 }
 0x35d   : > { %v1878_v32 = vmul.u32 %v6543_v21, %v6611_v36  ;;  %v1980_v45 = vsel %vm1972_vm11, %v6650_v15, %v6659_v28  ;;  %v1982_v43 = vsel %vm1974_vm14, %v6663_v35, %v6557_v6  ;;  %v1984_v12 = vsel %vm1972_vm11, %v6659_v28, %v6663_v35 }
 0x35e   : > { %v2373_v26 = vsel %vm2252_vm5, %v2372_v48, %v2371_v7  ;;  %v2377_v21 = vsel %vm6631_vm12, 0, %v2375_v16  ;;  %v1882_v23 = vsel %vm1880_vm1, %v1881_v8, %v1877_v53  ;;  %vm1973_vm6 = vcmp.lt.s32.totalorder %v8092_v37, 2 }
 0x35f   : > { %v2376_v36 = vsel %vm6631_vm12, %v8079_v62, %v2373_v26  ;;  %v1883_v9 = vadd.s32 %v1882_v23, %v1878_v32  ;;  %v1987_v6 = vsel %vm1973_vm6, %v1984_v12, %v1986_v61  ;;  %v1989_v57 = vand.u32 65535, %v6666_v1 }
 0x360   : > { %v2378_v56 = vmul.f32 %v2376_v36, %v2376_v36  ;;  %v1983_v17 = vsel %vm1973_vm6, %v1980_v45, %v1982_v43  ;;  %v1991_v14 = vand.u32 65535, %v1987_v6  ;;  %v1992_v24 = vshrl.u32 %v1987_v6, 16 }
 0x361   : > { %v1884_v40 = vadd.s32 536870912, %v1883_v9  ;;  %v1990_v38 = vshrl.u32 %v6666_v1, 16  ;;  %v2394_v11 = vadd.s32 3, %v2377_v21  ;;  %v2014_v29 = vshrl.u32 %v1983_v17, 16 }
 0x362   : > { %v2379_v52 = vmul.f32 -0.001358992, %v2378_v56  ;;  %v2386_v25 = vmul.f32 -0.00019511016, %v2378_v56  ;;  %v1994_v0 = vmul.u32 %v1992_v24, %v1989_v57  ;;  %v1993_v39 = vmul.u32 %v1991_v14, %v1989_v57 }
 0x363   : > { %v6701_v33 = vshrl.u32 %v1884_v40, 30  ;;  %v6703_v3 = vmul.u32 %v1991_v14, %v1990_v38  ;;  %v1996_v10 = vmul.u32 %v1992_v24, %v1990_v38  ;;  %v2395_v47 = vand.u32 3, %v2394_v11 }
 0x364   : > { %v2380_v50 = vadd.f32 0.041655596, %v2379_v52  ;;  %v2387_v41 = vadd.f32 0.008332121, %v2386_v25  ;;  %v1997_v27 = vshll.u32 %v1994_v0, 16  ;;  %v2016_v53 = vmul.u32 %v2014_v29, %v1989_v57 }
 0x365   : > { %v1886_v18 = vshll.u32 %v6701_v33, 30  ;;  %v1999_v54 = vshll.u32 %v6703_v3, 16  ;;  %v2013_v8 = vand.u32 65535, %v1983_v17  ;;  %vm2393_vm3 = vweird.f32 %v8079_v62 }
 0x366   : > { %v2381_v13 = vmul.f32 %v2380_v50, %v2378_v56  ;;  %v2388_v49 = vmul.f32 %v2387_v41, %v2378_v56  ;;  %vm2001_vm2 = vc.u32 %v1993_v39, %v1997_v27  ;;  %v2003_v51 = vadd.s32 %v1997_v27, %v1993_v39 }
 0x367   : > { %v1887_v63 = vsub.s32 %v1883_v9, %v1886_v18  ;;  %v2002_v60 = vsel %vm2001_vm2, 1, %v8056_v58  ;;  %vm2396_vm0 = vcmp.lt.s32.totalorder %v2395_v47, 2  ;;  %vm2397_vm4 = vcmp.eq.s32.totalorder %v2395_v47, 0 }
 0x368   : > { %v2382_v55 = vadd.f32 -0.4999988, %v2381_v13  ;;  %v2389_v7 = vadd.f32 -0.16666654, %v2388_v49  ;;  %v2004_v16 = vadd.s32 %v2002_v60, %v1996_v10  ;;  %vm2005_vm13 = vc.u32 %v2003_v51, %v1999_v54 }
 0x369   : > { %vm1888_vm9 = vcmp.lt.s32.totalorder %v1887_v63, 0  ;;  %v1889_v48 = vsub.s32 0, %v1887_v63  ;;  %v2006_v45 = vsel %vm2005_vm13, 1, %v8056_v58  ;;  %v2019_v9 = vshll.u32 %v2016_v53, 16 }
 0x36a   : > { %v2383_v61 = vmul.f32 %v2382_v55, %v2378_v56  ;;  %v2390_v32 = vmul.f32 %v2389_v7, %v2378_v56  ;;  %v2008_v12 = vadd.s32 %v2006_v45, %v2004_v16  ;;  %vm2400_vm5 = vcmp.eq.s32.totalorder %v2395_v47, 2 }
 0x36b   : > { %v1890_v43 = vsel %vm1888_vm9, %v1889_v48, %v1887_v63  ;;  %v1879_v6 = vadd.s32 %v6648_v42, %v6638_v4  ;;  %v2015_v14 = vmul.u32 %v2013_v8, %v1989_v57  ;;  %v2017_v17 = vmul.u32 %v2013_v8, %v1990_v38 }
 0x36c   : > { %v2384_v26 = vadd.f32 1.0, %v2383_v61  ;;  %v2391_v21 = vadd.f32 1.0, %v2390_v32  ;;  %v1891_v23 = vclz %v1890_v43  ;;  %v1998_v52 = vshrl.u32 %v1994_v0, 16 }
 0x36d   : > { %v1956_v25 = vshrl.u32 %v8057_v19, %v8082_v22  ;;  %v1977_v11 = vsel %vm1975_vm15, %v6663_v35, 2102212464  ;;  %v2018_v50 = vmul.u32 %v2014_v29, %v1990_v38  ;;  %vm2023_vm7 = vc.u32 %v2015_v14, %v2019_v9 }
 0x36e   : > { %v2392_v24 = vmul.f32 %v2391_v21, %v2376_v36  ;;  %v2401_v56 = vxor.u32 2147483648, %v2384_v26  ;;  %v4518_v40 = vadd.s32 4294967294, %v1891_v23  ;;  %v2009_v39 = vadd.s32 %v2008_v12, %v1998_v52 }
 0x36f   : > { %v2024_v4 = vsel %vm2023_vm7, 1, %v8056_v58  ;;  %v2021_v57 = vshll.u32 %v2017_v17, 16  ;;  %v2025_v36 = vadd.s32 %v2019_v9, %v2015_v14  ;;  %v2000_v38 = vshrl.u32 %v6703_v3, 16 }
 0x370   : > { %v2398_v41 = vxor.u32 2147483648, %v2392_v24  ;;  %vm4519_vm8 = vcmp.lt.s32.totalorder %v4518_v40, 0  ;;  %v2026_v27 = vadd.s32 %v2024_v4, %v2018_v50  ;;  %v2402_v18 = vsel %vm2400_vm5, %v2401_v56, %v2392_v24 }
 0x371   : > { %v1894_v42 = vsel %vm4519_vm8, 0, %v4518_v40  ;;  %vm2027_vm15 = vc.u32 %v2025_v36, %v2021_v57  ;;  %v1976_v60 = vsel %vm1972_vm11, %v1956_v25, %v6650_v15  ;;  %v2020_v55 = vshrl.u32 %v2016_v53, 16 }
 0x372   : > { %v2399_v0 = vsel %vm2397_vm4, %v2384_v26, %v2398_v41  ;;  %v1895_v22 = vsub.s32 32, %v1894_v42  ;;  %v1899_v10 = vsub.s32 4294967266, %v1894_v42  ;;  %v1896_v35 = vshll.u32 %v1887_v63, %v1894_v42 }
 0x373   : > { %v2403_v13 = vsel %vm2396_vm0, %v2399_v0, %v2402_v18  ;;  %v2028_v54 = vsel %vm2027_vm15, 1, %v8056_v58  ;;  %v1978_v3 = vsel %vm1974_vm14, %v6659_v28, %v1977_v11  ;;  %v2010_v63 = vadd.s32 %v2009_v39, %v2000_v38 }
 0x374   : > { %v2404_v29 = vsel %vm2393_vm3, nan, %v2403_v13  ;;  %v1897_v49 = vshrl.u32 %v1879_v6, %v1895_v22  ;;  %v1900_v51 = vadd.s32 127, %v1899_v10  ;;  %v2030_v7 = vadd.s32 %v2028_v54, %v2026_v27 }
 0x375   : > { %3108 = vmatpush.msra.mxu3 %v2404_v29  ;;  %v2022_v62 = vshrl.u32 %v2017_v17, 16  ;;  %v2029_v61 = vadd.s32 %v2025_v36, %v2021_v57  ;;  %v1979_v32 = vsel %vm1973_vm6, %v1976_v60, %v1978_v3  ;;  %vm1787_vm1 = vcmp.lt.s32.totalorder %v8084_v46, 0 }
 0x376   : > { %v1898_v47 = vor.u32 %v1897_v49, %v1896_v35  ;;  %v1901_v16 = vshll.u32 %v1900_v51, 23  ;;  %v2031_v48 = vadd.s32 %v2030_v7, %v2020_v55  ;;  %v2033_v26 = vmul.u32 %v6666_v1, %v1979_v32 }
 0x377   : > { %vm2035_vm12 = vc.u32 %v2010_v63, %v2029_v61  ;;  %vm6737_vm14 = vcmp.le.f32.partialorder %v1785_v31, 0.7853982  ;;  %v1909_v6 = vsub.s32 4, %v6701_v33  ;;  %v2034_v54 = vadd.s32 %v2029_v61, %v2010_v63  ;;  %v3025_v63 = vld [vmem:[%s7938_s5] sm:$0xff] }
 0x378   : > { %v1902_v8 = vor.u32 4788187, %v1901_v16  ;;  %v2032_v45 = vadd.s32 %v2031_v48, %v2022_v62  ;;  %v1905_v12 = vcvt.s32.f32 %v1898_v47  ;;  %vm1928_vm3 = vweird.f32 %v8084_v46 }
 0x379   : > { %v1910_v56 = vsel %vm1787_vm1, %v1909_v6, %v6701_v33  ;;  %vm1942_vm0 = vcmp.lt.s32.totalorder %v8093_v30, 0  ;;  %vm6762_vm4 = vcmp.le.f32.partialorder %v1940_v34, 0.7853982  ;;  %v3027_v34 = vld [vmem:[%s7938_s5 + $0x10] sm:$0xff]  ;;  %vm2083_vm15 = vweird.f32 %v8093_v30 }
 0x37a   : > { %v1903_v43 = vand.u32 2147483647, %v1902_v8  ;;  %v2036_v15 = vadd.s32 1, %v2032_v45  ;;  %v1912_v41 = vsel %vm6737_vm14, 0, %v1910_v56 }
 0x37b   : > { %v1929_v27 = vadd.s32 3, %v1912_v41 }
 0x37c   : > { %v1906_v53 = vmul.f32 %v1905_v12, %v1903_v43  ;;  %v2037_v21 = vsel %vm2035_vm12, %v2036_v15, %v2032_v45 }
 0x37d   : > { %v2038_v9 = vadd.s32 %v2037_v21, %v2033_v26  ;;  %v1930_v38 = vand.u32 3, %v1929_v27 }
 0x37e   : > { %v1907_v23 = vxor.u32 2147483648, %v1906_v53 }
 0x37f   : > { %v2039_v14 = vadd.s32 536870912, %v2038_v9  ;;  %vm1932_vm2 = vcmp.eq.s32.totalorder %v1930_v38, 0  ;;  %vm1935_vm9 = vcmp.eq.s32.totalorder %v1930_v38, 2  ;;  %vm1931_vm13 = vcmp.lt.s32.totalorder %v1930_v38, 2 }
 0x380   : > { %v1908_v37 = vsel %vm1787_vm1, %v1907_v23, %v1906_v53 }
 0x381   : > { %v1911_v17 = vsel %vm6737_vm14, %v8084_v46, %v1908_v37  ;;  %v6745_v24 = vshrl.u32 %v2039_v14, 30  ;;  %v3026_v46 = vld [vmem:[%s7938_s5 + $0x8] sm:$0xff] }
 0x382   : > { %v1913_v1 = vmul.f32 %v1911_v17, %v1911_v17 }
 0x383   : > { %v2041_v31 = vshll.u32 %v6745_v24, 30 }
 0x384   : > { %v1914_v40 = vmul.f32 -0.001358992, %v1913_v1  ;;  %v1921_v52 = vmul.f32 -0.00019511016, %v1913_v1 }
 0x385   : > { %v2042_v50 = vsub.s32 %v2038_v9, %v2041_v31  ;;  %v2064_v9 = vsub.s32 4, %v6745_v24 }
 0x386   : > { %v1915_v25 = vadd.f32 0.041655596, %v1914_v40  ;;  %v1922_v11 = vadd.f32 0.008332121, %v1921_v52 }
 0x387   : > { %vm2043_vm11 = vcmp.lt.s32.totalorder %v2042_v50, 0  ;;  %v2044_v42 = vsub.s32 0, %v2042_v50 }
 0x388   : > { %v1916_v39 = vmul.f32 %v1915_v25, %v1913_v1  ;;  %v1923_v4 = vmul.f32 %v1922_v11, %v1913_v1 }
 0x389   : > { %v2045_v0 = vsel %vm2043_vm11, %v2044_v42, %v2042_v50  ;;  %v3028_v42 = vld [vmem:[%s7938_s5 + $0x18] sm:$0xff] }
 0x38a   : > { %v1917_v57 = vadd.f32 -0.4999988, %v1916_v39  ;;  %v1924_v36 = vadd.f32 -0.16666654, %v1923_v4  ;;  %v2046_v18 = vclz %v2045_v0 }
 0x38c   : > { %v1918_v33 = vmul.f32 %v1917_v57, %v1913_v1  ;;  %v1925_v22 = vmul.f32 %v1924_v36, %v1913_v1  ;;  %v4521_v10 = vadd.s32 4294967294, %v2046_v18 }
 0x38e   : > { %v1919_v13 = vadd.f32 1.0, %v1918_v33  ;;  %v1926_v35 = vadd.f32 1.0, %v1925_v22  ;;  %vm4522_vm6 = vcmp.lt.s32.totalorder %v4521_v10, 0 }
 0x38f   : > { %v2049_v51 = vsel %vm4522_vm6, 0, %v4521_v10 }
 0x390   : > { %v1927_v29 = vmul.f32 %v1926_v35, %v1911_v17  ;;  %v1936_v49 = vxor.u32 2147483648, %v1919_v13  ;;  %v2050_v60 = vsub.s32 32, %v2049_v51  ;;  %v2054_v55 = vsub.s32 4294967266, %v2049_v51 }
 0x391   : > { %v2051_v47 = vshll.u32 %v2042_v50, %v2049_v51  ;;  %v2065_v17 = vsel %vm1942_vm0, %v2064_v9, %v6745_v24 }
 0x392   : > { %v1933_v7 = vxor.u32 2147483648, %v1927_v29  ;;  %v2052_v16 = vshrl.u32 %v2034_v54, %v2050_v60  ;;  %v2055_v3 = vadd.s32 127, %v2054_v55  ;;  %v1937_v48 = vsel %vm1935_vm9, %v1936_v49, %v1927_v29 }
 0x393   : > { %v2067_v40 = vsel %vm6762_vm4, 0, %v2065_v17 }
 0x394   : > { %v1934_v62 = vsel %vm1932_vm2, %v1919_v13, %v1933_v7  ;;  %v2053_v32 = vor.u32 %v2052_v16, %v2051_v47  ;;  %v2056_v45 = vshll.u32 %v2055_v3, 23  ;;  %v2084_v50 = vadd.s32 3, %v2067_v40  ;;  %v6787_v13 = vpop.permute.xlu0 %3050  ;;  %v3046_v3 = vpop.permute.xlu1 %3045 }
 0x395   : > { %v1938_v8 = vsel %vm1931_vm13, %v1934_v62, %v1937_v48 }
 0x396   : > { %v1939_v43 = vsel %vm1928_vm3, nan, %v1938_v8  ;;  %v2057_v61 = vor.u32 4788187, %v2056_v45  ;;  %v2060_v15 = vcvt.s32.f32 %v2053_v32  ;;  %v2085_v57 = vand.u32 3, %v2084_v50 }
 0x397   : > { %3080 = vmatpush.msra.mxu2 %v1939_v43 }
 0x398   : > { %4541 = vmatmul.msk.f32.vlgmr.msra.gmra.mxu2 %vm1714_vm10, %v3025_v63  ;;  %v2058_v12 = vand.u32 2147483647, %v2057_v61  ;;  %vm2087_vm5 = vcmp.eq.s32.totalorder %v2085_v57, 0  ;;  %vm2090_vm7 = vcmp.eq.s32.totalorder %v2085_v57, 2  ;;  %vm2086_vm8 = vcmp.lt.s32.totalorder %v2085_v57, 2 }
 0x39a   : > { %v2061_v53 = vmul.f32 %v2060_v15, %v2058_v12 }
 0x39c   : > { %v2062_v26 = vxor.u32 2147483648, %v2061_v53  ;;  %v3036_v38 = vpop.permute.xlu0 %3035 }
 0x39e   : > { %v2063_v23 = vsel %vm1942_vm0, %v2062_v26, %v2061_v53 }
 0x39f   : > { %v2066_v28 = vsel %vm6762_vm4, %v8093_v30, %v2063_v23  ;;  %v3041_v30 = vpop.permute.xlu2 %3040 }
 0x3a0   : > { %4542 = vmatmul.msk.f32.gmra.mxu2 %vm1714_vm10, %v3026_v46  ;;  %v2068_v37 = vmul.f32 %v2066_v28, %v2066_v28 }
 0x3a2   : > { %v2069_v6 = vmul.f32 -0.001358992, %v2068_v37  ;;  %v2076_v14 = vmul.f32 -0.00019511016, %v2068_v37 }
 0x3a4   : > { %v2070_v1 = vadd.f32 0.041655596, %v2069_v6  ;;  %v2077_v56 = vadd.f32 0.008332121, %v2076_v14 }
 0x3a6   : > { %v2071_v52 = vmul.f32 %v2070_v1, %v2068_v37  ;;  %v2078_v31 = vmul.f32 %v2077_v56, %v2068_v37 }
 0x3a8   : > { %4543 = vmatmul.msk.f32.gmra.mxu2 %vm1714_vm10, %v3027_v34  ;;  %v2072_v25 = vadd.f32 -0.4999988, %v2071_v52  ;;  %v2079_v11 = vadd.f32 -0.16666654, %v2078_v31 }
 0x3aa   : > { %v2073_v41 = vmul.f32 %v2072_v25, %v2068_v37  ;;  %v2080_v39 = vmul.f32 %v2079_v11, %v2068_v37 }
 0x3ac   : > { %v2074_v4 = vadd.f32 1.0, %v2073_v41  ;;  %v2081_v24 = vadd.f32 1.0, %v2080_v39 }
 0x3ae   : > { %v2082_v36 = vmul.f32 %v2081_v24, %v2066_v28  ;;  %v2091_v27 = vxor.u32 2147483648, %v2074_v4 }
 0x3b0   : > { %4544 = vmatmul.msk.f32.gmra.mxu2 %vm1714_vm10, %v3028_v42  ;;  %v2088_v0 = vxor.u32 2147483648, %v2082_v36  ;;  %v2092_v33 = vsel %vm2090_vm7, %v2091_v27, %v2082_v36 }
 0x3b2   : > { %v2089_v18 = vsel %vm2087_vm5, %v2074_v4, %v2088_v0 }
 0x3b3   : > { %v2093_v22 = vsel %vm2086_vm8, %v2089_v18, %v2092_v33 }
 0x3b4   : > { %v2094_v10 = vsel %vm2083_vm15, nan, %v2093_v22 }
 0x3b5   : > { %3109 = vmatpush.msra.mxu3 %v2094_v10 }
 0x3b6   : > { %4545 = vmatmul.msk.f32.vlgmr.msra.gmra.mxu3 %vm1714_vm10, %v3025_v63 }
 0x3be   : > { %4546 = vmatmul.msk.f32.gmra.mxu3 %vm1714_vm10, %v3026_v46 }
 0x3c6   : > { %4547 = vmatmul.msk.f32.gmra.mxu3 %vm1714_vm10, %v3027_v34 }
 0x3ce   : > { %4548 = vmatmul.msk.f32.gmra.mxu3 %vm1714_vm10, %v3028_v42 }
 0x41b   : > { %v3082_v35 = vpop.f32.mrf.mxu2 }
 0x41c   : > { %v6789_v29 = vadd.f32 %v3082_v35, %v3036_v38 }
 0x41e   : > { %8100 = vst [vmem:[#allocation8_spill] sm:$0xff] %v6789_v29  ;;  %v3126_v49 = vand.u32 2139095040, %v6789_v29 }
 0x420   : > { %v3127_v54 = vshrl.u32 %v3126_v49, 23 }
 0x422   : > { %v4549_v7 = vadd.s32 4294967169, %v3127_v54 }
 0x423   : > { %v3085_v51 = vpop.f32.mrf.mxu2 }
 0x424   : > { %v6792_v60 = vadd.f32 %v3085_v51, %v3041_v30  ;;  %v3133_v62 = vadd.s32 1, %v4549_v7 }
 0x426   : > { %8101 = vst [vmem:[#allocation6_spill] sm:$0xff] %v6792_v60  ;;  %v3436_v55 = vand.u32 2139095040, %v6792_v60  ;;  %vm3134_vm12 = vcmp.gt.s32.totalorder %v3133_v62, 0 }
 0x427   : > { %v3135_v61 = vsel %vm3134_vm12, %v3133_v62, 0 }
 0x428   : > { %v3437_v47 = vshrl.u32 %v3436_v55, 23  ;;  %v6801_v26 = vand.u32 31, %v3135_v61  ;;  %v6833_v18 = vshrl.u32 %v3135_v61, 5 }
 0x42a   : > { %v4555_v16 = vadd.s32 4294967169, %v3437_v47  ;;  %8103 = vst [vmem:[#allocation16_spill] sm:$0xff] %v6801_v26  ;;  %v6811_v6 = vsub.s32 32, %v6801_v26  ;;  %v3149_v11 = vshll.u32 %v8060_v20, %v6801_v26  ;;  %v3152_v50 = vshll.u32 %v8083_v44, %v6801_v26 }
 0x42b   : > { %v3088_v48 = vpop.f32.mrf.mxu2  ;;  %8109 = vst [vmem:[#allocation18_spill] sm:$0xff] %v6833_v18  ;;  %vm3158_vm6 = vcmp.lt.s32.totalorder %v6833_v18, 4 }
 0x42c   : > { %v6795_v8 = vadd.f32 %v3088_v48, %v3046_v3  ;;  %v3443_v45 = vadd.s32 1, %v4555_v16  ;;  %8107 = vst [vmem:[#allocation19_spill] sm:$0xff] %v6811_v6  ;;  %v3150_v52 = vshrl.u32 %v8083_v44, %v6811_v6  ;;  %v3153_v41 = vshrl.u32 %v8024_v5, %v6811_v6 }
 0x42e   : > { %8102 = vst [vmem:[#allocation10_spill] sm:$0xff] %v6795_v8  ;;  %v3746_v43 = vand.u32 2139095040, %v6795_v8  ;;  %vm3444_vm1 = vcmp.gt.s32.totalorder %v3443_v45, 0  ;;  %v6835_v33 = vor.u32 %v3150_v52, %v3149_v11  ;;  %v3154_v22 = vor.u32 %v3153_v41, %v3152_v50 }
 0x42f   : > { %v3445_v15 = vsel %vm3444_vm1, %v3443_v45, 0 }
 0x430   : > { %v3747_v63 = vshrl.u32 %v3746_v43, 23  ;;  %v6806_v28 = vand.u32 31, %v3445_v15  ;;  %8110 = vst [vmem:[#allocation2_spill] sm:$0xff] %v6835_v33  ;;  %v6841_v49 = vshrl.u32 %v3445_v15, 5  ;;  %v6851_v62 = vsel %vm3158_vm6, %v6835_v33, 920167782 }
 0x431   : > { %8113 = vst [vmem:[#allocation9_spill] sm:$0xff] %v6851_v62  ;;  %v6855_v48 = vsel %vm3158_vm6, %v3154_v22, 1326507024 }
 0x432   : > { %v4561_v21 = vadd.s32 4294967169, %v3747_v63  ;;  %8105 = vst [vmem:[#allocation15_spill] sm:$0xff] %v6806_v28  ;;  %v6815_v56 = vsub.s32 32, %v6806_v28  ;;  %v3459_v10 = vshll.u32 %v8060_v20, %v6806_v28  ;;  %v3462_v35 = vshll.u32 %v8083_v44, %v6806_v28 }
 0x433   : > { %v3091_v12 = vpop.f32.mrf.mxu2  ;;  %8111 = vst [vmem:[#allocation7_spill] sm:$0xff] %v6841_v49  ;;  %vm3468_vm2 = vcmp.lt.s32.totalorder %v6841_v49, 4 }
 0x434   : > { %v6799_v53 = vadd.f32 %v3091_v12, %v6787_v13  ;;  %v3753_v14 = vadd.s32 1, %v4561_v21  ;;  %8108 = vst [vmem:[#allocation14_spill] sm:$0xff] %v6815_v56  ;;  %v3460_v24 = vshrl.u32 %v8083_v44, %v6815_v56  ;;  %v3463_v57 = vshrl.u32 %v8024_v5, %v6815_v56 }
 0x435   : > { %8114 = vst [vmem:[#allocation13_spill] sm:$0xff] %v6855_v48 }
 0x436   : > { %v4056_v23 = vand.u32 2139095040, %v6799_v53  ;;  %vm3754_vm14 = vcmp.gt.s32.totalorder %v3753_v14, 0  ;;  %v6845_v7 = vor.u32 %v3460_v24, %v3459_v10  ;;  %v3464_v47 = vor.u32 %v3463_v57, %v3462_v35 }
 0x437   : > { %v3755_v36 = vsel %vm3754_vm14, %v3753_v14, 0 }
 0x438   : > { %v4057_v17 = vshrl.u32 %v4056_v23, 23  ;;  %v6843_v51 = vand.u32 31, %v3755_v36  ;;  %8112 = vst [vmem:[#allocation4_spill] sm:$0xff] %v6845_v7  ;;  %v6869_v15 = vsel %vm3468_vm2, %v6845_v7, 920167782  ;;  %v6877_v23 = vshrl.u32 %v3755_v36, 5 }
 0x439   : > { %v3111_v32 = vpop.f32.mrf.mxu3  ;;  %8115 = vst [vmem:[#allocation12_spill] sm:$0xff] %v6869_v15 }
 0x43a   : > { %v6804_v9 = vadd.f32 %v3111_v32, %v3036_v38  ;;  %v4567_v40 = vadd.s32 4294967169, %v4057_v17  ;;  %v6861_v63 = vsub.s32 32, %v6843_v51  ;;  %v3769_v17 = vshll.u32 %v8060_v20, %v6843_v51 }
 0x43b   : > { %vm3778_vm4 = vcmp.lt.s32.totalorder %v6877_v23, 4 }
 0x43c   : > { %8104 = vst [vmem:[#allocation11_spill] sm:$0xff] %v6804_v9  ;;  %v3281_v1 = vand.u32 2139095040, %v6804_v9  ;;  %v4063_v25 = vadd.s32 1, %v4567_v40  ;;  %v7988_v40 = vand.u32 2147483647, %v6799_v53  ;;  %v3770_v52 = vshrl.u32 %v8083_v44, %v6861_v63 }
 0x43d   : > { %v3773_v11 = vshrl.u32 %v8024_v5, %v6861_v63 }
 0x43e   : > { %v3282_v4 = vshrl.u32 %v3281_v1, 23  ;;  %vm4064_vm11 = vcmp.gt.s32.totalorder %v4063_v25, 0  ;;  %v3772_v1 = vshll.u32 %v8083_v44, %v6843_v51  ;;  %v4060_v22 = vand.u32 8388607, %v7988_v40 }
 0x43f   : > { %v4065_v0 = vsel %vm4064_vm11, %v4063_v25, 0 }
 0x440   : > { %v4067_v54 = vand.u32 31, %v4065_v0  ;;  %v4552_v55 = vadd.s32 4294967169, %v3282_v4  ;;  %v6893_v41 = vshrl.u32 %v4065_v0, 5 }
 0x441   : > { %v3114_v46 = vpop.f32.mrf.mxu3 }
 0x442   : > { %v6808_v37 = vadd.f32 %v3114_v46, %v3041_v30  ;;  %v6857_v45 = vsub.s32 32, %v4067_v54  ;;  %v3288_v12 = vadd.s32 1, %v4552_v55  ;;  %v6873_v46 = vsel %vm3468_vm2, %v3464_v47, 1326507024 }
 0x443   : > { %8116 = vst [vmem:[#allocation17_spill] sm:$0xff] %v6873_v46  ;;  %v4070_v57 = vshll.u32 %v8057_v19, %v4067_v54  ;;  %v4073_v10 = vshll.u32 %v8058_v2, %v4067_v54  ;;  %v6908_v47 = vor.u32 %v3770_v52, %v3769_v17  ;;  %vm4088_vm3 = vcmp.lt.s32.totalorder %v6893_v41, 4 }
 0x444   : > { %8106 = vst [vmem:[#allocation5_spill] sm:$0xff] %v6808_v37  ;;  %v3591_v34 = vand.u32 2139095040, %v6808_v37  ;;  %v4080_v21 = vshrl.u32 %v8083_v44, %v6857_v45  ;;  %v4071_v36 = vshrl.u32 %v8058_v2, %v6857_v45  ;;  %v4074_v35 = vshrl.u32 %v8059_v59, %v6857_v45 }
 0x445   : > { %v4077_v55 = vshrl.u32 %v8060_v20, %v6857_v45  ;;  %vm3289_vm0 = vcmp.gt.s32.totalorder %v3288_v12, 0  ;;  %vm4085_vm5 = vcmp.lt.s32.totalorder %v6893_v41, 1  ;;  %vm4087_vm8 = vcmp.lt.s32.totalorder %v6893_v41, 3 }
 0x446   : > { %v3592_v42 = vshrl.u32 %v3591_v34, 23  ;;  %v4079_v34 = vshll.u32 %v8060_v20, %v4067_v54  ;;  %v6903_v0 = vor.u32 %v4071_v36, %v4070_v57  ;;  %vm4086_vm15 = vcmp.lt.s32.totalorder %v6893_v41, 2 }
 0x447   : > { %v4069_v9 = vshrl.u32 %v8057_v19, %v6857_v45  ;;  %v3763_v41 = vshll.u32 %v8058_v2, %v6843_v51 }
 0x448   : > { %v4558_v30 = vadd.s32 4294967169, %v3592_v42  ;;  %v4081_v4 = vor.u32 %v4080_v21, %v4079_v34 }
 0x449   : > { %v3117_v31 = vpop.f32.mrf.mxu3 }
 0x44a   : > { %v6826_v39 = vadd.f32 %v3117_v31, %v3046_v3  ;;  %v3598_v43 = vadd.s32 1, %v4558_v30  ;;  %v4082_v31 = vshll.u32 %v8083_v44, %v4067_v54  ;;  %v4076_v30 = vshll.u32 %v8059_v59, %v4067_v54 }
 0x44c   : > { %v3901_v27 = vand.u32 2139095040, %v6826_v39  ;;  %vm3599_vm13 = vcmp.gt.s32.totalorder %v3598_v43, 0  ;;  %v6921_v54 = vor.u32 %v4077_v55, %v4076_v30 }
 0x44e   : > { %v3902_v38 = vshrl.u32 %v3901_v27, 23  ;;  %v3600_v27 = vsel %vm3599_vm13, %v3598_v43, 0  ;;  %v4094_v43 = vsel %vm4088_vm3, %v4081_v4, 920167782 }
 0x44f   : > { %v4095_v52 = vsel %vm4087_vm8, %v6921_v54, %v4094_v43 }
 0x450   : > { %v4564_v16 = vadd.s32 4294967169, %v3902_v38 }
 0x451   : > { %v3120_v3 = vpop.f32.mrf.mxu3 }
 0x452   : > { %v3908_v32 = vadd.s32 1, %v4564_v16  ;;  %v6864_v61 = vadd.f32 %v3120_v3, %v6787_v13  ;;  %v4083_v13 = vshrl.u32 %v8024_v5, %v6857_v45  ;;  %v6913_v3 = vor.u32 %v4074_v35, %v4073_v10 }
 0x454   : > { %vm3909_vm9 = vcmp.gt.s32.totalorder %v3908_v32, 0  ;;  %v4211_v14 = vand.u32 2139095040, %v6864_v61  ;;  %v4084_v24 = vor.u32 %v4083_v13, %v4082_v31  ;;  %v4061_v13 = vor.u32 8388608, %v4060_v22 }
 0x455   : > { %v3910_v50 = vsel %vm3909_vm9, %v3908_v32, 0  ;;  %v6915_v32 = vand.u32 31, %v3600_v27  ;;  %v4093_v17 = vsel %vm4085_vm5, %v6903_v0, %v6913_v3 }
 0x456   : > { %v4212_v25 = vshrl.u32 %v4211_v14, 23  ;;  %v6910_v16 = vand.u32 31, %v3910_v50  ;;  %v4098_v21 = vsel %vm4088_vm3, %v4084_v24, 1326507024  ;;  %v3774_v14 = vor.u32 %v3773_v11, %v3772_v1 }
 0x457   : > { %8117 = vst [vmem:[#allocation3_spill] sm:$0xff] %v6915_v32  ;;  %v4097_v1 = vsel %vm4085_vm5, %v6913_v3, %v6921_v54  ;;  %v4099_v31 = vsel %vm4087_vm8, %v4081_v4, %v4098_v21  ;;  %v6945_v11 = vsub.s32 32, %v6915_v32  ;;  %v6950_v24 = vsel %vm3778_vm4, %v6908_v47, 920167782 }
 0x458   : > { %v4570_v42 = vadd.s32 4294967169, %v4212_v25  ;;  %v6931_v34 = vsub.s32 32, %v6910_v16  ;;  %v6942_v25 = vsel %vm3289_vm0, %v3288_v12, 0  ;;  %v4096_v57 = vsel %vm4086_vm15, %v4093_v17, %v4095_v52 }
 0x459   : > { %8118 = vst [vmem:[#allocation20_spill] sm:$0xff] %v6942_v25  ;;  %v4100_v36 = vsel %vm4086_vm15, %v4097_v1, %v4099_v31  ;;  %v6957_v4 = vshll.u32 %v4061_v13, 8  ;;  %v6959_v12 = vshrl.u32 %v3600_v27, 5  ;;  %v6963_v22 = vsel %vm3778_vm4, %v3774_v14, 1326507024 }
 0x45a   : > { %v4218_v38 = vadd.s32 1, %v4570_v42  ;;  %v4104_v10 = vand.u32 65535, %v4100_v36  ;;  %v4105_v35 = vshrl.u32 %v4100_v36, 16  ;;  %v3925_v30 = vshrl.u32 %v8083_v44, %v6931_v34 }
 0x45b   : > { %8119 = vst [vmem:[#allocation21_spill] sm:$0xff] %v6959_v12  ;;  %v4103_v55 = vshrl.u32 %v6957_v4, 16  ;;  %v4127_v43 = vshrl.u32 %v4096_v57, 16  ;;  %v6971_v21 = vshll.u32 %v8060_v20, %v6915_v32  ;;  %v6975_v27 = vshll.u32 %v8083_v44, %v6915_v32 }
 0x45c   : > { %vm4219_vm7 = vcmp.gt.s32.totalorder %v4218_v38, 0  ;;  %v4126_v14 = vand.u32 65535, %v4096_v57  ;;  %v6981_v17 = vshrl.u32 %v8083_v44, %v6945_v11  ;;  %v3924_v52 = vshll.u32 %v8060_v20, %v6910_v16 }
 0x45d   : > { %v4220_v42 = vsel %vm4219_vm7, %v4218_v38, 0  ;;  %v4102_v38 = vand.u32 65535, %v6957_v4  ;;  %8120 = vst [vmem:[#allocation22_spill] sm:$0xff] %v6975_v27  ;;  %v4108_v31 = vmul.u32 %v4104_v10, %v4103_v55  ;;  %v6985_v36 = vshrl.u32 %v3910_v50, 5 }
 0x45e   : > { %v6977_v13 = vand.u32 31, %v4220_v42  ;;  %v6989_v40 = vshll.u32 %v8083_v44, %v6910_v16  ;;  %v6993_v57 = vor.u32 %v3925_v30, %v3924_v52  ;;  %v6997_v33 = vshrl.u32 %v8024_v5, %v6931_v34 }
 0x45f   : > { %v4107_v1 = vmul.u32 %v4105_v35, %v4102_v38  ;;  %v4129_v62 = vmul.u32 %v4127_v43, %v4102_v38  ;;  %v4106_v48 = vmul.u32 %v4104_v10, %v4102_v38  ;;  %v4128_v50 = vmul.u32 %v4126_v14, %v4102_v38 }
 0x460   : > { %v7000_v26 = vsub.s32 32, %v6977_v13  ;;  %v4130_v6 = vmul.u32 %v4126_v14, %v4103_v55  ;;  %v4109_v32 = vmul.u32 %v4105_v35, %v4103_v55  ;;  %v4112_v37 = vshll.u32 %v4108_v31, 16 }
 0x461   : > { %v4110_v18 = vshll.u32 %v4107_v1, 16  ;;  %v4132_v29 = vshll.u32 %v4129_v62, 16  ;;  %v4131_v30 = vmul.u32 %v4127_v43, %v4103_v55  ;;  %v4089_v38 = vsel %vm4085_vm5, %v4069_v9, %v6903_v0 }
 0x462   : > { %v4134_v52 = vshll.u32 %v4130_v6, 16  ;;  %v8008_v12 = vand.u32 2147483647, %v6864_v61  ;;  %vm3933_vm11 = vcmp.lt.s32.totalorder %v6985_v36, 4  ;;  %v4133_v43 = vshrl.u32 %v4129_v62, 16 }
 0x463   : > { %vm4114_vm12 = vc.u32 %v4106_v48, %v4110_v18  ;;  %v4116_v25 = vadd.s32 %v4110_v18, %v4106_v48  ;;  %vm4136_vm1 = vc.u32 %v4128_v50, %v4132_v29  ;;  %v4138_v46 = vadd.s32 %v4132_v29, %v4128_v50 }
 0x464   : > { %v4115_v45 = vsel %vm4114_vm12, 1, %v8056_v58  ;;  %v4137_v10 = vsel %vm4136_vm1, 1, %v8056_v58  ;;  %v4090_v18 = vsel %vm4088_vm3, %v6921_v54, 2102212464  ;;  %v4111_v48 = vshrl.u32 %v4107_v1, 16 }
 0x465   : > { %v4117_v7 = vadd.s32 %v4115_v45, %v4109_v32  ;;  %vm4118_vm14 = vc.u32 %v4116_v25, %v4112_v37  ;;  %v4139_v35 = vadd.s32 %v4137_v10, %v4131_v30  ;;  %vm4140_vm9 = vc.u32 %v4138_v46, %v4134_v52 }
 0x466   : > { %v4119_v14 = vsel %vm4118_vm14, 1, %v8056_v58  ;;  %v7013_v32 = vshrl.u32 %v4220_v42, 5  ;;  %v4235_v29 = vshrl.u32 %v8083_v44, %v7000_v26  ;;  %v4141_v9 = vsel %vm4140_vm9, 1, %v8056_v58 }
 0x467   : > { %v4121_v37 = vadd.s32 %v4119_v14, %v4117_v7  ;;  %v4215_v0 = vand.u32 8388607, %v8008_v12  ;;  %v4113_v25 = vshrl.u32 %v4108_v31, 16  ;;  %v4143_v50 = vadd.s32 %v4141_v9, %v4139_v35 }
 0x468   : > { %v4234_v54 = vshll.u32 %v8060_v20, %v6977_v13  ;;  %v4238_v7 = vshrl.u32 %v8024_v5, %v7000_v26  ;;  %v4091_v42 = vsel %vm4087_vm8, %v6913_v3, %v4090_v18  ;;  %v8007_v1 = vand.u32 2147483647, %v6795_v8 }
 0x469   : > { %v4122_v55 = vadd.s32 %v4121_v37, %v4111_v48  ;;  %v4135_v30 = vshrl.u32 %v4130_v6, 16  ;;  %v4144_v10 = vadd.s32 %v4143_v50, %v4133_v43  ;;  %v4216_v14 = vor.u32 8388608, %v4215_v0 }
 0x46a   : > { %v4236_v31 = vor.u32 %v4235_v29, %v4234_v54  ;;  %v4237_v62 = vshll.u32 %v8083_v44, %v6977_v13  ;;  %vm4243_vm13 = vcmp.lt.s32.totalorder %v7013_v32, 4  ;;  %v4142_v35 = vadd.s32 %v4138_v46, %v4134_v52 }
 0x46b   : > { %v4123_v45 = vadd.s32 %v4122_v55, %v4113_v25  ;;  %v4092_v48 = vsel %vm4086_vm15, %v4089_v38, %v4091_v42  ;;  %v4145_v37 = vadd.s32 %v4144_v10, %v4135_v30  ;;  %v3761_v3 = vshrl.u32 %v8058_v2, %v6861_v63 }
 0x46c   : > { %v3764_v18 = vshrl.u32 %v8059_v59, %v6861_v63  ;;  %v4239_v6 = vor.u32 %v4238_v7, %v4237_v62  ;;  %v3750_v29 = vand.u32 8388607, %v8007_v1  ;;  %v3760_v9 = vshll.u32 %v8057_v19, %v6843_v51 }
 0x46d   : > { %vm4148_vm3 = vc.u32 %v4123_v45, %v4142_v35  ;;  %v4149_v0 = vadd.s32 1, %v4145_v37  ;;  %v7041_v46 = vshll.u32 %v4216_v14, 8  ;;  %v3767_v52 = vshrl.u32 %v8060_v20, %v6861_v63 }
 0x46e   : > { %v7052_v25 = vsel %vm3933_vm11, %v6993_v57, 920167782  ;;  %v4249_v55 = vsel %vm4243_vm13, %v4236_v31, 920167782  ;;  %v4146_v43 = vmul.u32 %v6957_v4, %v4092_v48  ;;  %v7057_v54 = vor.u32 %v3761_v3, %v3760_v9 }
 0x46f   : > { %v4150_v50 = vsel %vm4148_vm3, %v4149_v0, %v4145_v37  ;;  %v7059_v7 = vor.u32 %v3764_v18, %v3763_v41  ;;  %v3766_v42 = vshll.u32 %v8059_v59, %v6843_v51  ;;  %v4253_v30 = vsel %vm4243_vm13, %v4239_v6, 1326507024 }
 0x470   : > { %v4151_v10 = vadd.s32 %v4150_v50, %v4146_v43  ;;  %v3751_v14 = vor.u32 8388608, %v3750_v29  ;;  %vm3775_vm0 = vcmp.lt.s32.totalorder %v6877_v23, 1  ;;  %v7066_v62 = vadd.s32 %v4142_v35, %v4123_v45 }
 0x471   : > { %v4225_v4 = vshll.u32 %v8057_v19, %v6977_v13  ;;  %v4257_v48 = vand.u32 65535, %v7041_v46  ;;  %v7071_v37 = vor.u32 %v3767_v52, %v3766_v42  ;;  %v4226_v51 = vshrl.u32 %v8058_v2, %v7000_v26 }
 0x472   : > { %v4152_v3 = vadd.s32 536870912, %v4151_v10  ;;  %v4228_v18 = vshll.u32 %v8058_v2, %v6977_v13  ;;  %v4229_v6 = vshrl.u32 %v8059_v59, %v7000_v26  ;;  %v4231_v45 = vshll.u32 %v8059_v59, %v6977_v13 }
 0x473   : > { %v4232_v35 = vshrl.u32 %v8060_v20, %v7000_v26  ;;  %vm3777_vm5 = vcmp.lt.s32.totalorder %v6877_v23, 3  ;;  %v3783_v29 = vsel %vm3775_vm0, %v7057_v54, %v7059_v7  ;;  %v4227_v0 = vor.u32 %v4226_v51, %v4225_v4 }
 0x474   : > { %v7088_v9 = vshrl.u32 %v4152_v3, 30  ;;  %v4230_v41 = vor.u32 %v4229_v6, %v4228_v18  ;;  %v7090_v52 = vshll.u32 %v3751_v14, 8  ;;  %vm4240_vm7 = vcmp.lt.s32.totalorder %v7013_v32, 1 }
 0x475   : > { %v4233_v43 = vor.u32 %v4232_v35, %v4231_v45  ;;  %v3785_v13 = vsel %vm3777_vm5, %v7071_v37, %v6950_v24  ;;  %v3787_v50 = vsel %vm3775_vm0, %v7059_v7, %v7071_v37  ;;  %vm4242_vm8 = vcmp.lt.s32.totalorder %v7013_v32, 3 }
 0x476   : > { %v4154_v42 = vshll.u32 %v7088_v9, 30  ;;  %v4248_v14 = vsel %vm4240_vm7, %v4227_v0, %v4230_v41  ;;  %v3789_v4 = vsel %vm3777_vm5, %v6908_v47, %v6963_v22  ;;  %vm4241_vm15 = vcmp.lt.s32.totalorder %v7013_v32, 2 }
 0x477   : > { %v4250_v24 = vsel %vm4242_vm8, %v4233_v43, %v4249_v55  ;;  %v4252_v3 = vsel %vm4240_vm7, %v4230_v41, %v4233_v43  ;;  %v4254_v51 = vsel %vm4242_vm8, %v4236_v31, %v4253_v30  ;;  %v4258_v45 = vshrl.u32 %v7041_v46, 16 }
 0x478   : > { %v7116_v18 = vsub.s32 %v4151_v10, %v4154_v42  ;;  %v4251_v6 = vsel %vm4241_vm15, %v4248_v14, %v4250_v24  ;;  %vm3776_vm12 = vcmp.lt.s32.totalorder %v6877_v23, 2  ;;  %v4224_v47 = vshrl.u32 %v8057_v19, %v7000_v26 }
 0x479   : > { %v4255_v22 = vsel %vm4241_vm15, %v4252_v3, %v4254_v51  ;;  %v7128_v55 = vsel %vm3776_vm12, %v3783_v29, %v3785_v13  ;;  %v7132_v31 = vsel %vm3776_vm12, %v3787_v50, %v3789_v4  ;;  %vm4055_vm1 = vcmp.lt.s32.totalorder %v6799_v53, 0 }
 0x47a   : > { %vm4156_vm14 = vcmp.lt.s32.totalorder %v7116_v18, 0  ;;  %v4157_v30 = vsub.s32 0, %v7116_v18  ;;  %v4259_v10 = vand.u32 65535, %v4255_v22  ;;  %v4260_v35 = vshrl.u32 %v4255_v22, 16 }
 0x47b   : > { %v4245_v26 = vsel %vm4243_vm13, %v4233_v43, 2102212464  ;;  %v4281_v42 = vand.u32 65535, %v4251_v6  ;;  %v4282_v14 = vshrl.u32 %v4251_v6, 16  ;;  %v7140_v29 = vand.u32 65535, %v7090_v52 }
 0x47c   : > { %v4158_v13 = vsel %vm4156_vm14, %v4157_v30, %v7116_v18  ;;  %v4262_v50 = vmul.u32 %v4260_v35, %v4257_v48  ;;  %v4263_v4 = vmul.u32 %v4259_v10, %v4258_v45  ;;  %v7144_v24 = vshrl.u32 %v7090_v52, 16 }
 0x47d   : > { %v4159_v3 = vclz %v4158_v13  ;;  %v4177_v51 = vsub.s32 4, %v7088_v9  ;;  %v4284_v1 = vmul.u32 %v4282_v14, %v4257_v48  ;;  %v3794_v22 = vand.u32 65535, %v7132_v31 }
 0x47e   : > { %v4244_v43 = vsel %vm4240_vm7, %v4224_v47, %v4227_v0  ;;  %v4246_v6 = vsel %vm4242_vm8, %v4230_v41, %v4245_v26  ;;  %v4261_v12 = vmul.u32 %v4259_v10, %v4257_v48  ;;  %v4265_v38 = vshll.u32 %v4262_v50, 16 }
 0x47f   : > { %v4568_v30 = vadd.s32 4294967294, %v4159_v3  ;;  %v4283_v44 = vmul.u32 %v4281_v42, %v4257_v48  ;;  %v4285_v15 = vmul.u32 %v4281_v42, %v4258_v45  ;;  %v4287_v49 = vshll.u32 %v4284_v1, 16 }
 0x480   : > { %v4264_v27 = vmul.u32 %v4260_v35, %v4258_v45  ;;  %v4267_v28 = vshll.u32 %v4263_v4, 16  ;;  %vm4269_vm9 = vc.u32 %v4261_v12, %v4265_v38  ;;  %v4271_v13 = vadd.s32 %v4265_v38, %v4261_v12 }
 0x481   : > { %vm4569_vm13 = vcmp.lt.s32.totalorder %v4568_v30, 0  ;;  %v4270_v56 = vsel %vm4269_vm9, 1, %v8056_v58  ;;  %v4286_v60 = vmul.u32 %v4282_v14, %v4258_v45  ;;  %vm4291_vm3 = vc.u32 %v4283_v44, %v4287_v49 }
 0x482   : > { %v4162_v8 = vsel %vm4569_vm13, 0, %v4568_v30  ;;  %v4272_v0 = vadd.s32 %v4270_v56, %v4264_v27  ;;  %vm4273_vm7 = vc.u32 %v4271_v13, %v4267_v28  ;;  %v4292_v41 = vsel %vm4291_vm3, 1, %v8056_v58 }
 0x483   : > { %v4163_v47 = vsub.s32 32, %v4162_v8  ;;  %v4167_v10 = vsub.s32 4294967266, %v4162_v8  ;;  %v4178_v48 = vsel %vm4055_vm1, %v4177_v51, %v7088_v9  ;;  %v3795_v35 = vshrl.u32 %v7132_v31, 16 }
 0x484   : > { %v4274_v12 = vsel %vm4273_vm7, 1, %v8056_v58  ;;  %v4289_v38 = vshll.u32 %v4285_v15, 16  ;;  %v4293_v26 = vadd.s32 %v4287_v49, %v4283_v44  ;;  %v4294_v42 = vadd.s32 %v4292_v41, %v4286_v60 }
 0x485   : > { %v8121_v45 = vand.u32 2147483647, %v6799_v53  ;;  %v4164_v28 = vshll.u32 %v7116_v18, %v4162_v8  ;;  %v4165_v27 = vshrl.u32 %v7066_v62, %v4163_v47  ;;  %v4168_v14 = vadd.s32 127, %v4167_v10 }
 0x486   : > { %v4247_v9 = vsel %vm4241_vm15, %v4244_v43, %v4246_v6  ;;  %v4266_v31 = vshrl.u32 %v4262_v50, 16  ;;  %v4268_v3 = vshrl.u32 %v4263_v4, 16  ;;  %v4276_v51 = vadd.s32 %v4274_v12, %v4272_v0 }
 0x487   : > { %vm7161_vm8 = vcmp.le.f32.partialorder %v8121_v45, 0.7853982  ;;  %vm4295_vm14 = vc.u32 %v4293_v26, %v4289_v38  ;;  %v4166_v44 = vor.u32 %v4165_v27, %v4164_v28  ;;  %v4169_v60 = vshll.u32 %v4168_v14, 23 }
 0x488   : > { %v4296_v49 = vsel %vm4295_vm14, 1, %v8056_v58  ;;  %v7171_v30 = vmul.u32 %v3795_v35, %v7140_v29  ;;  %v4277_v13 = vadd.s32 %v4276_v51, %v4266_v31  ;;  %v4288_v41 = vshrl.u32 %v4284_v1, 16 }
 0x489   : > { %v4298_v8 = vadd.s32 %v4296_v49, %v4294_v42  ;;  %v7174_v62 = vmul.u32 %v3794_v22, %v7144_v24  ;;  %v4170_v18 = vor.u32 4788187, %v4169_v60  ;;  %v4290_v32 = vshrl.u32 %v4285_v15, 16 }
 0x48a   : > { %v3796_v50 = vmul.u32 %v3794_v22, %v7140_v29  ;;  %v3800_v4 = vshll.u32 %v7171_v30, 16  ;;  %v4173_v43 = vcvt.s32.f32 %v4166_v44  ;;  %v7178_v6 = vadd.s32 %v4277_v13, %v4268_v3 }
 0x48b   : > { %v4297_v0 = vadd.s32 %v4293_v26, %v4289_v38  ;;  %v4299_v47 = vadd.s32 %v4298_v8, %v4288_v41  ;;  %v4171_v10 = vand.u32 2147483647, %v4170_v18  ;;  %v3802_v12 = vshll.u32 %v7174_v62, 16 }
 0x48c   : > { %vm3804_vm15 = vc.u32 %v3796_v50, %v3800_v4  ;;  %v3806_v1 = vadd.s32 %v3800_v4, %v3796_v50  ;;  %v3799_v45 = vmul.u32 %v3795_v35, %v7144_v24  ;;  %v3816_v15 = vand.u32 65535, %v7128_v55 }
 0x48d   : > { %v4300_v42 = vadd.s32 %v4299_v47, %v4290_v32  ;;  %v3805_v28 = vsel %vm3804_vm15, 1, %v8056_v58  ;;  %v4174_v22 = vmul.f32 %v4173_v43, %v4171_v10  ;;  %vm4303_vm9 = vc.u32 %v7178_v6, %v4297_v0 }
 0x48e   : > { %vm3808_vm13 = vc.u32 %v3806_v1, %v3802_v12  ;;  %v3817_v27 = vshrl.u32 %v7128_v55, 16  ;;  %v8124_v38 = vor.u32 %v6997_v33, %v6989_v40  ;;  %v4180_v35 = vsel %vm7161_vm8, 0, %v4178_v48 }
 0x48f   : > { %v4304_v14 = vadd.s32 1, %v4300_v42  ;;  %v3780_v31 = vsel %vm3778_vm4, %v7071_v37, 2102212464  ;;  %v4175_v3 = vxor.u32 2147483648, %v4174_v22  ;;  %v4301_v51 = vmul.u32 %v7041_v46, %v4247_v9 }
 0x490   : > { %v7191_v26 = vsel %vm3933_vm11, %v8124_v38, 1326507024  ;;  %v3807_v44 = vadd.s32 %v3805_v28, %v3799_v45  ;;  %v3819_v55 = vmul.u32 %v3817_v27, %v7140_v29  ;;  %v3759_v33 = vshrl.u32 %v8057_v19, %v6861_v63 }
 0x491   : > { %v4305_v60 = vsel %vm4303_vm9, %v4304_v14, %v4300_v42  ;;  %v3809_v40 = vsel %vm3808_vm13, 1, %v8056_v58  ;;  %v3820_v49 = vmul.u32 %v3816_v15, %v7144_v24  ;;  %v4176_v48 = vsel %vm4055_vm1, %v4175_v3, %v4174_v22 }
 0x492   : > { %v4306_v13 = vadd.s32 %v4305_v60, %v4301_v51  ;;  %v3818_v37 = vmul.u32 %v3816_v15, %v7140_v29  ;;  %v3822_v41 = vshll.u32 %v3819_v55, 16  ;;  %v7210_v46 = vsel %vm7161_vm8, %v6799_v53, %v4176_v48 }
 0x493   : > { %v4197_v9 = vadd.s32 3, %v4180_v35  ;;  %v3779_v63 = vsel %vm3775_vm0, %v3759_v33, %v7057_v54  ;;  %v3781_v8 = vsel %vm3777_vm5, %v7059_v7, %v3780_v31  ;;  %v4181_v18 = vmul.f32 %v7210_v46, %v7210_v46 }
 0x494   : > { %v4307_v32 = vadd.s32 536870912, %v4306_v13  ;;  %v3811_v29 = vadd.s32 %v3809_v40, %v3807_v44  ;;  %vm3826_vm4 = vc.u32 %v3818_v37, %v3822_v41  ;;  %v3821_v50 = vmul.u32 %v3817_v27, %v7144_v24 }
 0x495   : > { %v3824_v56 = vshll.u32 %v3820_v49, 16  ;;  %v3827_v4 = vsel %vm3826_vm4, 1, %v8056_v58  ;;  %v3828_v43 = vadd.s32 %v3822_v41, %v3818_v37  ;;  %v7224_v47 = vshrl.u32 %v8024_v5, %v6945_v11 }
 0x496   : > { %v4182_v54 = vmul.f32 -0.001358992, %v4181_v18  ;;  %v4189_v10 = vmul.f32 -0.00019511016, %v4181_v18  ;;  %v4308_v12 = vshrl.u32 %v4307_v32, 30  ;;  %vm4210_vm0 = vcmp.lt.s32.totalorder %v6864_v61, 0 }
 0x497   : > { %v3801_v7 = vshrl.u32 %v7171_v30, 16  ;;  %v3829_v1 = vadd.s32 %v3827_v4, %v3821_v50  ;;  %vm3830_vm5 = vc.u32 %v3828_v43, %v3824_v56  ;;  %v3898_v42 = vand.u32 2147483647, %v6826_v39 }
 0x498   : > { %v4183_v24 = vadd.f32 0.041655596, %v4182_v54  ;;  %v4190_v45 = vadd.f32 0.008332121, %v4189_v10  ;;  %v4309_v28 = vshll.u32 %v4308_v12, 30  ;;  %v3782_v15 = vsel %vm3776_vm12, %v3779_v63, %v3781_v8 }
 0x499   : > { %v7231_v22 = vand.u32 3, %v4197_v9  ;;  %v3803_v27 = vshrl.u32 %v7174_v62, 16  ;;  %v3812_v38 = vadd.s32 %v3811_v29, %v3801_v7  ;;  %v3831_v35 = vsel %vm3830_vm5, 1, %v8056_v58 }
 0x49a   : > { %v4184_v14 = vmul.f32 %v4183_v24, %v4181_v18  ;;  %v4191_v31 = vmul.f32 %v4190_v45, %v4181_v18  ;;  %v8125_v30 = vand.u32 2147483647, %v6864_v61  ;;  %v4302_v51 = vadd.s32 %v4297_v0, %v7178_v6 }
 0x49b   : > { %v7242_v44 = vsub.s32 %v4306_v13, %v4309_v28  ;;  %v4332_v23 = vsub.s32 4, %v4308_v12  ;;  %v3823_v60 = vshrl.u32 %v3819_v55, 16  ;;  %v3833_v33 = vadd.s32 %v3831_v35, %v3829_v1 }
 0x49c   : > { %vm7237_vm1 = vcmp.le.f32.partialorder %v8125_v30, 0.7853982  ;;  %v7246_v62 = vand.u32 8388607, %v3898_v42  ;;  %v4185_v40 = vadd.f32 -0.4999988, %v4184_v14  ;;  %v7252_v6 = vadd.s32 %v3812_v38, %v3803_v27 }
 0x49d   : > { %v4192_v48 = vadd.f32 -0.16666654, %v4191_v31  ;;  %vm4311_vm12 = vcmp.lt.s32.totalorder %v7242_v44, 0  ;;  %v4312_v37 = vsub.s32 0, %v7242_v44  ;;  %vm4200_vm3 = vcmp.eq.s32.totalorder %v7231_v22, 0 }
 0x49e   : > { %vm4203_vm7 = vcmp.eq.s32.totalorder %v7231_v22, 2  ;;  %v3825_v0 = vshrl.u32 %v3820_v49, 16  ;;  %v3834_v13 = vadd.s32 %v3833_v33, %v3823_v60  ;;  %v3836_v55 = vmul.u32 %v7090_v52, %v3782_v15 }
 0x49f   : > { %v4186_v41 = vmul.f32 %v4185_v40, %v4181_v18  ;;  %v4193_v9 = vmul.f32 %v4192_v48, %v4181_v18  ;;  %vm4199_vm8 = vcmp.lt.s32.totalorder %v7231_v22, 2  ;;  %v4313_v63 = vsel %vm4311_vm12, %v4312_v37, %v7242_v44 }
 0x4a0   : > { %v7257_v8 = vadd.s32 %v3828_v43, %v3824_v56  ;;  %vm4196_vm14 = vweird.f32 %v6799_v53  ;;  %v4314_v32 = vclz %v4313_v63  ;;  %v3835_v29 = vadd.s32 %v3834_v13, %v3825_v0 }
 0x4a1   : > { %v3906_v50 = vor.u32 8388608, %v7246_v62  ;;  %v3919_v49 = vshrl.u32 %v8059_v59, %v6931_v34  ;;  %v4187_v4 = vadd.f32 1.0, %v4186_v41  ;;  %v4194_v54 = vadd.f32 1.0, %v4193_v9 }
 0x4a2   : > { %v4333_v52 = vsel %vm4210_vm0, %v4332_v23, %v4308_v12  ;;  %v3922_v18 = vshrl.u32 %v8060_v20, %v6931_v34  ;;  %v4571_v10 = vadd.s32 4294967294, %v4314_v32  ;;  %vm3838_vm15 = vc.u32 %v7252_v6, %v7257_v8 }
 0x4a3   : > { %v3916_v56 = vshrl.u32 %v8058_v2, %v6931_v34  ;;  %v3918_v43 = vshll.u32 %v8058_v2, %v6910_v16  ;;  %v4195_v7 = vmul.f32 %v4194_v54, %v7210_v46  ;;  %v4204_v1 = vxor.u32 2147483648, %v4187_v4 }
 0x4a4   : > { %v3839_v24 = vadd.s32 1, %v3835_v29  ;;  %v3921_v12 = vshll.u32 %v8059_v59, %v6910_v16  ;;  %vm4572_vm9 = vcmp.lt.s32.totalorder %v4571_v10, 0  ;;  %v4335_v45 = vsel %vm7237_vm1, 0, %v4333_v52 }
 0x4a5   : > { %v3915_v28 = vshll.u32 %v8057_v19, %v6910_v16  ;;  %v7280_v15 = vor.u32 %v3919_v49, %v3918_v43  ;;  %v4201_v27 = vxor.u32 2147483648, %v4195_v7  ;;  %v4317_v38 = vsel %vm4572_vm9, 0, %v4571_v10  ;;  %v8128_v10 = vld [vmem:[#allocation10_spill] sm:$0xff] }
 0x4a6   : > { %v3840_v35 = vsel %vm3838_vm15, %v3839_v24, %v3835_v29  ;;  %v3923_v14 = vor.u32 %v3922_v18, %v3921_v12  ;;  %v4318_v31 = vsub.s32 32, %v4317_v38  ;;  %v4322_v46 = vsub.s32 4294967266, %v4317_v38 }
 0x4a7   : > { %v3841_v30 = vadd.s32 %v3840_v35, %v3836_v55  ;;  %v3917_v23 = vor.u32 %v3916_v56, %v3915_v28  ;;  %v4202_v60 = vsel %vm4200_vm3, %v4187_v4, %v4201_v27  ;;  %v4205_v33 = vsel %vm4203_vm7, %v4204_v1, %v4195_v7 }
 0x4a8   : > { %v4319_v62 = vshll.u32 %v7242_v44, %v4317_v38  ;;  %vm3930_vm13 = vcmp.lt.s32.totalorder %v6985_v36, 1  ;;  %v4206_v16 = vsel %vm4199_vm8, %v4202_v60, %v4205_v33  ;;  %v4320_v40 = vshrl.u32 %v4302_v51, %v4318_v31 }
 0x4a9   : > { %v4323_v48 = vadd.s32 127, %v4322_v46  ;;  %v3842_v37 = vadd.s32 536870912, %v3841_v30  ;;  %v4207_v0 = vsel %vm4196_vm14, nan, %v4206_v16  ;;  %vm3931_vm4 = vcmp.lt.s32.totalorder %v6985_v36, 2 }
 0x4aa   : > { %vm3932_vm5 = vcmp.lt.s32.totalorder %v6985_v36, 3  ;;  %v3942_v13 = vsel %vm3930_vm13, %v7280_v15, %v3923_v14  ;;  %4385 = vmatpush.msrb.mxu0 %v4207_v0  ;;  %v4321_v44 = vor.u32 %v4320_v40, %v4319_v62  ;;  %v3938_v53 = vsel %vm3930_vm13, %v3917_v23, %v7280_v15 }
 0x4ab   : > { %v4324_v55 = vshll.u32 %v4323_v48, 23  ;;  %v3843_v41 = vshrl.u32 %v3842_v37, 30  ;;  %v3944_v22 = vsel %vm3932_vm5, %v6993_v57, %v7191_v26  ;;  %v3940_v51 = vsel %vm3932_vm5, %v3923_v14, %v7052_v25 }
 0x4ac   : > { %v3945_v9 = vsel %vm3931_vm4, %v3942_v13, %v3944_v22  ;;  %v7309_v63 = vshll.u32 %v3906_v50, 8  ;;  %v7313_v32 = vor.u32 %v6981_v17, %v6971_v21  ;;  %v4352_v49 = vadd.s32 3, %v4335_v45 }
 0x4ad   : > { %v4325_v29 = vor.u32 4788187, %v4324_v55  ;;  %v3844_v57 = vshll.u32 %v3843_v41, 30  ;;  %v3949_v54 = vand.u32 65535, %v3945_v9  ;;  %v3950_v52 = vshrl.u32 %v3945_v9, 16 }
 0x4ae   : > { %v3947_v26 = vand.u32 65535, %v7309_v63  ;;  %v3948_v4 = vshrl.u32 %v7309_v63, 16  ;;  %v4328_v25 = vcvt.s32.f32 %v4321_v44  ;;  %vm3745_vm12 = vcmp.lt.s32.totalorder %v8128_v10, 0 }
 0x4af   : > { %v4326_v18 = vand.u32 2147483647, %v4325_v29  ;;  %v3845_v56 = vsub.s32 %v3841_v30, %v3844_v57  ;;  %v3941_v50 = vsel %vm3931_vm4, %v3938_v53, %v3940_v51  ;;  %v3837_v21 = vadd.s32 %v7257_v8, %v7252_v6 }
 0x4b0   : > { %v3914_v17 = vshrl.u32 %v8057_v19, %v6931_v34  ;;  %v3952_v43 = vmul.u32 %v3950_v52, %v3947_v26  ;;  %v7324_v7 = vmul.u32 %v3949_v54, %v3948_v4  ;;  %v7326_v24 = vand.u32 3, %v4352_v49 }
 0x4b1   : > { %v4329_v1 = vmul.f32 %v4328_v25, %v4326_v18  ;;  %vm3846_vm3 = vcmp.lt.s32.totalorder %v3845_v56, 0  ;;  %v3847_v12 = vsub.s32 0, %v3845_v56  ;;  %v3935_v45 = vsel %vm3933_vm11, %v3923_v14, 2102212464 }
 0x4b2   : > { %v3951_v28 = vmul.u32 %v3949_v54, %v3947_v26  ;;  %v3955_v27 = vshll.u32 %v3952_v43, 16  ;;  %v3971_v38 = vand.u32 65535, %v3941_v50  ;;  %v3867_v6 = vsub.s32 4, %v3843_v41 }
 0x4b3   : > { %v4330_v35 = vxor.u32 2147483648, %v4329_v1  ;;  %v3848_v31 = vsel %vm3846_vm3, %v3847_v12, %v3845_v56  ;;  %v3972_v8 = vshrl.u32 %v3941_v50, 16  ;;  %v3957_v34 = vshll.u32 %v7324_v7, 16 }
 0x4b4   : > { %v3849_v46 = vclz %v3848_v31  ;;  %vm3959_vm7 = vc.u32 %v3951_v28, %v3955_v27  ;;  %v3961_v30 = vadd.s32 %v3955_v27, %v3951_v28  ;;  %v3934_v33 = vsel %vm3930_vm13, %v3914_v17, %v3917_v23 }
 0x4b5   : > { %v4331_v60 = vsel %vm4210_vm0, %v4330_v35, %v4329_v1  ;;  %v3936_v14 = vsel %vm3932_vm5, %v7280_v15, %v3935_v45  ;;  %v3954_v62 = vmul.u32 %v3950_v52, %v3948_v4  ;;  %v3960_v48 = vsel %vm3959_vm7, 1, %v8056_v58 }
 0x4b6   : > { %v7341_v16 = vsel %vm7237_vm1, %v6864_v61, %v4331_v60  ;;  %v4562_v40 = vadd.s32 4294967294, %v3849_v46  ;;  %vm3963_vm11 = vc.u32 %v3961_v30, %v3957_v34  ;;  %v8129_v0 = vand.u32 2147483647, %v8128_v10 }
 0x4b7   : > { %v4336_v37 = vmul.f32 %v7341_v16, %v7341_v16  ;;  %v3962_v15 = vadd.s32 %v3960_v48, %v3954_v62  ;;  %v3964_v13 = vsel %vm3963_vm11, 1, %v8056_v58  ;;  %v3974_v44 = vmul.u32 %v3972_v8, %v3947_v26 }
 0x4b8   : > { %vm7348_vm0 = vcmp.le.f32.partialorder %v8129_v0, 0.7853982  ;;  %vm4563_vm8 = vcmp.lt.s32.totalorder %v4562_v40, 0  ;;  %v3868_v3 = vsel %vm3745_vm12, %v3867_v6, %v3843_v41  ;;  %v7357_v55 = vsel %vm3931_vm4, %v3934_v33, %v3936_v14 }
 0x4b9   : > { %v3975_v22 = vmul.u32 %v3971_v38, %v3948_v4  ;;  %v4337_v53 = vmul.f32 -0.001358992, %v4336_v37  ;;  %v4344_v51 = vmul.f32 -0.00019511016, %v4336_v37  ;;  %v3852_v9 = vsel %vm4563_vm8, 0, %v4562_v40  ;;  %v8132_v40 = vld [vmem:[#allocation6_spill] sm:$0xff] }
 0x4ba   : > { %v3966_v29 = vadd.s32 %v3964_v13, %v3962_v15  ;;  %v3853_v49 = vsub.s32 32, %v3852_v9  ;;  %v3857_v57 = vsub.s32 4294967266, %v3852_v9  ;;  %v3956_v54 = vshrl.u32 %v3952_v43, 16 }
 0x4bb   : > { %v3977_v52 = vshll.u32 %v3974_v44, 16  ;;  %v4338_v18 = vadd.f32 0.041655596, %v4337_v53  ;;  %v4345_v25 = vadd.f32 0.008332121, %v4344_v51  ;;  %v3973_v50 = vmul.u32 %v3971_v38, %v3947_v26 }
 0x4bc   : > { %v3976_v17 = vmul.u32 %v3972_v8, %v3948_v4  ;;  %v3854_v1 = vshll.u32 %v3845_v56, %v3852_v9  ;;  %v3855_v12 = vshrl.u32 %v3837_v21, %v3853_v49  ;;  %v3858_v41 = vadd.s32 127, %v3857_v57  ;;  %v8133_v49 = vld [vmem:[#allocation14_spill] sm:$0xff] }
 0x4bd   : > { %v3967_v45 = vadd.s32 %v3966_v29, %v3956_v54  ;;  %v4339_v36 = vmul.f32 %v4338_v18, %v4336_v37  ;;  %v4346_v28 = vmul.f32 %v4345_v25, %v4336_v37  ;;  %v3979_v27 = vshll.u32 %v3975_v22, 16 }
 0x4be   : > { %vm3981_vm1 = vc.u32 %v3973_v50, %v3977_v52  ;;  %vm4358_vm14 = vcmp.eq.s32.totalorder %v7326_v24, 2  ;;  %v3856_v35 = vor.u32 %v3855_v12, %v3854_v1  ;;  %v3859_v31 = vshll.u32 %v3858_v41, 23 }
 0x4bf   : > { %v3982_v6 = vsel %vm3981_vm1, 1, %v8056_v58  ;;  %v3983_v43 = vadd.s32 %v3977_v52, %v3973_v50  ;;  %v4340_v46 = vadd.f32 -0.4999988, %v4339_v36  ;;  %v4347_v34 = vadd.f32 -0.16666654, %v4346_v28 }
 0x4c0   : > { %v3958_v26 = vshrl.u32 %v7324_v7, 16  ;;  %v3984_v4 = vadd.s32 %v3982_v6, %v3976_v17  ;;  %vm4355_vm15 = vcmp.eq.s32.totalorder %v7326_v24, 0  ;;  %v3860_v56 = vor.u32 4788187, %v3859_v31 }
 0x4c1   : > { %v3870_v21 = vsel %vm7348_vm0, 0, %v3868_v3  ;;  %v3978_v38 = vshrl.u32 %v3974_v44, 16  ;;  %vm3985_vm9 = vc.u32 %v3983_v43, %v3979_v27  ;;  %v4341_v8 = vmul.f32 %v4340_v46, %v4336_v37  ;;  %v8135_v46 = vld [vmem:[#allocation22_spill] sm:$0xff] }
 0x4c2   : > { %v4348_v30 = vmul.f32 %v4347_v34, %v4336_v37  ;;  %vm4354_vm13 = vcmp.lt.s32.totalorder %v7326_v24, 2  ;;  %v7366_v60 = vadd.s32 %v3967_v45, %v3958_v26  ;;  %v3986_v33 = vsel %vm3985_vm9, 1, %v8056_v58 }
 0x4c3   : > { %vm4351_vm4 = vweird.f32 %v6864_v61  ;;  %v3861_v7 = vand.u32 2147483647, %v3860_v56  ;;  %v3863_v14 = vcvt.s32.f32 %v3856_v35  ;;  %v3988_v62 = vadd.s32 %v3986_v33, %v3984_v4  ;;  %v8138_v33 = vld [vmem:[#allocation21_spill] sm:$0xff] }
 0x4c4   : > { %v3433_v48 = vand.u32 2147483647, %v8132_v40  ;;  %v4342_v0 = vadd.f32 1.0, %v4341_v8  ;;  %v4349_v15 = vadd.f32 1.0, %v4348_v30  ;;  %v7371_v13 = vadd.s32 %v3983_v43, %v3979_v27  ;;  %v8137_v30 = vld [vmem:[#allocation12_spill] sm:$0xff] }
 0x4c5   : > { %v3991_v37 = vmul.u32 %v7309_v63, %v7357_v55  ;;  %v3864_v44 = vmul.f32 %v3863_v14, %v3861_v7  ;;  %v3887_v3 = vadd.s32 3, %v3870_v21  ;;  %v3980_v53 = vshrl.u32 %v3975_v22, 16  ;;  %v8136_v21 = vld [vmem:[#allocation7_spill] sm:$0xff] }
 0x4c6   : > { %v3989_v51 = vadd.s32 %v3988_v62, %v3978_v38  ;;  %v4350_v9 = vmul.f32 %v4349_v15, %v7341_v16  ;;  %v4359_v29 = vxor.u32 2147483648, %v4342_v0  ;;  %vm3993_vm5 = vc.u32 %v7366_v60, %v7371_v13  ;;  %v8134_v16 = vld [vmem:[#allocation15_spill] sm:$0xff]  ;;  %v8139_v15 = vld [vmem:[#allocation17_spill] sm:$0xff] }
 0x4c7   : > { %v3451_v57 = vshrl.u32 %v8058_v2, %v8133_v49  ;;  %v3865_v54 = vxor.u32 2147483648, %v3864_v44  ;;  %v3440_v18 = vand.u32 8388607, %v3433_v48  ;;  %v3454_v63 = vshrl.u32 %v8059_v59, %v8133_v49 }
 0x4c8   : > { %v3990_v52 = vadd.s32 %v3989_v51, %v3980_v53  ;;  %v4356_v55 = vxor.u32 2147483648, %v4350_v9  ;;  %v4360_v22 = vsel %vm4358_vm14, %v4359_v29, %v4350_v9  ;;  %v3450_v25 = vshll.u32 %v8057_v19, %v8134_v16 }
 0x4c9   : > { %v3453_v50 = vshll.u32 %v8058_v2, %v8134_v16  ;;  %v3866_v17 = vsel %vm3745_vm12, %v3865_v54, %v3864_v44  ;;  %v3456_v12 = vshll.u32 %v8059_v59, %v8134_v16  ;;  %v3457_v41 = vshrl.u32 %v8060_v20, %v8133_v49 }
 0x4ca   : > { %v3994_v1 = vadd.s32 1, %v3990_v52  ;;  %v4357_v45 = vsel %vm4355_vm15, %v4342_v0, %v4356_v55  ;;  %v7401_v36 = vsel %vm7348_vm0, %v8128_v10, %v3866_v17  ;;  %v7403_v28 = vor.u32 %v3451_v57, %v3450_v25  ;;  %v8141_v57 = vld [vmem:[#allocation20_spill] sm:$0xff] }
 0x4cb   : > { %v7405_v27 = vor.u32 %v3454_v63, %v3453_v50  ;;  %v4361_v35 = vsel %vm4354_vm13, %v4357_v45, %v4360_v22  ;;  %v3871_v31 = vmul.f32 %v7401_v36, %v7401_v36  ;;  %v3458_v43 = vor.u32 %v3457_v41, %v3456_v12 }
 0x4cc   : > { %v3995_v6 = vsel %vm3993_vm5, %v3994_v1, %v3990_v52  ;;  %v3619_v23 = vor.u32 %v7224_v47, %v8135_v46  ;;  %v4362_v34 = vsel %vm4351_vm4, nan, %v4361_v35  ;;  %v3441_v4 = vor.u32 8388608, %v3440_v18 }
 0x4cd   : > { %v3996_v26 = vadd.s32 %v3995_v6, %v3991_v37  ;;  %4405 = vmatpush.msrb.mxu1 %v4362_v34  ;;  %v3872_v56 = vmul.f32 -0.001358992, %v3871_v31  ;;  %v3879_v24 = vmul.f32 -0.00019511016, %v3871_v31  ;;  %vm3465_vm12 = vcmp.lt.s32.totalorder %v8136_v21, 1  ;;  %v8140_v37 = vld [vmem:[#allocation4_spill] sm:$0xff] }
 0x4ce   : > { %vm3467_vm3 = vcmp.lt.s32.totalorder %v8136_v21, 3  ;;  %v3473_v8 = vsel %vm3465_vm12, %v7403_v28, %v7405_v27  ;;  %v3477_v47 = vsel %vm3465_vm12, %v7405_v27, %v3458_v43  ;;  %vm3623_vm7 = vcmp.lt.s32.totalorder %v8138_v33, 4 }
 0x4cf   : > { %v3997_v38 = vadd.s32 536870912, %v3996_v26  ;;  %v3475_v61 = vsel %vm3467_vm3, %v3458_v43, %v8137_v30  ;;  %v3873_v7 = vadd.f32 0.041655596, %v3872_v56  ;;  %v3880_v14 = vadd.f32 0.008332121, %v3879_v24 }
 0x4d0   : > { %v3888_v62 = vand.u32 3, %v3887_v3  ;;  %vm3466_vm11 = vcmp.lt.s32.totalorder %v8136_v21, 2  ;;  %v3479_v44 = vsel %vm3467_vm3, %v8140_v37, %v8139_v15  ;;  %v7438_v53 = vshll.u32 %v3441_v4, 8  ;;  %v8145_v21 = vld [vmem:[#allocation3_spill] sm:$0xff] }
 0x4d1   : > { %v7431_v0 = vshrl.u32 %v3997_v38, 30  ;;  %v3874_v51 = vmul.f32 %v3873_v7, %v3871_v31  ;;  %v3881_v9 = vmul.f32 %v3880_v14, %v3871_v31  ;;  %v7442_v29 = vsel %vm3466_vm11, %v3473_v8, %v3475_v61 }
 0x4d2   : > { %v3480_v3 = vsel %vm3466_vm11, %v3477_v47, %v3479_v44  ;;  %v7447_v54 = vand.u32 31, %v8141_v57  ;;  %v7452_v52 = vsel %vm3623_vm7, %v7313_v32, 920167782  ;;  %v7456_v18 = vsel %vm3623_vm7, %v3619_v23, 1326507024 }
 0x4d3   : > { %v3999_v63 = vshll.u32 %v7431_v0, 30  ;;  %v3875_v55 = vadd.f32 -0.4999988, %v3874_v51  ;;  %v3882_v22 = vadd.f32 -0.16666654, %v3881_v9  ;;  %vm3893_vm0 = vcmp.eq.s32.totalorder %v3888_v62, 2 }
 0x4d4   : > { %v3485_v16 = vshrl.u32 %v3480_v3, 16  ;;  %vm3890_vm8 = vcmp.eq.s32.totalorder %v3888_v62, 0  ;;  %v3482_v50 = vand.u32 65535, %v7438_v53  ;;  %v3484_v17 = vand.u32 65535, %v3480_v3 }
 0x4d5   : > { %v7459_v25 = vsub.s32 %v3996_v26, %v3999_v63  ;;  %v3507_v1 = vshrl.u32 %v7442_v29, 16  ;;  %v3876_v12 = vmul.f32 %v3875_v55, %v3871_v31  ;;  %v3883_v41 = vmul.f32 %v3882_v22, %v3871_v31 }
 0x4d6   : > { %vm3889_vm1 = vcmp.lt.s32.totalorder %v3888_v62, 2  ;;  %v3992_v45 = vadd.s32 %v7371_v13, %v7366_v60  ;;  %v3506_v35 = vand.u32 65535, %v7442_v29  ;;  %vm3886_vm14 = vweird.f32 %v8128_v10 }
 0x4d7   : > { %vm4001_vm15 = vcmp.lt.s32.totalorder %v7459_v25, 0  ;;  %v4002_v6 = vsub.s32 0, %v7459_v25  ;;  %v3483_v46 = vshrl.u32 %v7438_v53, 16  ;;  %v3487_v23 = vmul.u32 %v3485_v16, %v3482_v50 }
 0x4d8   : > { %v3877_v34 = vadd.f32 1.0, %v3876_v12  ;;  %v3884_v26 = vadd.f32 1.0, %v3883_v41  ;;  %v3449_v31 = vshrl.u32 %v8057_v19, %v8133_v49  ;;  %v3470_v4 = vsel %vm3468_vm2, %v3458_v43, 2102212464 }
 0x4d9   : > { %v4003_v60 = vsel %vm4001_vm15, %v4002_v6, %v7459_v25  ;;  %v3488_v13 = vmul.u32 %v3484_v17, %v3483_v46  ;;  %v3490_v56 = vshll.u32 %v3487_v23, 16  ;;  %v7475_v24 = vmul.u32 %v3507_v1, %v3482_v50 }
 0x4da   : > { %v3885_v38 = vmul.f32 %v3884_v26, %v7401_v36  ;;  %v3894_v8 = vxor.u32 2147483648, %v3877_v34  ;;  %v4004_v30 = vclz %v4003_v60  ;;  %v3486_v61 = vmul.u32 %v3484_v17, %v3482_v50 }
 0x4db   : > { %v4022_v47 = vsub.s32 4, %v7431_v0  ;;  %v3469_v49 = vsel %vm3465_vm12, %v3449_v31, %v7403_v28  ;;  %v3471_v43 = vsel %vm3467_vm3, %v7405_v27, %v3470_v4  ;;  %v3508_v7 = vmul.u32 %v3506_v35, %v3482_v50 }
 0x4dc   : > { %v3891_v14 = vxor.u32 2147483648, %v3885_v38  ;;  %v4565_v15 = vadd.s32 4294967294, %v4004_v30  ;;  %v3489_v37 = vmul.u32 %v3485_v16, %v3483_v46  ;;  %vm3494_vm2 = vc.u32 %v3486_v61, %v3490_v56 }
 0x4dd   : > { %v3895_v36 = vsel %vm3893_vm0, %v3894_v8, %v3885_v38  ;;  %v3492_v44 = vshll.u32 %v3488_v13, 16  ;;  %v3495_v51 = vsel %vm3494_vm2, 1, %v8056_v58  ;;  %v3496_v9 = vadd.s32 %v3490_v56, %v3486_v61 }
 0x4de   : > { %v3892_v29 = vsel %vm3890_vm8, %v3877_v34, %v3891_v14  ;;  %vm4566_vm9 = vcmp.lt.s32.totalorder %v4565_v15, 0  ;;  %v3497_v3 = vadd.s32 %v3495_v51, %v3489_v37  ;;  %v3512_v28 = vshll.u32 %v7475_v24, 16 }
 0x4df   : > { %v3896_v63 = vsel %vm3889_vm1, %v3892_v29, %v3895_v36  ;;  %v4007_v27 = vsel %vm4566_vm9, 0, %v4565_v15  ;;  %vm3498_vm13 = vc.u32 %v3496_v9, %v3492_v44  ;;  %v3510_v55 = vmul.u32 %v3506_v35, %v3483_v46 }
 0x4e0   : > { %v3897_v22 = vsel %vm3886_vm14, nan, %v3896_v63  ;;  %v4008_v16 = vsub.s32 32, %v4007_v27  ;;  %v4012_v50 = vsub.s32 4294967266, %v4007_v27  ;;  %v3491_v17 = vshrl.u32 %v3487_v23, 16 }
 0x4e1   : > { %4386 = vmatpush.msrb.mxu0 %v3897_v22  ;;  %v4009_v12 = vshll.u32 %v7459_v25, %v4007_v27  ;;  %v3499_v41 = vsel %vm3498_vm13, 1, %v8056_v58  ;;  %v3511_v6 = vmul.u32 %v3507_v1, %v3483_v46  ;;  %vm3516_vm4 = vc.u32 %v3508_v7, %v3512_v28  ;;  %v8144_v46 = vld [vmem:[#allocation5_spill] sm:$0xff] }
 0x4e2   : > { %vm7496_vm5 = vcmp.le.f32.partialorder %v3898_v42, 0.7853982  ;;  %v4010_v35 = vshrl.u32 %v3992_v45, %v4008_v16  ;;  %v4013_v34 = vadd.s32 127, %v4012_v50  ;;  %v3501_v10 = vadd.s32 %v3499_v41, %v3497_v3 }
 0x4e3   : > { %v3517_v26 = vsel %vm3516_vm4, 1, %v8056_v58  ;;  %vm3900_vm12 = vcmp.lt.s32.totalorder %v6826_v39, 0  ;;  %v3514_v23 = vshll.u32 %v3510_v55, 16  ;;  %v3518_v31 = vadd.s32 %v3512_v28, %v3508_v7 }
 0x4e4   : > { %v3519_v25 = vadd.s32 %v3517_v26, %v3511_v6  ;;  %v4011_v4 = vor.u32 %v4010_v35, %v4009_v12  ;;  %v4014_v60 = vshll.u32 %v4013_v34, 23  ;;  %v3502_v1 = vadd.s32 %v3501_v10, %v3491_v17 }
 0x4e5   : > { %v3588_v56 = vand.u32 2147483647, %v8144_v46  ;;  %v4023_v42 = vsel %vm3900_vm12, %v4022_v47, %v7431_v0  ;;  %v3472_v45 = vsel %vm3466_vm11, %v3469_v49, %v3471_v43  ;;  %v3493_v38 = vshrl.u32 %v3488_v13, 16 }
 0x4e6   : > { %vm3520_vm3 = vc.u32 %v3518_v31, %v3514_v23  ;;  %v4015_v8 = vor.u32 4788187, %v4014_v60  ;;  %v3513_v30 = vshrl.u32 %v7475_v24, 16  ;;  %v3515_v61 = vshrl.u32 %v3510_v55, 16 }
 0x4e7   : > { %v3521_v7 = vsel %vm3520_vm3, 1, %v8056_v58  ;;  %v7510_v14 = vadd.s32 %v3502_v1, %v3493_v38  ;;  %v7512_v15 = vadd.s32 %v3518_v31, %v3514_v23  ;;  %v3595_v36 = vand.u32 8388607, %v3588_v56 }
 0x4e8   : > { %v3523_v37 = vadd.s32 %v3521_v7, %v3519_v25  ;;  %v4016_v0 = vand.u32 2147483647, %v4015_v8  ;;  %v4018_v47 = vcvt.s32.f32 %v4011_v4  ;;  %v3605_v13 = vshll.u32 %v8057_v19, %v8145_v21 }
 0x4e9   : > { %v3606_v49 = vshrl.u32 %v8058_v2, %v6945_v11  ;;  %v3596_v43 = vor.u32 8388608, %v3595_v36  ;;  %v3608_v44 = vshll.u32 %v8058_v2, %v8145_v21  ;;  %v3609_v51 = vshrl.u32 %v8059_v59, %v6945_v11 }
 0x4ea   : > { %v3524_v24 = vadd.s32 %v3523_v37, %v3513_v30  ;;  %v4019_v9 = vmul.f32 %v4018_v47, %v4016_v0  ;;  %v3611_v3 = vshll.u32 %v8059_v59, %v8145_v21  ;;  %v3612_v28 = vshrl.u32 %v8060_v20, %v6945_v11 }
 0x4eb   : > { %v7524_v29 = vor.u32 %v3606_v49, %v3605_v13  ;;  %v4025_v63 = vsel %vm7496_vm5, 0, %v4023_v42  ;;  %vm3528_vm11 = vc.u32 %v7510_v14, %v7512_v15  ;;  %v7534_v55 = vor.u32 %v3609_v51, %v3608_v44 }
 0x4ec   : > { %v3525_v27 = vadd.s32 %v3524_v24, %v3515_v61  ;;  %v4020_v22 = vxor.u32 2147483648, %v4019_v9  ;;  %v7536_v16 = vor.u32 %v3612_v28, %v3611_v3  ;;  %vm3620_vm0 = vcmp.lt.s32.totalorder %v8138_v33, 1 }
 0x4ed   : > { %vm3622_vm8 = vcmp.lt.s32.totalorder %v8138_v33, 3  ;;  %v3628_v17 = vsel %vm3620_vm0, %v7524_v29, %v7534_v55  ;;  %v7548_v41 = vshll.u32 %v3596_v43, 8  ;;  %v3526_v35 = vmul.u32 %v7438_v53, %v3472_v45 }
 0x4ee   : > { %v3529_v50 = vadd.s32 1, %v3525_v27  ;;  %v3634_v12 = vsel %vm3622_vm8, %v7313_v32, %v7456_v18  ;;  %v4021_v6 = vsel %vm3900_vm12, %v4020_v22, %v4019_v9  ;;  %v3630_v34 = vsel %vm3622_vm8, %v7536_v16, %v7452_v52 }
 0x4ef   : > { %v3632_v10 = vsel %vm3620_vm0, %v7534_v55, %v7536_v16  ;;  %v7564_v32 = vsel %vm7496_vm5, %v6826_v39, %v4021_v6  ;;  %v4042_v18 = vadd.s32 3, %v4025_v63  ;;  %vm3621_vm1 = vcmp.lt.s32.totalorder %v8138_v33, 2 }
 0x4f0   : > { %v3530_v53 = vsel %vm3528_vm11, %v3529_v50, %v3525_v27  ;;  %v4026_v52 = vmul.f32 %v7564_v32, %v7564_v32  ;;  %v7574_v23 = vsel %vm3621_vm1, %v3628_v17, %v3630_v34  ;;  %v3635_v62 = vsel %vm3621_vm1, %v3632_v10, %v3634_v12 }
 0x4f1   : > { %v3531_v26 = vadd.s32 %v3530_v53, %v3526_v35  ;;  %v3637_v31 = vand.u32 65535, %v7548_v41  ;;  %v7580_v25 = vshrl.u32 %v7548_v41, 16  ;;  %v3639_v4 = vand.u32 65535, %v3635_v62 }
 0x4f2   : > { %v3640_v60 = vshrl.u32 %v3635_v62, 16  ;;  %v7583_v1 = vsub.s32 32, %v7447_v54  ;;  %v4027_v42 = vmul.f32 -0.001358992, %v4026_v52  ;;  %v4034_v45 = vmul.f32 -0.00019511016, %v4026_v52 }
 0x4f3   : > { %v3532_v38 = vadd.s32 536870912, %v3531_v26  ;;  %v7586_v8 = vshrl.u32 %v8141_v57, 5  ;;  %v7590_v30 = vshll.u32 %v8060_v20, %v7447_v54  ;;  %v7593_v7 = vmul.u32 %v3639_v4, %v7580_v25 }
 0x4f4   : > { %v3642_v61 = vmul.u32 %v3640_v60, %v3637_v31  ;;  %v4028_v37 = vadd.f32 0.041655596, %v4027_v42  ;;  %v4035_v36 = vadd.f32 0.008332121, %v4034_v45  ;;  %v3662_v47 = vshrl.u32 %v7574_v23, 16 }
 0x4f5   : > { %v7595_v0 = vshrl.u32 %v3532_v38, 30  ;;  %v8146_v21 = vmov 920167782   ;;  %v4043_v57 = vand.u32 3, %v4042_v18  ;;  %v3641_v49 = vmul.u32 %v3639_v4, %v3637_v31 }
 0x4f6   : > { %v7600_v13 = vshll.u32 %v8146_v21, %v7447_v54  ;;  %v3645_v24 = vshll.u32 %v3642_v61, 16  ;;  %v7604_v43 = vshrl.u32 %v8146_v21, %v7583_v1  ;;  %v4029_v44 = vmul.f32 %v4028_v37, %v4026_v52 }
 0x4f7   : > { %v4036_v51 = vmul.f32 %v4035_v36, %v4026_v52  ;;  %v3534_v9 = vshll.u32 %v7595_v0, 30  ;;  %v7609_v3 = vshrl.u32 %v8024_v5, %v7583_v1  ;;  %v3647_v28 = vshll.u32 %v7593_v7, 16 }
 0x4f8   : > { %vm3649_vm14 = vc.u32 %v3641_v49, %v3645_v24  ;;  %v3651_v63 = vadd.s32 %v3645_v24, %v3641_v49  ;;  %v4030_v27 = vadd.f32 -0.4999988, %v4029_v44  ;;  %v7614_v17 = vmul.u32 %v3662_v47, %v3637_v31 }
 0x4f9   : > { %v4037_v22 = vadd.f32 -0.16666654, %v4036_v51  ;;  %v7612_v50 = vsub.s32 %v3531_v26, %v3534_v9  ;;  %vm4045_vm15 = vcmp.eq.s32.totalorder %v4043_v57, 0  ;;  %vm4048_vm2 = vcmp.eq.s32.totalorder %v4043_v57, 2 }
 0x4fa   : > { %v3644_v12 = vmul.u32 %v3640_v60, %v7580_v25  ;;  %v3650_v6 = vsel %vm3649_vm14, 1, %v8056_v58  ;;  %vm3653_vm9 = vc.u32 %v3651_v63, %v3647_v28  ;;  %v3661_v5 = vand.u32 65535, %v7574_v23 }
 0x4fb   : > { %v4031_v35 = vmul.f32 %v4030_v27, %v4026_v52  ;;  %v4038_v34 = vmul.f32 %v4037_v22, %v4026_v52  ;;  %vm4044_vm13 = vcmp.lt.s32.totalorder %v4043_v57, 2  ;;  %vm3536_vm4 = vcmp.lt.s32.totalorder %v7612_v50, 0 }
 0x4fc   : > { %v3537_v10 = vsub.s32 0, %v7612_v50  ;;  %vm4041_vm5 = vweird.f32 %v6826_v39  ;;  %v3527_v18 = vadd.s32 %v7512_v15, %v7510_v14  ;;  %v3604_v53 = vshrl.u32 %v8057_v19, %v6945_v11 }
 0x4fd   : > { %v3652_v26 = vadd.s32 %v3650_v6, %v3644_v12  ;;  %v3654_v62 = vsel %vm3653_vm9, 1, %v8056_v58  ;;  %v4032_v4 = vadd.f32 1.0, %v4031_v35  ;;  %v4039_v23 = vadd.f32 1.0, %v4038_v34 }
 0x4fe   : > { %v3538_v52 = vsel %vm3536_vm4, %v3537_v10, %v7612_v50  ;;  %v3667_v60 = vshll.u32 %v7614_v17, 16  ;;  %vm3435_vm12 = vcmp.lt.s32.totalorder %v8132_v40, 0  ;;  %v3624_v45 = vsel %vm3620_vm0, %v3604_v53, %v7524_v29  ;;  %v8147_v10 = vld [vmem:[#allocation8_spill] sm:$0xff] }
 0x4ff   : > { %v3539_v42 = vclz %v3538_v52  ;;  %v3656_v14 = vadd.s32 %v3654_v62, %v3652_v26  ;;  %v3665_v15 = vmul.u32 %v3661_v5, %v7580_v25  ;;  %v4040_v11 = vmul.f32 %v4039_v23, %v7564_v32 }
 0x500   : > { %v4049_v38 = vxor.u32 2147483648, %v4032_v4  ;;  %v3646_v37 = vshrl.u32 %v3642_v61, 16  ;;  %v3663_v36 = vmul.u32 %v3661_v5, %v3637_v31  ;;  %v3557_v49 = vsub.s32 4, %v7595_v0 }
 0x501   : > { %v4556_v21 = vadd.s32 4294967294, %v3539_v42  ;;  %v3625_v24 = vsel %vm3623_vm7, %v7536_v16, 2102212464  ;;  %v3648_v44 = vshrl.u32 %v7593_v7, 16  ;;  %v4046_v51 = vxor.u32 2147483648, %v4040_v11  ;;  %v8150_v42 = vld [vmem:[#allocation19_spill] sm:$0xff] }
 0x502   : > { %v3657_v9 = vadd.s32 %v3656_v14, %v3646_v37  ;;  %v3666_v29 = vmul.u32 %v3662_v47, %v7580_v25  ;;  %vm3671_vm3 = vc.u32 %v3663_v36, %v3667_v60  ;;  %v3669_v28 = vshll.u32 %v3665_v15, 16  ;;  %v8151_v37 = vld [vmem:[#allocation16_spill] sm:$0xff] }
 0x503   : > { %vm4557_vm11 = vcmp.lt.s32.totalorder %v4556_v21, 0  ;;  %v3672_v32 = vsel %vm3671_vm3, 1, %v8056_v58  ;;  %v3673_v61 = vadd.s32 %v3667_v60, %v3663_v36  ;;  %v4047_v31 = vsel %vm4045_vm15, %v4032_v4, %v4046_v51 }
 0x504   : > { %v4050_v63 = vsel %vm4048_vm2, %v4049_v38, %v4040_v11  ;;  %v3542_v27 = vsel %vm4557_vm11, 0, %v4556_v21  ;;  %v3674_v22 = vadd.s32 %v3672_v32, %v3666_v29  ;;  %v3626_v25 = vsel %vm3622_vm8, %v7534_v55, %v3625_v24 }
 0x505   : > { %v4051_v16 = vsel %vm4044_vm13, %v4047_v31, %v4050_v63  ;;  %v3543_v12 = vsub.s32 32, %v3542_v27  ;;  %v3547_v7 = vsub.s32 4294967266, %v3542_v27  ;;  %v3544_v6 = vshll.u32 %v7612_v50, %v3542_v27 }
 0x506   : > { %v4052_v47 = vsel %vm4041_vm5, nan, %v4051_v16  ;;  %v7651_v5 = vadd.s32 %v3657_v9, %v3648_v44  ;;  %vm3675_vm7 = vc.u32 %v3673_v61, %v3669_v28  ;;  %v3123_v53 = vand.u32 2147483647, %v8147_v10  ;;  %v8154_v16 = vld [vmem:[#allocation2_spill] sm:$0xff] }
 0x507   : > { %4406 = vmatpush.msrb.mxu1 %v4052_v47  ;;  %v3545_v35 = vshrl.u32 %v3527_v18, %v3543_v12  ;;  %v3548_v34 = vadd.s32 127, %v3547_v7  ;;  %v3676_v57 = vsel %vm3675_vm7, 1, %v8056_v58  ;;  %vm7657_vm0 = vcmp.le.f32.partialorder %v3433_v48, 0.7853982 }
 0x508   : > { %v3558_v39 = vsel %vm3435_vm12, %v3557_v49, %v7595_v0  ;;  %v3668_v55 = vshrl.u32 %v7614_v17, 16  ;;  %v3678_v50 = vadd.s32 %v3676_v57, %v3674_v22  ;;  %v7665_v4 = vadd.s32 %v3673_v61, %v3669_v28  ;;  %v8152_v61 = vld [vmem:[#allocation18_spill] sm:$0xff]  ;;  %v8153_v22 = vld [vmem:[#allocation13_spill] sm:$0xff] }
 0x509   : > { %v3546_v62 = vor.u32 %v3545_v35, %v3544_v6  ;;  %v3549_v18 = vshll.u32 %v3548_v34, 23  ;;  %v3130_v23 = vand.u32 8388607, %v3123_v53  ;;  %v3627_v48 = vsel %vm3621_vm1, %v3624_v45, %v3626_v25 }
 0x50a   : > { %v3670_v52 = vshrl.u32 %v3665_v15, 16  ;;  %v3679_v60 = vadd.s32 %v3678_v50, %v3668_v55  ;;  %v3141_v14 = vshrl.u32 %v8058_v2, %v8150_v42  ;;  %v3560_v0 = vsel %vm7657_vm0, 0, %v3558_v39 }
 0x50b   : > { %v3550_v11 = vor.u32 4788187, %v3549_v18  ;;  %vm3683_vm8 = vc.u32 %v7651_v5, %v7665_v4  ;;  %v3131_v17 = vor.u32 8388608, %v3130_v23  ;;  %v3140_v36 = vshll.u32 %v8057_v19, %v8151_v37 }
 0x50c   : > { %v3680_v38 = vadd.s32 %v3679_v60, %v3670_v52  ;;  %v3143_v33 = vshll.u32 %v8058_v2, %v8151_v37  ;;  %v3144_v45 = vshrl.u32 %v8059_v59, %v8150_v42  ;;  %v3553_v21 = vcvt.s32.f32 %v3546_v62 }
 0x50d   : > { %v3551_v15 = vand.u32 2147483647, %v3550_v11  ;;  %v3146_v49 = vshll.u32 %v8059_v59, %v8151_v37  ;;  %v3147_v24 = vshrl.u32 %v8060_v20, %v8150_v42  ;;  %v3681_v44 = vmul.u32 %v7548_v41, %v3627_v48 }
 0x50e   : > { %v3684_v51 = vadd.s32 1, %v3680_v38  ;;  %v7688_v9 = vor.u32 %v3141_v14, %v3140_v36  ;;  %v7690_v29 = vor.u32 %v3144_v45, %v3143_v33  ;;  %vm3157_vm1 = vcmp.lt.s32.totalorder %v8152_v61, 3 }
 0x50f   : > { %v3554_v28 = vmul.f32 %v3553_v21, %v3551_v15  ;;  %v3148_v32 = vor.u32 %v3147_v24, %v3146_v49  ;;  %v7693_v31 = vshll.u32 %v3131_v17, 8  ;;  %v7697_v63 = vor.u32 %v7604_v43, %v7590_v30 }
 0x510   : > { %v3309_v27 = vor.u32 %v7609_v3, %v7600_v13  ;;  %v3685_v41 = vsel %vm3683_vm8, %v3684_v51, %v3680_v38  ;;  %v3169_v12 = vsel %vm3157_vm1, %v8154_v16, %v8153_v22  ;;  %v3577_v25 = vadd.s32 3, %v3560_v0  ;;  %v8155_v13 = vld [vmem:[#allocation9_spill] sm:$0xff] }
 0x511   : > { %v3555_v7 = vxor.u32 2147483648, %v3554_v28  ;;  %v3686_v47 = vadd.s32 %v3685_v41, %v3681_v44  ;;  %vm3155_vm14 = vcmp.lt.s32.totalorder %v8152_v61, 1  ;;  %vm3156_vm15 = vcmp.lt.s32.totalorder %v8152_v61, 2 }
 0x512   : > { %v3163_v30 = vsel %vm3155_vm14, %v7688_v9, %v7690_v29  ;;  %v3165_v43 = vsel %vm3157_vm1, %v3148_v32, %v8155_v13  ;;  %v3167_v3 = vsel %vm3155_vm14, %v7690_v29, %v3148_v32  ;;  %v3172_v57 = vand.u32 65535, %v7693_v31 }
 0x513   : > { %v3556_v6 = vsel %vm3435_vm12, %v3555_v7, %v3554_v28  ;;  %v3687_v35 = vadd.s32 536870912, %v3686_v47  ;;  %v3170_v34 = vsel %vm3156_vm15, %v3167_v3, %v3169_v12  ;;  %v7729_v55 = vshrl.u32 %v7693_v31, 16 }
 0x514   : > { %v3559_v39 = vsel %vm7657_vm0, %v8132_v40, %v3556_v6  ;;  %v3174_v50 = vand.u32 65535, %v3170_v34  ;;  %v3175_v62 = vshrl.u32 %v3170_v34, 16  ;;  %vm3313_vm2 = vcmp.lt.s32.totalorder %v7586_v8, 4 }
 0x515   : > { %v3561_v18 = vmul.f32 %v3559_v39, %v3559_v39  ;;  %v7732_v23 = vshrl.u32 %v3687_v35, 30  ;;  %v3166_v48 = vsel %vm3156_vm15, %v3163_v30, %v3165_v43  ;;  %v7739_v52 = vsel %vm3313_vm2, %v7697_v63, 920167782 }
 0x516   : > { %v7743_v26 = vsel %vm3313_vm2, %v3309_v27, 1326507024  ;;  %v3177_v60 = vmul.u32 %v3175_v62, %v3172_v57  ;;  %v7746_v14 = vmul.u32 %v3174_v50, %v7729_v55  ;;  %v7748_v17 = vand.u32 3, %v3577_v25 }
 0x517   : > { %v3562_v11 = vmul.f32 -0.001358992, %v3561_v18  ;;  %v3569_v0 = vmul.f32 -0.00019511016, %v3561_v18  ;;  %v3689_v38 = vshll.u32 %v7732_v23, 30  ;;  %v3139_v37 = vshrl.u32 %v8057_v19, %v8150_v42 }
 0x518   : > { %v3176_v36 = vmul.u32 %v3174_v50, %v3172_v57  ;;  %v3180_v33 = vshll.u32 %v3177_v60, 16  ;;  %v3197_v45 = vshrl.u32 %v3166_v48, 16  ;;  %v3160_v24 = vsel %vm3158_vm6, %v3148_v32, 2102212464 }
 0x519   : > { %v3563_v15 = vadd.f32 0.041655596, %v3562_v11  ;;  %v3570_v21 = vadd.f32 0.008332121, %v3569_v0  ;;  %v3690_v49 = vsub.s32 %v3686_v47, %v3689_v38  ;;  %v3179_v44 = vmul.u32 %v3175_v62, %v7729_v55 }
 0x51a   : > { %v3182_v51 = vshll.u32 %v7746_v14, 16  ;;  %vm3184_vm9 = vc.u32 %v3176_v36, %v3180_v33  ;;  %v3186_v28 = vadd.s32 %v3180_v33, %v3176_v36  ;;  %v3196_v16 = vand.u32 65535, %v3166_v48  ;;  %v8156_v48 = vld [vmem:[#allocation11_spill] sm:$0xff] }
 0x51b   : > { %v3564_v27 = vmul.f32 %v3563_v15, %v3561_v18  ;;  %v3571_v41 = vmul.f32 %v3570_v21, %v3561_v18  ;;  %vm3691_vm13 = vcmp.lt.s32.totalorder %v3690_v49, 0  ;;  %v3692_v22 = vsub.s32 0, %v3690_v49 }
 0x51c   : > { %v3185_v42 = vsel %vm3184_vm9, 1, %v8056_v58  ;;  %vm3188_vm4 = vc.u32 %v3186_v28, %v3182_v51  ;;  %v7758_v12 = vmul.u32 %v3197_v45, %v3172_v57  ;;  %vm3580_vm6 = vcmp.eq.s32.totalorder %v7748_v17, 0 }
 0x51d   : > { %v3565_v7 = vadd.f32 -0.4999988, %v3564_v27  ;;  %v3572_v25 = vadd.f32 -0.16666654, %v3571_v41  ;;  %v3693_v47 = vsel %vm3691_vm13, %v3692_v22, %v3690_v49  ;;  %v3187_v32 = vadd.s32 %v3185_v42, %v3179_v44 }
 0x51e   : > { %vm3583_vm5 = vcmp.eq.s32.totalorder %v7748_v17, 2  ;;  %v3694_v30 = vclz %v3693_v47  ;;  %v3189_v13 = vsel %vm3188_vm4, 1, %v8056_v58  ;;  %vm3579_vm12 = vcmp.lt.s32.totalorder %v7748_v17, 2 }
 0x51f   : > { %v3566_v43 = vmul.f32 %v3565_v7, %v3561_v18  ;;  %v3573_v3 = vmul.f32 %v3572_v25, %v3561_v18  ;;  %v3159_v6 = vsel %vm3155_vm14, %v3139_v37, %v7688_v9  ;;  %v3161_v35 = vsel %vm3157_vm1, %v7690_v29, %v3160_v24 }
 0x520   : > { %vm3576_vm3 = vweird.f32 %v8132_v40  ;;  %v3682_v34 = vadd.s32 %v7665_v4, %v7651_v5  ;;  %v4559_v50 = vadd.s32 4294967294, %v3694_v30  ;;  %v3191_v62 = vadd.s32 %v3189_v13, %v3187_v32 }
 0x521   : > { %v3278_v11 = vand.u32 2147483647, %v8156_v48  ;;  %v3567_v18 = vadd.f32 1.0, %v3566_v43  ;;  %v3574_v0 = vadd.f32 1.0, %v3573_v3  ;;  %v3200_v38 = vmul.u32 %v3196_v16, %v7729_v55 }
 0x522   : > { %v3202_v36 = vshll.u32 %v7758_v12, 16  ;;  %vm4560_vm11 = vcmp.lt.s32.totalorder %v4559_v50, 0  ;;  %v7778_v9 = vsel %vm3156_vm15, %v3159_v6, %v3161_v35  ;;  %v3181_v29 = vshrl.u32 %v3177_v60, 16 }
 0x523   : > { %v3198_v37 = vmul.u32 %v3196_v16, %v3172_v57  ;;  %v3575_v33 = vmul.f32 %v3574_v0, %v3559_v39  ;;  %v3584_v15 = vxor.u32 2147483648, %v3567_v18  ;;  %v3697_v5 = vsel %vm4560_vm11, 0, %v4559_v50 }
 0x524   : > { %v3201_v4 = vmul.u32 %v3197_v45, %v7729_v55  ;;  %v3698_v21 = vsub.s32 32, %v3697_v5  ;;  %v3702_v24 = vsub.s32 4294967266, %v3697_v5  ;;  %v3192_v44 = vadd.s32 %v3191_v62, %v3181_v29 }
 0x525   : > { %vm3206_vm7 = vc.u32 %v3198_v37, %v3202_v36  ;;  %v3581_v51 = vxor.u32 2147483648, %v3575_v33  ;;  %v3204_v28 = vshll.u32 %v3200_v38, 16  ;;  %v3208_v41 = vadd.s32 %v3202_v36, %v3198_v37 }
 0x526   : > { %v3207_v27 = vsel %vm3206_vm7, 1, %v8056_v58  ;;  %v3699_v22 = vshll.u32 %v3690_v49, %v3697_v5  ;;  %v3700_v61 = vshrl.u32 %v3682_v34, %v3698_v21  ;;  %v3703_v42 = vadd.s32 127, %v3702_v24 }
 0x527   : > { %v3209_v7 = vadd.s32 %v3207_v27, %v3201_v4  ;;  %v3582_v57 = vsel %vm3580_vm6, %v3567_v18, %v3581_v51  ;;  %v3585_v39 = vsel %vm3583_vm5, %v3584_v15, %v3575_v33  ;;  %v3183_v55 = vshrl.u32 %v7746_v14, 16 }
 0x528   : > { %vm3210_vm0 = vc.u32 %v3208_v41, %v3204_v28  ;;  %v3586_v60 = vsel %vm3579_vm12, %v3582_v57, %v3585_v39  ;;  %v3701_v45 = vor.u32 %v3700_v61, %v3699_v22  ;;  %v3704_v16 = vshll.u32 %v3703_v42, 23 }
 0x529   : > { %v3211_v25 = vsel %vm3210_vm0, 1, %v8056_v58  ;;  %v3587_v49 = vsel %vm3576_vm3, nan, %v3586_v60  ;;  %vm3590_vm8 = vcmp.lt.s32.totalorder %v8144_v46, 0  ;;  %v3203_v47 = vshrl.u32 %v7758_v12, 16 }
 0x52a   : > { %v3205_v32 = vshrl.u32 %v3200_v38, 16  ;;  %v3213_v30 = vadd.s32 %v3211_v25, %v3209_v7  ;;  %4387 = vmatpush.msrb.mxu0 %v3587_v49  ;;  %v3705_v13 = vor.u32 4788187, %v3704_v16  ;;  %v7794_v14 = vadd.s32 %v3192_v44, %v3183_v55 }
 0x52b   : > { %v7796_v43 = vadd.s32 %v3208_v41, %v3204_v28  ;;  %v3285_v17 = vand.u32 8388607, %v3278_v11  ;;  %v3708_v3 = vcvt.s32.f32 %v3701_v45  ;;  %v3295_v40 = vshll.u32 %v8057_v19, %v7447_v54 }
 0x52c   : > { %v3214_v6 = vadd.s32 %v3213_v30, %v3203_v47  ;;  %v3296_v35 = vshrl.u32 %v8058_v2, %v7583_v1  ;;  %v3706_v12 = vand.u32 2147483647, %v3705_v13  ;;  %v3298_v50 = vshll.u32 %v8058_v2, %v7447_v54 }
 0x52d   : > { %v3286_v34 = vor.u32 8388608, %v3285_v17  ;;  %v3299_v62 = vshrl.u32 %v8059_v59, %v7583_v1  ;;  %v3301_v38 = vshll.u32 %v8059_v59, %v7447_v54  ;;  %v3302_v36 = vshrl.u32 %v8060_v20, %v7583_v1 }
 0x52e   : > { %v3215_v18 = vadd.s32 %v3214_v6, %v3205_v32  ;;  %v7808_v0 = vor.u32 %v3296_v35, %v3295_v40  ;;  %v3709_v29 = vmul.f32 %v3708_v3, %v3706_v12  ;;  %v3712_v37 = vsub.s32 4, %v7732_v23 }
 0x52f   : > { %vm3218_vm1 = vc.u32 %v7794_v14, %v7796_v43  ;;  %v7817_v33 = vor.u32 %v3299_v62, %v3298_v50  ;;  %v7819_v15 = vor.u32 %v3302_v36, %v3301_v38  ;;  %vm3310_vm14 = vcmp.lt.s32.totalorder %v7586_v8, 1 }
 0x530   : > { %v3219_v2 = vadd.s32 1, %v3215_v18  ;;  %vm3312_vm15 = vcmp.lt.s32.totalorder %v7586_v8, 3  ;;  %v3710_v5 = vxor.u32 2147483648, %v3709_v29  ;;  %v3216_v59 = vmul.u32 %v7693_v31, %v7778_v9 }
 0x531   : > { %v3318_v20 = vsel %vm3310_vm14, %v7808_v0, %v7817_v33  ;;  %v3324_v54 = vsel %vm3312_vm15, %v7697_v63, %v7743_v26  ;;  %v3320_v21 = vsel %vm3312_vm15, %v7819_v15, %v7739_v52  ;;  %v3322_v31 = vsel %vm3310_vm14, %v7817_v33, %v7819_v15 }
 0x532   : > { %v3220_v4 = vsel %vm3218_vm1, %v3219_v2, %v3215_v18  ;;  %v7841_v9 = vshll.u32 %v3286_v34, 8  ;;  %vm7845_vm9 = vcmp.le.f32.partialorder %v3588_v56, 0.7853982  ;;  %v3711_v63 = vsel %vm3590_vm8, %v3710_v5, %v3709_v29 }
 0x533   : > { %v3221_v26 = vadd.s32 %v3220_v4, %v3216_v59  ;;  %vm3311_vm13 = vcmp.lt.s32.totalorder %v7586_v8, 2  ;;  %v3713_v52 = vsel %vm3590_vm8, %v3712_v37, %v7732_v23  ;;  %v3714_v44 = vsel %vm7845_vm9, %v8144_v46, %v3711_v63 }
 0x534   : > { %v3325_v56 = vsel %vm3311_vm13, %v3322_v31, %v3324_v54  ;;  %v3716_v51 = vmul.f32 %v3714_v44, %v3714_v44  ;;  %v3321_v27 = vsel %vm3311_vm13, %v3318_v20, %v3320_v21  ;;  %v3327_v22 = vand.u32 65535, %v7841_v9 }
 0x535   : > { %v3222_v28 = vadd.s32 536870912, %v3221_v26  ;;  %v3329_v41 = vand.u32 65535, %v3325_v56  ;;  %v3328_v61 = vshrl.u32 %v7841_v9, 16  ;;  %v3330_v42 = vshrl.u32 %v3325_v56, 16 }
 0x536   : > { %v3715_v23 = vsel %vm7845_vm9, 0, %v3713_v52  ;;  %v3717_v7 = vmul.f32 -0.001358992, %v3716_v51  ;;  %v3724_v57 = vmul.f32 -0.00019511016, %v3716_v51  ;;  %v3352_v45 = vshrl.u32 %v3321_v27, 16 }
 0x537   : > { %v7866_v39 = vshrl.u32 %v3222_v28, 30  ;;  %v3332_v55 = vmul.u32 %v3330_v42, %v3327_v22  ;;  %v7868_v60 = vmul.u32 %v3329_v41, %v3328_v61  ;;  %v3732_v47 = vadd.s32 3, %v3715_v23 }
 0x538   : > { %v3718_v16 = vadd.f32 0.041655596, %v3717_v7  ;;  %v3725_v25 = vadd.f32 0.008332121, %v3724_v57  ;;  %v3331_v32 = vmul.u32 %v3329_v41, %v3327_v22  ;;  %v3334_v6 = vmul.u32 %v3330_v42, %v3328_v61 }
 0x539   : > { %v3224_v49 = vshll.u32 %v7866_v39, 30  ;;  %v3335_v30 = vshll.u32 %v3332_v55, 16  ;;  %v3337_v40 = vshll.u32 %v7868_v60, 16  ;;  %v7872_v12 = vmul.u32 %v3352_v45, %v3327_v22 }
 0x53a   : > { %v3719_v13 = vmul.f32 %v3718_v16, %v3716_v51  ;;  %v3726_v17 = vmul.f32 %v3725_v25, %v3716_v51  ;;  %v3733_v18 = vand.u32 3, %v3732_v47  ;;  %v3351_v36 = vand.u32 65535, %v3321_v27 }
 0x53b   : > { %v3225_v3 = vsub.s32 %v3221_v26, %v3224_v49  ;;  %vm3339_vm4 = vc.u32 %v3331_v32, %v3335_v30  ;;  %v3341_v35 = vadd.s32 %v3335_v30, %v3331_v32  ;;  %vm3731_vm12 = vweird.f32 %v8144_v46 }
 0x53c   : > { %v3720_v34 = vadd.f32 -0.4999988, %v3719_v13  ;;  %v3727_v50 = vadd.f32 -0.16666654, %v3726_v17  ;;  %v3340_v38 = vsel %vm3339_vm4, 1, %v8056_v58  ;;  %v3357_v31 = vshll.u32 %v7872_v12, 16 }
 0x53d   : > { %vm3226_vm6 = vcmp.lt.s32.totalorder %v3225_v3, 0  ;;  %v3227_v62 = vsub.s32 0, %v3225_v3  ;;  %vm3343_vm5 = vc.u32 %v3341_v35, %v3337_v40  ;;  %v3342_v5 = vadd.s32 %v3340_v38, %v3334_v6 }
 0x53e   : > { %v3721_v29 = vmul.f32 %v3720_v34, %v3716_v51  ;;  %v3728_v37 = vmul.f32 %v3727_v50, %v3716_v51  ;;  %v3344_v20 = vsel %vm3343_vm5, 1, %v8056_v58  ;;  %vm3734_vm3 = vcmp.lt.s32.totalorder %v3733_v18, 2 }
 0x53f   : > { %v3228_v2 = vsel %vm3226_vm6, %v3227_v62, %v3225_v3  ;;  %v3346_v21 = vadd.s32 %v3344_v20, %v3342_v5  ;;  %v3353_v63 = vmul.u32 %v3351_v36, %v3327_v22  ;;  %v3355_v26 = vmul.u32 %v3351_v36, %v3328_v61 }
 0x540   : > { %v3229_v59 = vclz %v3228_v2  ;;  %v3722_v54 = vadd.f32 1.0, %v3721_v29  ;;  %v3729_v4 = vadd.f32 1.0, %v3728_v37  ;;  %vm3735_vm11 = vcmp.eq.s32.totalorder %v3733_v18, 0 }
 0x541   : > { %v3336_v51 = vshrl.u32 %v3332_v55, 16  ;;  %vm3738_vm7 = vcmp.eq.s32.totalorder %v3733_v18, 2  ;;  %v3217_v28 = vadd.s32 %v7796_v43, %v7794_v14  ;;  %vm3361_vm8 = vc.u32 %v3353_v63, %v3357_v31 }
 0x542   : > { %v4550_v24 = vadd.s32 4294967294, %v3229_v59  ;;  %v3730_v52 = vmul.f32 %v3729_v4, %v3714_v44  ;;  %v3739_v56 = vxor.u32 2147483648, %v3722_v54  ;;  %v3356_v23 = vmul.u32 %v3352_v45, %v3328_v61 }
 0x543   : > { %v3347_v42 = vadd.s32 %v3346_v21, %v3336_v51  ;;  %v3359_v16 = vshll.u32 %v3355_v26, 16  ;;  %v3362_v22 = vsel %vm3361_vm8, 1, %v8056_v58  ;;  %v3363_v49 = vadd.s32 %v3357_v31, %v3353_v63 }
 0x544   : > { %vm4551_vm0 = vcmp.lt.s32.totalorder %v4550_v24, 0  ;;  %v3736_v27 = vxor.u32 2147483648, %v3730_v52  ;;  %v3740_v44 = vsel %vm3738_vm7, %v3739_v56, %v3730_v52  ;;  %v3364_v47 = vadd.s32 %v3362_v22, %v3356_v23 }
 0x545   : > { %v3232_v41 = vsel %vm4551_vm0, 0, %v4550_v24  ;;  %v3294_v61 = vshrl.u32 %v8057_v19, %v7583_v1  ;;  %v3315_v45 = vsel %vm3313_vm2, %v7819_v15, 2102212464  ;;  %vm3365_vm1 = vc.u32 %v3363_v49, %v3359_v16 }
 0x546   : > { %v3233_v7 = vsub.s32 32, %v3232_v41  ;;  %v3237_v57 = vsub.s32 4294967266, %v3232_v41  ;;  %v3737_v25 = vsel %vm3735_vm11, %v3722_v54, %v3736_v27  ;;  %v3234_v32 = vshll.u32 %v3225_v3, %v3232_v41 }
 0x547   : > { %v3741_v55 = vsel %vm3734_vm3, %v3737_v25, %v3740_v44  ;;  %v3338_v6 = vshrl.u32 %v7868_v60, 16  ;;  %v3366_v3 = vsel %vm3365_vm1, 1, %v8056_v58  ;;  %v3358_v40 = vshrl.u32 %v7872_v12, 16 }
 0x548   : > { %v3235_v30 = vshrl.u32 %v3217_v28, %v3233_v7  ;;  %v3238_v14 = vadd.s32 127, %v3237_v57  ;;  %v3742_v43 = vsel %vm3731_vm12, nan, %v3741_v55  ;;  %v3368_v35 = vadd.s32 %v3366_v3, %v3364_v47 }
 0x549   : > { %4407 = vmatpush.msrb.mxu1 %v3742_v43  ;;  %v3314_v19 = vsel %vm3310_vm14, %v3294_v61, %v7808_v0  ;;  %v3316_v1 = vsel %vm3312_vm15, %v7817_v33, %v3315_v45  ;;  %v3348_v15 = vadd.s32 %v3347_v42, %v3338_v6  ;;  %v3360_v34 = vshrl.u32 %v3355_v26, 16 }
 0x54a   : > { %v3236_v13 = vor.u32 %v3235_v30, %v3234_v32  ;;  %v3239_v17 = vshll.u32 %v3238_v14, 23  ;;  %v3369_v50 = vadd.s32 %v3368_v35, %v3358_v40  ;;  %v3367_v60 = vadd.s32 %v3363_v49, %v3359_v16 }
 0x54b   : > { %v3317_v58 = vsel %vm3311_vm13, %v3314_v19, %v3316_v1  ;;  %vm3125_vm14 = vcmp.lt.s32.totalorder %v8147_v10, 0  ;;  %v3247_v33 = vsub.s32 4, %v7866_v39  ;;  %vm7905_vm15 = vcmp.le.f32.partialorder %v3123_v53, 0.7853982  ;;  %v4363_v19 = vld [vmem:[%s7940_s7] sm:$0x7] }
 0x54c   : > { %v3240_v46 = vor.u32 4788187, %v3239_v17  ;;  %v3243_v18 = vcvt.s32.f32 %v3236_v13  ;;  %v3370_v12 = vadd.s32 %v3369_v50, %v3360_v34  ;;  %vm3373_vm2 = vc.u32 %v3348_v15, %v3367_v60 }
 0x54d   : > { %v3371_v0 = vmul.u32 %v7841_v9, %v3317_v58  ;;  %v3248_v9 = vsel %vm3125_vm14, %v3247_v33, %v7866_v39  ;;  %v3372_v30 = vadd.s32 %v3367_v60, %v3348_v15  ;;  %vm3266_vm5 = vweird.f32 %v8147_v10 }
 0x54e   : > { %v3241_v62 = vand.u32 2147483647, %v3240_v46  ;;  %v3374_v36 = vadd.s32 1, %v3370_v12  ;;  %v3250_v24 = vsel %vm7905_vm15, 0, %v3248_v9  ;;  %vm3280_vm3 = vcmp.lt.s32.totalorder %v8156_v48, 0 }
 0x54f   : > { %v3267_v28 = vadd.s32 3, %v3250_v24  ;;  %vm3279_vm11 = vcmp.le.f32.partialorder %v3278_v11, 0.7853982  ;;  %vm3421_vm1 = vweird.f32 %v8156_v48 }
 0x550   : > { %v3244_v38 = vmul.f32 %v3243_v18, %v3241_v62  ;;  %v3375_v37 = vsel %vm3373_vm2, %v3374_v36, %v3370_v12  ;;  %vm4416_vm2 = vcmask 1043456  }
 0x551   : > { %v3376_v5 = vadd.s32 %v3375_v37, %v3371_v0  ;;  %v3268_v25 = vand.u32 3, %v3267_v28 }
 0x552   : > { %v3245_v29 = vxor.u32 2147483648, %v3244_v38 }
 0x553   : > { %v3377_v54 = vadd.s32 536870912, %v3376_v5  ;;  %vm3270_vm4 = vcmp.eq.s32.totalorder %v3268_v25, 0  ;;  %vm3273_vm6 = vcmp.eq.s32.totalorder %v3268_v25, 2  ;;  %vm3269_vm12 = vcmp.lt.s32.totalorder %v3268_v25, 2 }
 0x554   : > { %v3246_v8 = vsel %vm3125_vm14, %v3245_v29, %v3244_v38 }
 0x555   : > { %v3249_v59 = vsel %vm7905_vm15, %v8147_v10, %v3246_v8  ;;  %v3378_v31 = vshrl.u32 %v3377_v54, 30 }
 0x556   : > { %v3251_v20 = vmul.f32 %v3249_v59, %v3249_v59 }
 0x557   : > { %v3379_v26 = vshll.u32 %v3378_v31, 30  ;;  %v3402_v18 = vsub.s32 4, %v3378_v31 }
 0x558   : > { %v3252_v4 = vmul.f32 -0.001358992, %v3251_v20  ;;  %v3259_v21 = vmul.f32 -0.00019511016, %v3251_v20 }
 0x559   : > { %v3380_v51 = vsub.s32 %v3376_v5, %v3379_v26  ;;  %v3403_v36 = vsel %vm3280_vm3, %v3402_v18, %v3378_v31 }
 0x55a   : > { %v3253_v53 = vadd.f32 0.041655596, %v3252_v4  ;;  %v3260_v63 = vadd.f32 0.008332121, %v3259_v21  ;;  %v3405_v33 = vsel %vm3279_vm11, 0, %v3403_v36 }
 0x55b   : > { %vm3381_vm9 = vcmp.lt.s32.totalorder %v3380_v51, 0  ;;  %v3382_v42 = vsub.s32 0, %v3380_v51 }
 0x55c   : > { %v3254_v52 = vmul.f32 %v3253_v53, %v3251_v20  ;;  %v3261_v56 = vmul.f32 %v3260_v63, %v3251_v20 }
 0x55d   : > { %v3383_v39 = vsel %vm3381_vm9, %v3382_v42, %v3380_v51 }
 0x55e   : > { %v3255_v27 = vadd.f32 -0.4999988, %v3254_v52  ;;  %v3262_v41 = vadd.f32 -0.16666654, %v3261_v56  ;;  %v3384_v57 = vclz %v3383_v39  ;;  %v4368_v56 = vpop.permute.xlu1 %4367 }
 0x560   : > { %v3256_v23 = vmul.f32 %v3255_v27, %v3251_v20  ;;  %v3263_v7 = vmul.f32 %v3262_v41, %v3251_v20  ;;  %v4553_v44 = vadd.s32 4294967294, %v3384_v57 }
 0x562   : > { %v3257_v16 = vadd.f32 1.0, %v3256_v23  ;;  %v3264_v22 = vadd.f32 1.0, %v3263_v7  ;;  %vm4554_vm13 = vcmp.lt.s32.totalorder %v4553_v44, 0 }
 0x563   : > { %v3387_v32 = vsel %vm4554_vm13, 0, %v4553_v44 }
 0x564   : > { %v3265_v49 = vmul.f32 %v3264_v22, %v3249_v59  ;;  %v3274_v47 = vxor.u32 2147483648, %v3257_v16  ;;  %v3388_v14 = vsub.s32 32, %v3387_v32  ;;  %v3392_v43 = vsub.s32 4294967266, %v3387_v32 }
 0x565   : > { %v3389_v17 = vshll.u32 %v3380_v51, %v3387_v32  ;;  %v3422_v59 = vadd.s32 3, %v3405_v33 }
 0x566   : > { %v3271_v55 = vxor.u32 2147483648, %v3265_v49  ;;  %v3275_v45 = vsel %vm3273_vm6, %v3274_v47, %v3265_v49  ;;  %v3390_v6 = vshrl.u32 %v3372_v30, %v3388_v14  ;;  %v3393_v3 = vadd.s32 127, %v3392_v43 }
 0x567   : > { %v3423_v4 = vand.u32 3, %v3422_v59 }
 0x568   : > { %v3272_v61 = vsel %vm3270_vm4, %v3257_v16, %v3271_v55  ;;  %v3391_v35 = vor.u32 %v3390_v6, %v3389_v17  ;;  %v3394_v46 = vshll.u32 %v3393_v3, 23 }
 0x569   : > { %v3276_v13 = vsel %vm3269_vm12, %v3272_v61, %v3275_v45  ;;  %vm3425_vm7 = vcmp.eq.s32.totalorder %v3423_v4, 0  ;;  %vm3428_vm0 = vcmp.eq.s32.totalorder %v3423_v4, 2  ;;  %vm3424_vm8 = vcmp.lt.s32.totalorder %v3423_v4, 2 }
 0x56a   : > { %v3277_v40 = vsel %vm3266_vm5, nan, %v3276_v13  ;;  %v3395_v1 = vor.u32 4788187, %v3394_v46  ;;  %v3398_v10 = vcvt.s32.f32 %v3391_v35 }
 0x56b   : > { %4388 = vmatpush.msrb.mxu0 %v3277_v40 }
 0x56c   : > { %4573 = vmatmul.msk.f32.vlgmr.msrb.gmra.mxu0 %vm1714_vm10, %v4363_v19  ;;  %v3396_v15 = vand.u32 2147483647, %v3395_v1 }
 0x56e   : > { %v3399_v34 = vmul.f32 %v3398_v10, %v3396_v15 }
 0x570   : > { %v3400_v50 = vxor.u32 2147483648, %v3399_v34 }
 0x572   : > { %v3401_v62 = vsel %vm3280_vm3, %v3400_v50, %v3399_v34 }
 0x573   : > { %v3404_v60 = vsel %vm3279_vm11, %v8156_v48, %v3401_v62 }
 0x574   : > { %v3406_v58 = vmul.f32 %v3404_v60, %v3404_v60 }
 0x576   : > { %v3407_v12 = vmul.f32 -0.001358992, %v3406_v58  ;;  %v3414_v38 = vmul.f32 -0.00019511016, %v3406_v58 }
 0x578   : > { %v3408_v29 = vadd.f32 0.041655596, %v3407_v12  ;;  %v3415_v0 = vadd.f32 0.008332121, %v3414_v38 }
 0x57a   : > { %v3409_v37 = vmul.f32 %v3408_v29, %v3406_v58  ;;  %v3416_v2 = vmul.f32 %v3415_v0, %v3406_v58 }
 0x57c   : > { %v3410_v8 = vadd.f32 -0.4999988, %v3409_v37  ;;  %v3417_v5 = vadd.f32 -0.16666654, %v3416_v2 }
 0x57e   : > { %v3411_v20 = vmul.f32 %v3410_v8, %v3406_v58  ;;  %v3418_v54 = vmul.f32 %v3417_v5, %v3406_v58 }
 0x580   : > { %v3412_v9 = vadd.f32 1.0, %v3411_v20  ;;  %v3419_v11 = vadd.f32 1.0, %v3418_v54 }
 0x582   : > { %v3420_v21 = vmul.f32 %v3419_v11, %v3404_v60  ;;  %v3429_v24 = vxor.u32 2147483648, %v3412_v9 }
 0x584   : > { %v3426_v53 = vxor.u32 2147483648, %v3420_v21  ;;  %v3430_v63 = vsel %vm3428_vm0, %v3429_v24, %v3420_v21 }
 0x586   : > { %v3427_v31 = vsel %vm3425_vm7, %v3412_v9, %v3426_v53 }
 0x587   : > { %v3431_v26 = vsel %vm3424_vm8, %v3427_v31, %v3430_v63 }
 0x588   : > { %v3432_v52 = vsel %vm3421_vm1, nan, %v3431_v26 }
 0x589   : > { %4408 = vmatpush.msrb.mxu1 %v3432_v52 }
 0x58a   : > { %4574 = vmatmul.msk.f32.vlgmr.msrb.gmra.mxu1 %vm1714_vm10, %v4363_v19 }
 0x5e9   : > { %v4390_v51 = vpop.f32.mrf.mxu0 }
 0x5ea   : > { %v4391_v41 = vadd.f32 %v4390_v51, %v4368_v56 }
 0x607   : > { %v4410_v28 = vpop.f32.mrf.mxu1 }
 0x608   : > { %v4411_v27 = vadd.f32 %v4410_v28, %v4368_v56 }
 0x60a   : > { %v4415_v42 = vrot.slane %v4411_v27, 4 }
 0x60c   : > { %v4417_v23 = vsel %vm4416_vm2, %v4391_v41, %v4415_v42 }
 0x60d   : > { %4419 = vst [vmem:[%s334_s13] sm:$0x77] %v4417_v23 }
 0x60e PF: > { %s19_s30 = sadd.s32 1, %s4608_s30  }
 0x60f   : > { %p16_p4 = scmp.ge.s32.totalorder %s19_s30, 4  }
 0x611   :  { %18 = sbr.rel (!%p16_p4) target bundleno = 1 (0x1), region = 86 }

</bundles_post_ra>
